<compile_context>
chip_gen: v5e
topology: v5e:2x2
jax: 0.10.0
libtpu: 0.0.40
codegen_flags: <defaults>
</compile_context>

<pallas_src>
import functools
import math

import jax
import jax.numpy as jnp
from jax.experimental import pallas as pl
from jax.experimental.pallas import tpu as pltpu

# ---- small, module-consistent config ------------------------------------
BATCH = 2
SEQ = 8            # memory seq must equal target seq (the .view() in the original MHA)
EMBED = 32
NUM_HEADS = 8
HEAD_DIM = EMBED // NUM_HEADS
FFN = 64           # stands in for dim_feedforward=2048
VOCAB = 100
VOCAB_PAD = ((VOCAB + 127) // 128) * 128   # lane-dense padded vocab (128)
NUM_LAYERS = 6
MAX_SEQ = 64
LN_EPS = 1e-5


# ---------------------------------------------------------------------------
# Fused Pallas kernel: embedding gather + 6 shared-weight decoder layers + fc_out
# ---------------------------------------------------------------------------
def _fused_decoder_kernel(
        B, S, E, num_layers,
        x_ids_ref, mem_ids_ref, emb_ref, pos_ref,
        sa_wqkv_ref, sa_bqkv_ref, sa_wo_ref, sa_bo_ref,
        ca_wq_ref, ca_bq_ref, ca_wkv_ref, ca_bkv_ref, ca_wo_ref, ca_bo_ref,
        ln1_g_ref, ln1_b_ref, ln2_g_ref, ln2_b_ref, ln3_g_ref, ln3_b_ref,
        ff_w1_ref, ff_b1_ref, ff_w2_ref, ff_b2_ref,
        fc_w_ref, fc_b_ref, pool_ref, pool_t_ref,
        o_ref):
    """Activations are (B*S, E) f32, rows ordered b*S + s (batch-major)."""
    BS = B * S

    # ---- loop-invariant small operands read ONCE (broadcast_in_dim is not CSE'd) ----
    sa_bqkv = sa_bqkv_ref[...]
    sa_bo = sa_bo_ref[...]
    ca_bq = ca_bq_ref[...]
    ca_bkv = ca_bkv_ref[...]
    ca_bo = ca_bo_ref[...]
    ln1_g, ln1_b = ln1_g_ref[...], ln1_b_ref[...]
    ln2_g, ln2_b = ln2_g_ref[...], ln2_b_ref[...]
    ln3_g, ln3_b = ln3_g_ref[...], ln3_b_ref[...]
    ff_b1 = ff_b1_ref[...]
    ff_b2 = ff_b2_ref[...]
    fc_b = fc_b_ref[...]
    pool_bf = pool_ref[...]       # (E, H) bf16, exact 0/1: pool[e, h] = 1 iff e//HEAD_DIM == h
    pool_t_bf = pool_t_ref[...]   # (H, E) bf16

    def mm(a, w_ref):
        # bf16 MXU operands, f32 accumulation (weight refs are already bf16)
        return jnp.dot(a.astype(jnp.bfloat16), w_ref[...],
                       preferred_element_type=jnp.float32)

    def layer_norm(v, g, b):
        # var = E[x^2] - mu^2: the two cross-lane reductions are independent -> overlap in XLU
        mu = jnp.mean(v, axis=-1, keepdims=True)
        ms = jnp.mean(v * v, axis=-1, keepdims=True)
        var = ms - mu * mu
        return (v - mu) * jax.lax.rsqrt(var + LN_EPS) * g + b

    def attend(Q, K, V):
        # Attention mixes over the *batch* axis per sequence position (the reference MHA
        # treats dim-0 of its (seq, batch, embed) input as "batch").  All (query-b, key-c)
        # pairs are stacked into one slab with rows ordered (c, b, s), so each attend is
        # exactly 2 bf16 MXU dots, 1 exp and 1 reciprocal; the softmax reduction over c and
        # the context accumulation are whole-slab maxes/adds (no trailing concatenate).
        k_rep = jnp.concatenate(
            [K[c * S:(c + 1) * S, :] for c in range(B) for _ in range(B)], axis=0)
        v_rep = jnp.concatenate(
            [V[c * S:(c + 1) * S, :] for c in range(B) for _ in range(B)], axis=0)
        q_tile = jnp.concatenate([Q] * B, axis=0)                     # (B*B*S, E)

        # one MXU op: per-head logits for every (c, b, s)
        logits = jnp.dot((q_tile * k_rep).astype(jnp.bfloat16), pool_bf,
                         preferred_element_type=jnp.float32)          # (B*B*S, H)

        # softmax over the key-batch axis c
        m = logits[0:BS, :]
        for c in range(1, B):
            m = jnp.maximum(m, logits[c * BS:(c + 1) * BS, :])
        e = jnp.exp(logits - jnp.concatenate([m] * B, axis=0))        # one EUP exp pass
        denom = e[0:BS, :]
        for c in range(1, B):
            denom = denom + e[c * BS:(c + 1) * BS, :]
        inv = pl.reciprocal(denom, approx=True)                       # one EUP reciprocal
        probs = e * jnp.concatenate([inv] * B, axis=0)                # (B*B*S, H)

        # one MXU op: broadcast per-head probabilities back across head_dim lanes
        p_broad = jnp.dot(probs.astype(jnp.bfloat16), pool_t_bf,
                          preferred_element_type=jnp.float32)         # (B*B*S, E)
        contrib = p_broad * v_rep
        ctx = contrib[0:BS, :]
        for c in range(1, B):
            ctx = ctx + contrib[c * BS:(c + 1) * BS, :]
        return ctx                                                    # (B*S, E), rows (b, s)

    # ---- in-kernel embedding gather (exact f32 one-hot matmul, done once) + pos add ----
    emb = emb_ref[...]                                                # (VOCAB_PAD, E) f32
    col = jax.lax.broadcasted_iota(jnp.int32, (BS, VOCAB_PAD), 1)
    x0 = jnp.dot((col == x_ids_ref[...]).astype(jnp.float32), emb,
                 preferred_element_type=jnp.float32) + pos_ref[...]   # (B*S, E)
    mem = jnp.dot((col == mem_ids_ref[...]).astype(jnp.float32), emb,
                  preferred_element_type=jnp.float32)                 # (B*S, E)
    # TODO(synk): dropout (p=0.1) is identity at inference; training-mode dropout not implemented.

    # cross-attention K/V of memory are layer-invariant (shared weights) -> computed once
    kv_mem = mm(mem, ca_wkv_ref) + ca_bkv                             # (B*S, 2E)
    k_mem = kv_mem[:, :E]
    v_mem = kv_mem[:, E:]

    def one_layer(_, x):
        # self attention (1/sqrt(D) already folded into the Q weights/bias)
        qkv = mm(x, sa_wqkv_ref) + sa_bqkv                            # (B*S, 3E)
        sa = attend(qkv[:, :E], qkv[:, E:2 * E], qkv[:, 2 * E:])
        sa = mm(sa, sa_wo_ref) + sa_bo
        x1 = layer_norm(x + sa, ln1_g, ln1_b)
        # cross attention
        qc = mm(x1, ca_wq_ref) + ca_bq
        ca = attend(qc, k_mem, v_mem)
        ca = mm(ca, ca_wo_ref) + ca_bo
        x2 = layer_norm(x1 + ca, ln2_g, ln2_b)
        # feed forward
        h = jnp.maximum(mm(x2, ff_w1_ref) + ff_b1, 0.0)
        f = mm(h, ff_w2_ref) + ff_b2
        return layer_norm(x2 + f, ln3_g, ln3_b)

    # fully unrolled: static trip count 6, shared weights -> cross-layer LLO scheduling
    x_out = jax.lax.fori_loop(0, num_layers, one_layer, x0, unroll=True)

    # final projection to the (128-padded, lane-dense) vocab
    o_ref[...] = (mm(x_out, fc_w_ref) + fc_b).astype(o_ref.dtype)


def fused_decoder(x_ids_flat, mem_ids_flat, kw):
    """x_ids_flat/mem_ids_flat: (B*S, 1) int32 -> padded logits (B*S, VOCAB_PAD) f32."""
    n = x_ids_flat.shape[0]
    kernel = functools.partial(_fused_decoder_kernel, BATCH, SEQ, EMBED, NUM_LAYERS)
    args = (x_ids_flat, mem_ids_flat,
            kw["emb_pad"], kw["pos_bs"],
            kw["sa_wqkv"], kw["sa_bqkv"], kw["sa_wo"], kw["sa_bo"],
            kw["ca_wq"], kw["ca_bq"], kw["ca_wkv"], kw["ca_bkv"], kw["ca_wo"], kw["ca_bo"],
            kw["ln1_g"], kw["ln1_b"], kw["ln2_g"], kw["ln2_b"], kw["ln3_g"], kw["ln3_b"],
            kw["ff_w1"], kw["ff_b1"], kw["ff_w2"], kw["ff_b2"],
            kw["fc_w"], kw["fc_b"], kw["pool"], kw["pool_t"])
    vmem = pl.BlockSpec(memory_space=pltpu.MemorySpace.VMEM)
    # No grid: the whole working set (< 100 KB) is VMEM-resident for the single invocation.
    return pl.pallas_call(
        kernel,
        out_shape=jax.ShapeDtypeStruct((n, VOCAB_PAD), jnp.float32),
        in_specs=[vmem] * len(args),
        out_specs=vmem,
    )(*args)


# ---------------------------------------------------------------------------
# Parameters (deterministic synthetic init, torch-like layout)
# ---------------------------------------------------------------------------
def init_params(key):
    keys = jax.random.split(key, 32)
    k = iter(keys)

    def lin(kk, fan_in, fan_out):
        # stored pre-transposed: y = x @ W + b
        w = jax.random.normal(kk, (fan_in, fan_out), jnp.float32) * 0.05
        b = jnp.zeros((1, fan_out), jnp.float32)
        return w, b

    layer = {}
    for pre in ("sa", "ca"):
        for name in ("q", "k", "v", "o"):
            w, b = lin(next(k), EMBED, EMBED)
            layer[f"{pre}_w{name}"] = w
            layer[f"{pre}_b{name}"] = b
    layer["ff_w1"], layer["ff_b1"] = lin(next(k), EMBED, FFN)
    layer["ff_w2"], layer["ff_b2"] = lin(next(k), FFN, EMBED)
    for i in (1, 2, 3):
        layer[f"ln{i}_g"] = jnp.ones((1, EMBED), jnp.float32)
        layer[f"ln{i}_b"] = jnp.zeros((1, EMBED), jnp.float32)

    params = {
        "embedding": jax.random.normal(next(k), (VOCAB, EMBED), jnp.float32) * 0.05,
        # nn.Parameter(torch.zeros(1, max_seq_length, embedding_dim))
        "pos": jnp.zeros((1, MAX_SEQ, EMBED), jnp.float32),
        "layer": layer,   # single shared layer, reused NUM_LAYERS times
    }
    params["fc_w"], params["fc_b"] = lin(next(k), EMBED, VOCAB)
    return params


def prepare_weights(params):
    """Fuse QKV, fold 1/sqrt(D) into Q, cast MXU weights to bf16, pad vocab to 128."""
    lp = params["layer"]
    scale = 1.0 / math.sqrt(float(HEAD_DIM))

    def bf(x):
        return x.astype(jnp.bfloat16)

    kw = {
        # embedding table padded along vocab rows to 128 (padded rows are never selected)
        "emb_pad": jnp.pad(params["embedding"],
                           ((0, VOCAB_PAD - VOCAB), (0, 0))).astype(jnp.float32),
        # positional encoding pre-tiled to the (B*S, E) batch-major row layout
        "pos_bs": jnp.tile(params["pos"][0, :SEQ, :], (BATCH, 1)).astype(jnp.float32),
        "sa_wqkv": bf(jnp.concatenate(
            [lp["sa_wq"] * scale, lp["sa_wk"], lp["sa_wv"]], axis=1)),
        "sa_bqkv": jnp.concatenate(
            [lp["sa_bq"] * scale, lp["sa_bk"], lp["sa_bv"]], axis=1),
        "sa_wo": bf(lp["sa_wo"]), "sa_bo": lp["sa_bo"],
        "ca_wq": bf(lp["ca_wq"] * scale), "ca_bq": lp["ca_bq"] * scale,
        "ca_wkv": bf(jnp.concatenate([lp["ca_wk"], lp["ca_wv"]], axis=1)),
        "ca_bkv": jnp.concatenate([lp["ca_bk"], lp["ca_bv"]], axis=1),
        "ca_wo": bf(lp["ca_wo"]), "ca_bo": lp["ca_bo"],
        "ln1_g": lp["ln1_g"], "ln1_b": lp["ln1_b"],
        "ln2_g": lp["ln2_g"], "ln2_b": lp["ln2_b"],
        "ln3_g": lp["ln3_g"], "ln3_b": lp["ln3_b"],
        "ff_w1": bf(lp["ff_w1"]), "ff_b1": lp["ff_b1"],
        "ff_w2": bf(lp["ff_w2"]), "ff_b2": lp["ff_b2"],
        # lane-dense final projection: pad vocab 100 -> 128 (sliced back in wrapper)
        "fc_w": bf(jnp.pad(params["fc_w"], ((0, 0), (0, VOCAB_PAD - VOCAB)))),
        "fc_b": jnp.pad(params["fc_b"], ((0, 0), (0, VOCAB_PAD - VOCAB))),
    }
    # head-pooling matrices (exact 0/1 in bf16): pool[e, h] = 1 iff e // HEAD_DIM == h
    e_idx = jnp.arange(EMBED)[:, None] // HEAD_DIM
    h_idx = jnp.arange(NUM_HEADS)[None, :]
    pool = (e_idx == h_idx).astype(jnp.bfloat16)
    kw["pool"] = pool
    kw["pool_t"] = pool.T
    return kw


# ---------------------------------------------------------------------------
# Forward pass: everything (embedding gather, 6 layers, fc_out) is ONE kernel
# ---------------------------------------------------------------------------
@jax.jit
def forward(x_ids, mem_ids, kw):
    B, S = x_ids.shape
    x_flat = x_ids.reshape(B * S, 1).astype(jnp.int32)
    m_flat = mem_ids.reshape(B * S, 1).astype(jnp.int32)
    logits_pad = fused_decoder(x_flat, m_flat, kw)            # (B*S, VOCAB_PAD)
    return logits_pad.reshape(B, S, VOCAB_PAD)[:, :, :VOCAB]  # (B, S, VOCAB)


# ---------------------------------------------------------------------------
if __name__ == "__main__":
    root = jax.random.PRNGKey(0)
    kp, kx, km = jax.random.split(root, 3)
    params = init_params(kp)
    kw = prepare_weights(params)

    x_ids = jax.random.randint(kx, (BATCH, SEQ), 0, VOCAB, dtype=jnp.int32)
    mem_ids = jax.random.randint(km, (BATCH, SEQ), 0, VOCAB, dtype=jnp.int32)

    out = jax.block_until_ready(forward(x_ids, mem_ids, kw))

    assert out.shape == (BATCH, SEQ, VOCAB), out.shape
    assert bool(jnp.all(jnp.isfinite(out)))
    print("KERNEL_OK")
</pallas_src>

<mosaic_0001>
module attributes {stable_mosaic.version = 11 : i64} {
  func.func @_fused_decoder_kernel(%arg0: memref<16x1xi32, #tpu.memory_space<vmem>>, %arg1: memref<16x1xi32, #tpu.memory_space<vmem>>, %arg2: memref<128x32xf32, #tpu.memory_space<vmem>>, %arg3: memref<16x32xf32, #tpu.memory_space<vmem>>, %arg4: memref<32x96xbf16, #tpu.memory_space<vmem>>, %arg5: memref<1x96xf32, #tpu.memory_space<vmem>>, %arg6: memref<32x32xbf16, #tpu.memory_space<vmem>>, %arg7: memref<1x32xf32, #tpu.memory_space<vmem>>, %arg8: memref<32x32xbf16, #tpu.memory_space<vmem>>, %arg9: memref<1x32xf32, #tpu.memory_space<vmem>>, %arg10: memref<32x64xbf16, #tpu.memory_space<vmem>>, %arg11: memref<1x64xf32, #tpu.memory_space<vmem>>, %arg12: memref<32x32xbf16, #tpu.memory_space<vmem>>, %arg13: memref<1x32xf32, #tpu.memory_space<vmem>>, %arg14: memref<1x32xf32, #tpu.memory_space<vmem>>, %arg15: memref<1x32xf32, #tpu.memory_space<vmem>>, %arg16: memref<1x32xf32, #tpu.memory_space<vmem>>, %arg17: memref<1x32xf32, #tpu.memory_space<vmem>>, %arg18: memref<1x32xf32, #tpu.memory_space<vmem>>, %arg19: memref<1x32xf32, #tpu.memory_space<vmem>>, %arg20: memref<32x64xbf16, #tpu.memory_space<vmem>>, %arg21: memref<1x64xf32, #tpu.memory_space<vmem>>, %arg22: memref<64x32xbf16, #tpu.memory_space<vmem>>, %arg23: memref<1x32xf32, #tpu.memory_space<vmem>>, %arg24: memref<32x128xbf16, #tpu.memory_space<vmem>>, %arg25: memref<1x128xf32, #tpu.memory_space<vmem>>, %arg26: memref<32x8xbf16, #tpu.memory_space<vmem>>, %arg27: memref<8x32xbf16, #tpu.memory_space<vmem>>, %arg28: memref<16x128xf32, #tpu.memory_space<vmem>>) attributes {dimension_semantics = [], scalar_prefetch = 0 : i64, scratch_operands = 0 : i64, tpu.core_type = #tpu.core_type<tc>} {
    %c0 = arith.constant 0 : index
    %c0_0 = arith.constant 0 : index
    %0 = vector.load %arg5[%c0, %c0_0] : memref<1x96xf32, #tpu.memory_space<vmem>>, vector<1x96xf32>
    %c0_1 = arith.constant 0 : index
    %c0_2 = arith.constant 0 : index
    %1 = vector.load %arg7[%c0_1, %c0_2] : memref<1x32xf32, #tpu.memory_space<vmem>>, vector<1x32xf32>
    %c0_3 = arith.constant 0 : index
    %c0_4 = arith.constant 0 : index
    %2 = vector.load %arg9[%c0_3, %c0_4] : memref<1x32xf32, #tpu.memory_space<vmem>>, vector<1x32xf32>
    %c0_5 = arith.constant 0 : index
    %c0_6 = arith.constant 0 : index
    %3 = vector.load %arg11[%c0_5, %c0_6] : memref<1x64xf32, #tpu.memory_space<vmem>>, vector<1x64xf32>
    %c0_7 = arith.constant 0 : index
    %c0_8 = arith.constant 0 : index
    %4 = vector.load %arg13[%c0_7, %c0_8] : memref<1x32xf32, #tpu.memory_space<vmem>>, vector<1x32xf32>
    %c0_9 = arith.constant 0 : index
    %c0_10 = arith.constant 0 : index
    %5 = vector.load %arg14[%c0_9, %c0_10] : memref<1x32xf32, #tpu.memory_space<vmem>>, vector<1x32xf32>
    %c0_11 = arith.constant 0 : index
    %c0_12 = arith.constant 0 : index
    %6 = vector.load %arg15[%c0_11, %c0_12] : memref<1x32xf32, #tpu.memory_space<vmem>>, vector<1x32xf32>
    %c0_13 = arith.constant 0 : index
    %c0_14 = arith.constant 0 : index
    %7 = vector.load %arg16[%c0_13, %c0_14] : memref<1x32xf32, #tpu.memory_space<vmem>>, vector<1x32xf32>
    %c0_15 = arith.constant 0 : index
    %c0_16 = arith.constant 0 : index
    %8 = vector.load %arg17[%c0_15, %c0_16] : memref<1x32xf32, #tpu.memory_space<vmem>>, vector<1x32xf32>
    %c0_17 = arith.constant 0 : index
    %c0_18 = arith.constant 0 : index
    %9 = vector.load %arg18[%c0_17, %c0_18] : memref<1x32xf32, #tpu.memory_space<vmem>>, vector<1x32xf32>
    %c0_19 = arith.constant 0 : index
    %c0_20 = arith.constant 0 : index
    %10 = vector.load %arg19[%c0_19, %c0_20] : memref<1x32xf32, #tpu.memory_space<vmem>>, vector<1x32xf32>
    %c0_21 = arith.constant 0 : index
    %c0_22 = arith.constant 0 : index
    %11 = vector.load %arg21[%c0_21, %c0_22] : memref<1x64xf32, #tpu.memory_space<vmem>>, vector<1x64xf32>
    %c0_23 = arith.constant 0 : index
    %c0_24 = arith.constant 0 : index
    %12 = vector.load %arg23[%c0_23, %c0_24] : memref<1x32xf32, #tpu.memory_space<vmem>>, vector<1x32xf32>
    %c0_25 = arith.constant 0 : index
    %c0_26 = arith.constant 0 : index
    %13 = vector.load %arg25[%c0_25, %c0_26] : memref<1x128xf32, #tpu.memory_space<vmem>>, vector<1x128xf32>
    %c0_27 = arith.constant 0 : index
    %c0_28 = arith.constant 0 : index
    %14 = vector.load %arg26[%c0_27, %c0_28] : memref<32x8xbf16, #tpu.memory_space<vmem>>, vector<32x8xbf16>
    %c0_29 = arith.constant 0 : index
    %c0_30 = arith.constant 0 : index
    %15 = vector.load %arg27[%c0_29, %c0_30] : memref<8x32xbf16, #tpu.memory_space<vmem>>, vector<8x32xbf16>
    %c0_31 = arith.constant 0 : index
    %c0_32 = arith.constant 0 : index
    %16 = vector.load %arg2[%c0_31, %c0_32] : memref<128x32xf32, #tpu.memory_space<vmem>>, vector<128x32xf32>
    %17 = tpu.iota {dimensions = array<i32: 1>} : vector<16x128xi32>
    %c0_33 = arith.constant 0 : index
    %c0_34 = arith.constant 0 : index
    %18 = vector.load %arg0[%c0_33, %c0_34] : memref<16x1xi32, #tpu.memory_space<vmem>>, vector<16x1xi32>
    %19 = vector.broadcast %18 : vector<16x1xi32> to vector<16x128xi32>
    %20 = arith.cmpi eq, %17, %19 : vector<16x128xi32>
    %21 = arith.extui %20 : vector<16x128xi1> to vector<16x128xi32>
    %22 = arith.sitofp %21 : vector<16x128xi32> to vector<16x128xf32>
    %cst = arith.constant dense<0.000000e+00> : vector<16x32xf32>
    %23 = tpu.matmul %22, %16, %cst {dimension_numbers = #tpu.dot_dimension_numbers<[1], [0], [0], [1], [0, 0, 1, 1], [], []>} : vector<16x128xf32>, vector<128x32xf32>, vector<16x32xf32> -> vector<16x32xf32>
    %c0_35 = arith.constant 0 : index
    %c0_36 = arith.constant 0 : index
    %24 = vector.load %arg3[%c0_35, %c0_36] : memref<16x32xf32, #tpu.memory_space<vmem>>, vector<16x32xf32>
    %25 = arith.addf %23, %24 : vector<16x32xf32>
    %c0_37 = arith.constant 0 : index
    %c0_38 = arith.constant 0 : index
    %26 = vector.load %arg1[%c0_37, %c0_38] : memref<16x1xi32, #tpu.memory_space<vmem>>, vector<16x1xi32>
    %27 = vector.broadcast %26 : vector<16x1xi32> to vector<16x128xi32>
    %28 = arith.cmpi eq, %17, %27 : vector<16x128xi32>
    %29 = arith.extui %28 : vector<16x128xi1> to vector<16x128xi32>
    %30 = arith.sitofp %29 : vector<16x128xi32> to vector<16x128xf32>
    %cst_39 = arith.constant dense<0.000000e+00> : vector<16x32xf32>
    %31 = tpu.matmul %30, %16, %cst_39 {dimension_numbers = #tpu.dot_dimension_numbers<[1], [0], [0], [1], [0, 0, 1, 1], [], []>} : vector<16x128xf32>, vector<128x32xf32>, vector<16x32xf32> -> vector<16x32xf32>
    %32 = arith.truncf %31 : vector<16x32xf32> to vector<16x32xbf16>
    %c0_40 = arith.constant 0 : index
    %c0_41 = arith.constant 0 : index
    %33 = vector.load %arg10[%c0_40, %c0_41] : memref<32x64xbf16, #tpu.memory_space<vmem>>, vector<32x64xbf16>
    %cst_42 = arith.constant dense<0.000000e+00> : vector<16x64xf32>
    %34 = tpu.matmul %32, %33, %cst_42 {dimension_numbers = #tpu.dot_dimension_numbers<[1], [0], [0], [1], [0, 0, 1, 1], [], []>} : vector<16x32xbf16>, vector<32x64xbf16>, vector<16x64xf32> -> vector<16x64xf32>
    %35 = vector.broadcast %3 : vector<1x64xf32> to vector<16x64xf32>
    %36 = arith.addf %34, %35 : vector<16x64xf32>
    %37 = vector.extract_strided_slice %36 {offsets = [0, 0], sizes = [16, 32], strides = [1, 1]} : vector<16x64xf32> to vector<16x32xf32>
    %38 = vector.extract_strided_slice %36 {offsets = [0, 32], sizes = [16, 32], strides = [1, 1]} : vector<16x64xf32> to vector<16x32xf32>
    %c0_i32 = arith.constant 0 : i32
    %39 = arith.truncf %25 : vector<16x32xf32> to vector<16x32xbf16>
    %c0_43 = arith.constant 0 : index
    %c0_44 = arith.constant 0 : index
    %40 = vector.load %arg4[%c0_43, %c0_44] : memref<32x96xbf16, #tpu.memory_space<vmem>>, vector<32x96xbf16>
    %cst_45 = arith.constant dense<0.000000e+00> : vector<16x96xf32>
    %41 = tpu.matmul %39, %40, %cst_45 {dimension_numbers = #tpu.dot_dimension_numbers<[1], [0], [0], [1], [0, 0, 1, 1], [], []>} : vector<16x32xbf16>, vector<32x96xbf16>, vector<16x96xf32> -> vector<16x96xf32>
    %42 = vector.broadcast %0 : vector<1x96xf32> to vector<16x96xf32>
    %43 = arith.addf %41, %42 : vector<16x96xf32>
    %44 = vector.extract_strided_slice %43 {offsets = [0, 0], sizes = [16, 32], strides = [1, 1]} : vector<16x96xf32> to vector<16x32xf32>
    %45 = vector.extract_strided_slice %43 {offsets = [0, 32], sizes = [16, 32], strides = [1, 1]} : vector<16x96xf32> to vector<16x32xf32>
    %46 = vector.extract_strided_slice %43 {offsets = [0, 64], sizes = [16, 32], strides = [1, 1]} : vector<16x96xf32> to vector<16x32xf32>
    %47 = vector.extract_strided_slice %45 {offsets = [0, 0], sizes = [8, 32], strides = [1, 1]} : vector<16x32xf32> to vector<8x32xf32>
    %48 = vector.extract_strided_slice %45 {offsets = [0, 0], sizes = [8, 32], strides = [1, 1]} : vector<16x32xf32> to vector<8x32xf32>
    %49 = vector.extract_strided_slice %45 {offsets = [8, 0], sizes = [8, 32], strides = [1, 1]} : vector<16x32xf32> to vector<8x32xf32>
    %50 = vector.extract_strided_slice %45 {offsets = [8, 0], sizes = [8, 32], strides = [1, 1]} : vector<16x32xf32> to vector<8x32xf32>
    %51 = tpu.concatenate %47, %48, %49, %50 in 0 : vector<8x32xf32>, vector<8x32xf32>, vector<8x32xf32>, vector<8x32xf32> -> vector<32x32xf32>
    %52 = vector.extract_strided_slice %46 {offsets = [0, 0], sizes = [8, 32], strides = [1, 1]} : vector<16x32xf32> to vector<8x32xf32>
    %53 = vector.extract_strided_slice %46 {offsets = [0, 0], sizes = [8, 32], strides = [1, 1]} : vector<16x32xf32> to vector<8x32xf32>
    %54 = vector.extract_strided_slice %46 {offsets = [8, 0], sizes = [8, 32], strides = [1, 1]} : vector<16x32xf32> to vector<8x32xf32>
    %55 = vector.extract_strided_slice %46 {offsets = [8, 0], sizes = [8, 32], strides = [1, 1]} : vector<16x32xf32> to vector<8x32xf32>
    %56 = tpu.concatenate %52, %53, %54, %55 in 0 : vector<8x32xf32>, vector<8x32xf32>, vector<8x32xf32>, vector<8x32xf32> -> vector<32x32xf32>
    %57 = tpu.concatenate %44, %44 in 0 : vector<16x32xf32>, vector<16x32xf32> -> vector<32x32xf32>
    %58 = arith.mulf %57, %51 : vector<32x32xf32>
    %59 = arith.truncf %58 : vector<32x32xf32> to vector<32x32xbf16>
    %cst_46 = arith.constant dense<0.000000e+00> : vector<32x8xf32>
    %60 = tpu.matmul %59, %14, %cst_46 {dimension_numbers = #tpu.dot_dimension_numbers<[1], [0], [0], [1], [0, 0, 1, 1], [], []>} : vector<32x32xbf16>, vector<32x8xbf16>, vector<32x8xf32> -> vector<32x8xf32>
    %61 = vector.extract_strided_slice %60 {offsets = [0, 0], sizes = [16, 8], strides = [1, 1]} : vector<32x8xf32> to vector<16x8xf32>
    %62 = vector.extract_strided_slice %60 {offsets = [16, 0], sizes = [16, 8], strides = [1, 1]} : vector<32x8xf32> to vector<16x8xf32>
    %63 = arith.maximumf %61, %62 : vector<16x8xf32>
    %64 = tpu.concatenate %63, %63 in 0 : vector<16x8xf32>, vector<16x8xf32> -> vector<32x8xf32>
    %65 = arith.subf %60, %64 : vector<32x8xf32>
    %66 = math.exp %65 : vector<32x8xf32>
    %67 = vector.extract_strided_slice %66 {offsets = [0, 0], sizes = [16, 8], strides = [1, 1]} : vector<32x8xf32> to vector<16x8xf32>
    %68 = vector.extract_strided_slice %66 {offsets = [16, 0], sizes = [16, 8], strides = [1, 1]} : vector<32x8xf32> to vector<16x8xf32>
    %69 = arith.addf %67, %68 : vector<16x8xf32>
    %70 = tpu.reciprocal %69 {approx = true} : vector<16x8xf32> -> vector<16x8xf32>
    %71 = tpu.concatenate %70, %70 in 0 : vector<16x8xf32>, vector<16x8xf32> -> vector<32x8xf32>
    %72 = arith.mulf %66, %71 : vector<32x8xf32>
    %73 = arith.truncf %72 : vector<32x8xf32> to vector<32x8xbf16>
    %cst_47 = arith.constant dense<0.000000e+00> : vector<32x32xf32>
    %74 = tpu.matmul %73, %15, %cst_47 {dimension_numbers = #tpu.dot_dimension_numbers<[1], [0], [0], [1], [0, 0, 1, 1], [], []>} : vector<32x8xbf16>, vector<8x32xbf16>, vector<32x32xf32> -> vector<32x32xf32>
    %75 = arith.mulf %74, %56 : vector<32x32xf32>
    %76 = vector.extract_strided_slice %75 {offsets = [0, 0], sizes = [16, 32], strides = [1, 1]} : vector<32x32xf32> to vector<16x32xf32>
    %77 = vector.extract_strided_slice %75 {offsets = [16, 0], sizes = [16, 32], strides = [1, 1]} : vector<32x32xf32> to vector<16x32xf32>
    %78 = arith.addf %76, %77 : vector<16x32xf32>
    %79 = arith.truncf %78 : vector<16x32xf32> to vector<16x32xbf16>
    %c0_48 = arith.constant 0 : index
    %c0_49 = arith.constant 0 : index
    %80 = vector.load %arg6[%c0_48, %c0_49] : memref<32x32xbf16, #tpu.memory_space<vmem>>, vector<32x32xbf16>
    %cst_50 = arith.constant dense<0.000000e+00> : vector<16x32xf32>
    %81 = tpu.matmul %79, %80, %cst_50 {dimension_numbers = #tpu.dot_dimension_numbers<[1], [0], [0], [1], [0, 0, 1, 1], [], []>} : vector<16x32xbf16>, vector<32x32xbf16>, vector<16x32xf32> -> vector<16x32xf32>
    %82 = vector.broadcast %1 : vector<1x32xf32> to vector<16x32xf32>
    %83 = arith.addf %81, %82 : vector<16x32xf32>
    %84 = arith.addf %25, %83 : vector<16x32xf32>
    %cst_51 = arith.constant dense<0.000000e+00> : vector<16xf32>
    %85 = vector.multi_reduction <add>, %84, %cst_51 [1] : vector<16x32xf32> to vector<16xf32>
    %86 = vector.shape_cast %85 : vector<16xf32> to vector<16x1xf32>
    %cst_52 = arith.constant 3.200000e+01 : f32
    %87 = vector.broadcast %cst_52 : f32 to vector<16x1xf32>
    %88 = arith.divf %86, %87 : vector<16x1xf32>
    %89 = arith.mulf %84, %84 : vector<16x32xf32>
    %cst_53 = arith.constant dense<0.000000e+00> : vector<16xf32>
    %90 = vector.multi_reduction <add>, %89, %cst_53 [1] : vector<16x32xf32> to vector<16xf32>
    %91 = vector.shape_cast %90 : vector<16xf32> to vector<16x1xf32>
    %cst_54 = arith.constant 3.200000e+01 : f32
    %92 = vector.broadcast %cst_54 : f32 to vector<16x1xf32>
    %93 = arith.divf %91, %92 : vector<16x1xf32>
    %94 = arith.mulf %88, %88 : vector<16x1xf32>
    %95 = arith.subf %93, %94 : vector<16x1xf32>
    %96 = vector.broadcast %88 : vector<16x1xf32> to vector<16x32xf32>
    %97 = arith.subf %84, %96 : vector<16x32xf32>
    %cst_55 = arith.constant 9.99999974E-6 : f32
    %98 = vector.broadcast %cst_55 : f32 to vector<16x1xf32>
    %99 = arith.addf %95, %98 : vector<16x1xf32>
    %100 = math.rsqrt %99 : vector<16x1xf32>
    %101 = vector.broadcast %100 : vector<16x1xf32> to vector<16x32xf32>
    %102 = arith.mulf %97, %101 : vector<16x32xf32>
    %103 = vector.broadcast %5 : vector<1x32xf32> to vector<16x32xf32>
    %104 = arith.mulf %102, %103 : vector<16x32xf32>
    %105 = vector.broadcast %6 : vector<1x32xf32> to vector<16x32xf32>
    %106 = arith.addf %104, %105 : vector<16x32xf32>
    %107 = arith.truncf %106 : vector<16x32xf32> to vector<16x32xbf16>
    %c0_56 = arith.constant 0 : index
    %c0_57 = arith.constant 0 : index
    %108 = vector.load %arg8[%c0_56, %c0_57] : memref<32x32xbf16, #tpu.memory_space<vmem>>, vector<32x32xbf16>
    %cst_58 = arith.constant dense<0.000000e+00> : vector<16x32xf32>
    %109 = tpu.matmul %107, %108, %cst_58 {dimension_numbers = #tpu.dot_dimension_numbers<[1], [0], [0], [1], [0, 0, 1, 1], [], []>} : vector<16x32xbf16>, vector<32x32xbf16>, vector<16x32xf32> -> vector<16x32xf32>
    %110 = vector.broadcast %2 : vector<1x32xf32> to vector<16x32xf32>
    %111 = arith.addf %109, %110 : vector<16x32xf32>
    %112 = vector.extract_strided_slice %37 {offsets = [0, 0], sizes = [8, 32], strides = [1, 1]} : vector<16x32xf32> to vector<8x32xf32>
    %113 = vector.extract_strided_slice %37 {offsets = [0, 0], sizes = [8, 32], strides = [1, 1]} : vector<16x32xf32> to vector<8x32xf32>
    %114 = vector.extract_strided_slice %37 {offsets = [8, 0], sizes = [8, 32], strides = [1, 1]} : vector<16x32xf32> to vector<8x32xf32>
    %115 = vector.extract_strided_slice %37 {offsets = [8, 0], sizes = [8, 32], strides = [1, 1]} : vector<16x32xf32> to vector<8x32xf32>
    %116 = tpu.concatenate %112, %113, %114, %115 in 0 : vector<8x32xf32>, vector<8x32xf32>, vector<8x32xf32>, vector<8x32xf32> -> vector<32x32xf32>
    %117 = vector.extract_strided_slice %38 {offsets = [0, 0], sizes = [8, 32], strides = [1, 1]} : vector<16x32xf32> to vector<8x32xf32>
    %118 = vector.extract_strided_slice %38 {offsets = [0, 0], sizes = [8, 32], strides = [1, 1]} : vector<16x32xf32> to vector<8x32xf32>
    %119 = vector.extract_strided_slice %38 {offsets = [8, 0], sizes = [8, 32], strides = [1, 1]} : vector<16x32xf32> to vector<8x32xf32>
    %120 = vector.extract_strided_slice %38 {offsets = [8, 0], sizes = [8, 32], strides = [1, 1]} : vector<16x32xf32> to vector<8x32xf32>
    %121 = tpu.concatenate %117, %118, %119, %120 in 0 : vector<8x32xf32>, vector<8x32xf32>, vector<8x32xf32>, vector<8x32xf32> -> vector<32x32xf32>
    %122 = tpu.concatenate %111, %111 in 0 : vector<16x32xf32>, vector<16x32xf32> -> vector<32x32xf32>
    %123 = arith.mulf %122, %116 : vector<32x32xf32>
    %124 = arith.truncf %123 : vector<32x32xf32> to vector<32x32xbf16>
    %cst_59 = arith.constant dense<0.000000e+00> : vector<32x8xf32>
    %125 = tpu.matmul %124, %14, %cst_59 {dimension_numbers = #tpu.dot_dimension_numbers<[1], [0], [0], [1], [0, 0, 1, 1], [], []>} : vector<32x32xbf16>, vector<32x8xbf16>, vector<32x8xf32> -> vector<32x8xf32>
    %126 = vector.extract_strided_slice %125 {offsets = [0, 0], sizes = [16, 8], strides = [1, 1]} : vector<32x8xf32> to vector<16x8xf32>
    %127 = vector.extract_strided_slice %125 {offsets = [16, 0], sizes = [16, 8], strides = [1, 1]} : vector<32x8xf32> to vector<16x8xf32>
    %128 = arith.maximumf %126, %127 : vector<16x8xf32>
    %129 = tpu.concatenate %128, %128 in 0 : vector<16x8xf32>, vector<16x8xf32> -> vector<32x8xf32>
    %130 = arith.subf %125, %129 : vector<32x8xf32>
    %131 = math.exp %130 : vector<32x8xf32>
    %132 = vector.extract_strided_slice %131 {offsets = [0, 0], sizes = [16, 8], strides = [1, 1]} : vector<32x8xf32> to vector<16x8xf32>
    %133 = vector.extract_strided_slice %131 {offsets = [16, 0], sizes = [16, 8], strides = [1, 1]} : vector<32x8xf32> to vector<16x8xf32>
    %134 = arith.addf %132, %133 : vector<16x8xf32>
    %135 = tpu.reciprocal %134 {approx = true} : vector<16x8xf32> -> vector<16x8xf32>
    %136 = tpu.concatenate %135, %135 in 0 : vector<16x8xf32>, vector<16x8xf32> -> vector<32x8xf32>
    %137 = arith.mulf %131, %136 : vector<32x8xf32>
    %138 = arith.truncf %137 : vector<32x8xf32> to vector<32x8xbf16>
    %cst_60 = arith.constant dense<0.000000e+00> : vector<32x32xf32>
    %139 = tpu.matmul %138, %15, %cst_60 {dimension_numbers = #tpu.dot_dimension_numbers<[1], [0], [0], [1], [0, 0, 1, 1], [], []>} : vector<32x8xbf16>, vector<8x32xbf16>, vector<32x32xf32> -> vector<32x32xf32>
    %140 = arith.mulf %139, %121 : vector<32x32xf32>
    %141 = vector.extract_strided_slice %140 {offsets = [0, 0], sizes = [16, 32], strides = [1, 1]} : vector<32x32xf32> to vector<16x32xf32>
    %142 = vector.extract_strided_slice %140 {offsets = [16, 0], sizes = [16, 32], strides = [1, 1]} : vector<32x32xf32> to vector<16x32xf32>
    %143 = arith.addf %141, %142 : vector<16x32xf32>
    %144 = arith.truncf %143 : vector<16x32xf32> to vector<16x32xbf16>
    %c0_61 = arith.constant 0 : index
    %c0_62 = arith.constant 0 : index
    %145 = vector.load %arg12[%c0_61, %c0_62] : memref<32x32xbf16, #tpu.memory_space<vmem>>, vector<32x32xbf16>
    %cst_63 = arith.constant dense<0.000000e+00> : vector<16x32xf32>
    %146 = tpu.matmul %144, %145, %cst_63 {dimension_numbers = #tpu.dot_dimension_numbers<[1], [0], [0], [1], [0, 0, 1, 1], [], []>} : vector<16x32xbf16>, vector<32x32xbf16>, vector<16x32xf32> -> vector<16x32xf32>
    %147 = vector.broadcast %4 : vector<1x32xf32> to vector<16x32xf32>
    %148 = arith.addf %146, %147 : vector<16x32xf32>
    %149 = arith.addf %106, %148 : vector<16x32xf32>
    %cst_64 = arith.constant dense<0.000000e+00> : vector<16xf32>
    %150 = vector.multi_reduction <add>, %149, %cst_64 [1] : vector<16x32xf32> to vector<16xf32>
    %151 = vector.shape_cast %150 : vector<16xf32> to vector<16x1xf32>
    %cst_65 = arith.constant 3.200000e+01 : f32
    %152 = vector.broadcast %cst_65 : f32 to vector<16x1xf32>
    %153 = arith.divf %151, %152 : vector<16x1xf32>
    %154 = arith.mulf %149, %149 : vector<16x32xf32>
    %cst_66 = arith.constant dense<0.000000e+00> : vector<16xf32>
    %155 = vector.multi_reduction <add>, %154, %cst_66 [1] : vector<16x32xf32> to vector<16xf32>
    %156 = vector.shape_cast %155 : vector<16xf32> to vector<16x1xf32>
    %cst_67 = arith.constant 3.200000e+01 : f32
    %157 = vector.broadcast %cst_67 : f32 to vector<16x1xf32>
    %158 = arith.divf %156, %157 : vector<16x1xf32>
    %159 = arith.mulf %153, %153 : vector<16x1xf32>
    %160 = arith.subf %158, %159 : vector<16x1xf32>
    %161 = vector.broadcast %153 : vector<16x1xf32> to vector<16x32xf32>
    %162 = arith.subf %149, %161 : vector<16x32xf32>
    %cst_68 = arith.constant 9.99999974E-6 : f32
    %163 = vector.broadcast %cst_68 : f32 to vector<16x1xf32>
    %164 = arith.addf %160, %163 : vector<16x1xf32>
    %165 = math.rsqrt %164 : vector<16x1xf32>
    %166 = vector.broadcast %165 : vector<16x1xf32> to vector<16x32xf32>
    %167 = arith.mulf %162, %166 : vector<16x32xf32>
    %168 = vector.broadcast %7 : vector<1x32xf32> to vector<16x32xf32>
    %169 = arith.mulf %167, %168 : vector<16x32xf32>
    %170 = vector.broadcast %8 : vector<1x32xf32> to vector<16x32xf32>
    %171 = arith.addf %169, %170 : vector<16x32xf32>
    %172 = arith.truncf %171 : vector<16x32xf32> to vector<16x32xbf16>
    %c0_69 = arith.constant 0 : index
    %c0_70 = arith.constant 0 : index
    %173 = vector.load %arg20[%c0_69, %c0_70] : memref<32x64xbf16, #tpu.memory_space<vmem>>, vector<32x64xbf16>
    %cst_71 = arith.constant dense<0.000000e+00> : vector<16x64xf32>
    %174 = tpu.matmul %172, %173, %cst_71 {dimension_numbers = #tpu.dot_dimension_numbers<[1], [0], [0], [1], [0, 0, 1, 1], [], []>} : vector<16x32xbf16>, vector<32x64xbf16>, vector<16x64xf32> -> vector<16x64xf32>
    %175 = vector.broadcast %11 : vector<1x64xf32> to vector<16x64xf32>
    %176 = arith.addf %174, %175 : vector<16x64xf32>
    %cst_72 = arith.constant 0.000000e+00 : f32
    %177 = vector.broadcast %cst_72 : f32 to vector<16x64xf32>
    %178 = arith.maximumf %176, %177 : vector<16x64xf32>
    %179 = arith.truncf %178 : vector<16x64xf32> to vector<16x64xbf16>
    %c0_73 = arith.constant 0 : index
    %c0_74 = arith.constant 0 : index
    %180 = vector.load %arg22[%c0_73, %c0_74] : memref<64x32xbf16, #tpu.memory_space<vmem>>, vector<64x32xbf16>
    %cst_75 = arith.constant dense<0.000000e+00> : vector<16x32xf32>
    %181 = tpu.matmul %179, %180, %cst_75 {dimension_numbers = #tpu.dot_dimension_numbers<[1], [0], [0], [1], [0, 0, 1, 1], [], []>} : vector<16x64xbf16>, vector<64x32xbf16>, vector<16x32xf32> -> vector<16x32xf32>
    %182 = vector.broadcast %12 : vector<1x32xf32> to vector<16x32xf32>
    %183 = arith.addf %181, %182 : vector<16x32xf32>
    %184 = arith.addf %171, %183 : vector<16x32xf32>
    %cst_76 = arith.constant dense<0.000000e+00> : vector<16xf32>
    %185 = vector.multi_reduction <add>, %184, %cst_76 [1] : vector<16x32xf32> to vector<16xf32>
    %186 = vector.shape_cast %185 : vector<16xf32> to vector<16x1xf32>
    %cst_77 = arith.constant 3.200000e+01 : f32
    %187 = vector.broadcast %cst_77 : f32 to vector<16x1xf32>
    %188 = arith.divf %186, %187 : vector<16x1xf32>
    %189 = arith.mulf %184, %184 : vector<16x32xf32>
    %cst_78 = arith.constant dense<0.000000e+00> : vector<16xf32>
    %190 = vector.multi_reduction <add>, %189, %cst_78 [1] : vector<16x32xf32> to vector<16xf32>
    %191 = vector.shape_cast %190 : vector<16xf32> to vector<16x1xf32>
    %cst_79 = arith.constant 3.200000e+01 : f32
    %192 = vector.broadcast %cst_79 : f32 to vector<16x1xf32>
    %193 = arith.divf %191, %192 : vector<16x1xf32>
    %194 = arith.mulf %188, %188 : vector<16x1xf32>
    %195 = arith.subf %193, %194 : vector<16x1xf32>
    %196 = vector.broadcast %188 : vector<16x1xf32> to vector<16x32xf32>
    %197 = arith.subf %184, %196 : vector<16x32xf32>
    %cst_80 = arith.constant 9.99999974E-6 : f32
    %198 = vector.broadcast %cst_80 : f32 to vector<16x1xf32>
    %199 = arith.addf %195, %198 : vector<16x1xf32>
    %200 = math.rsqrt %199 : vector<16x1xf32>
    %201 = vector.broadcast %200 : vector<16x1xf32> to vector<16x32xf32>
    %202 = arith.mulf %197, %201 : vector<16x32xf32>
    %203 = vector.broadcast %9 : vector<1x32xf32> to vector<16x32xf32>
    %204 = arith.mulf %202, %203 : vector<16x32xf32>
    %205 = vector.broadcast %10 : vector<1x32xf32> to vector<16x32xf32>
    %206 = arith.addf %204, %205 : vector<16x32xf32>
    %c1_i32 = arith.constant 1 : i32
    %207 = arith.truncf %206 : vector<16x32xf32> to vector<16x32xbf16>
    %c0_81 = arith.constant 0 : index
    %c0_82 = arith.constant 0 : index
    %208 = vector.load %arg4[%c0_81, %c0_82] : memref<32x96xbf16, #tpu.memory_space<vmem>>, vector<32x96xbf16>
    %cst_83 = arith.constant dense<0.000000e+00> : vector<16x96xf32>
    %209 = tpu.matmul %207, %208, %cst_83 {dimension_numbers = #tpu.dot_dimension_numbers<[1], [0], [0], [1], [0, 0, 1, 1], [], []>} : vector<16x32xbf16>, vector<32x96xbf16>, vector<16x96xf32> -> vector<16x96xf32>
    %210 = vector.broadcast %0 : vector<1x96xf32> to vector<16x96xf32>
    %211 = arith.addf %209, %210 : vector<16x96xf32>
    %212 = vector.extract_strided_slice %211 {offsets = [0, 0], sizes = [16, 32], strides = [1, 1]} : vector<16x96xf32> to vector<16x32xf32>
    %213 = vector.extract_strided_slice %211 {offsets = [0, 32], sizes = [16, 32], strides = [1, 1]} : vector<16x96xf32> to vector<16x32xf32>
    %214 = vector.extract_strided_slice %211 {offsets = [0, 64], sizes = [16, 32], strides = [1, 1]} : vector<16x96xf32> to vector<16x32xf32>
    %215 = vector.extract_strided_slice %213 {offsets = [0, 0], sizes = [8, 32], strides = [1, 1]} : vector<16x32xf32> to vector<8x32xf32>
    %216 = vector.extract_strided_slice %213 {offsets = [0, 0], sizes = [8, 32], strides = [1, 1]} : vector<16x32xf32> to vector<8x32xf32>
    %217 = vector.extract_strided_slice %213 {offsets = [8, 0], sizes = [8, 32], strides = [1, 1]} : vector<16x32xf32> to vector<8x32xf32>
    %218 = vector.extract_strided_slice %213 {offsets = [8, 0], sizes = [8, 32], strides = [1, 1]} : vector<16x32xf32> to vector<8x32xf32>
    %219 = tpu.concatenate %215, %216, %217, %218 in 0 : vector<8x32xf32>, vector<8x32xf32>, vector<8x32xf32>, vector<8x32xf32> -> vector<32x32xf32>
    %220 = vector.extract_strided_slice %214 {offsets = [0, 0], sizes = [8, 32], strides = [1, 1]} : vector<16x32xf32> to vector<8x32xf32>
    %221 = vector.extract_strided_slice %214 {offsets = [0, 0], sizes = [8, 32], strides = [1, 1]} : vector<16x32xf32> to vector<8x32xf32>
    %222 = vector.extract_strided_slice %214 {offsets = [8, 0], sizes = [8, 32], strides = [1, 1]} : vector<16x32xf32> to vector<8x32xf32>
    %223 = vector.extract_strided_slice %214 {offsets = [8, 0], sizes = [8, 32], strides = [1, 1]} : vector<16x32xf32> to vector<8x32xf32>
    %224 = tpu.concatenate %220, %221, %222, %223 in 0 : vector<8x32xf32>, vector<8x32xf32>, vector<8x32xf32>, vector<8x32xf32> -> vector<32x32xf32>
    %225 = tpu.concatenate %212, %212 in 0 : vector<16x32xf32>, vector<16x32xf32> -> vector<32x32xf32>
    %226 = arith.mulf %225, %219 : vector<32x32xf32>
    %227 = arith.truncf %226 : vector<32x32xf32> to vector<32x32xbf16>
    %cst_84 = arith.constant dense<0.000000e+00> : vector<32x8xf32>
    %228 = tpu.matmul %227, %14, %cst_84 {dimension_numbers = #tpu.dot_dimension_numbers<[1], [0], [0], [1], [0, 0, 1, 1], [], []>} : vector<32x32xbf16>, vector<32x8xbf16>, vector<32x8xf32> -> vector<32x8xf32>
    %229 = vector.extract_strided_slice %228 {offsets = [0, 0], sizes = [16, 8], strides = [1, 1]} : vector<32x8xf32> to vector<16x8xf32>
    %230 = vector.extract_strided_slice %228 {offsets = [16, 0], sizes = [16, 8], strides = [1, 1]} : vector<32x8xf32> to vector<16x8xf32>
    %231 = arith.maximumf %229, %230 : vector<16x8xf32>
    %232 = tpu.concatenate %231, %231 in 0 : vector<16x8xf32>, vector<16x8xf32> -> vector<32x8xf32>
    %233 = arith.subf %228, %232 : vector<32x8xf32>
    %234 = math.exp %233 : vector<32x8xf32>
    %235 = vector.extract_strided_slice %234 {offsets = [0, 0], sizes = [16, 8], strides = [1, 1]} : vector<32x8xf32> to vector<16x8xf32>
    %236 = vector.extract_strided_slice %234 {offsets = [16, 0], sizes = [16, 8], strides = [1, 1]} : vector<32x8xf32> to vector<16x8xf32>
    %237 = arith.addf %235, %236 : vector<16x8xf32>
    %238 = tpu.reciprocal %237 {approx = true} : vector<16x8xf32> -> vector<16x8xf32>
    %239 = tpu.concatenate %238, %238 in 0 : vector<16x8xf32>, vector<16x8xf32> -> vector<32x8xf32>
    %240 = arith.mulf %234, %239 : vector<32x8xf32>
    %241 = arith.truncf %240 : vector<32x8xf32> to vector<32x8xbf16>
    %cst_85 = arith.constant dense<0.000000e+00> : vector<32x32xf32>
    %242 = tpu.matmul %241, %15, %cst_85 {dimension_numbers = #tpu.dot_dimension_numbers<[1], [0], [0], [1], [0, 0, 1, 1], [], []>} : vector<32x8xbf16>, vector<8x32xbf16>, vector<32x32xf32> -> vector<32x32xf32>
    %243 = arith.mulf %242, %224 : vector<32x32xf32>
    %244 = vector.extract_strided_slice %243 {offsets = [0, 0], sizes = [16, 32], strides = [1, 1]} : vector<32x32xf32> to vector<16x32xf32>
    %245 = vector.extract_strided_slice %243 {offsets = [16, 0], sizes = [16, 32], strides = [1, 1]} : vector<32x32xf32> to vector<16x32xf32>
    %246 = arith.addf %244, %245 : vector<16x32xf32>
    %247 = arith.truncf %246 : vector<16x32xf32> to vector<16x32xbf16>
    %c0_86 = arith.constant 0 : index
    %c0_87 = arith.constant 0 : index
    %248 = vector.load %arg6[%c0_86, %c0_87] : memref<32x32xbf16, #tpu.memory_space<vmem>>, vector<32x32xbf16>
    %cst_88 = arith.constant dense<0.000000e+00> : vector<16x32xf32>
    %249 = tpu.matmul %247, %248, %cst_88 {dimension_numbers = #tpu.dot_dimension_numbers<[1], [0], [0], [1], [0, 0, 1, 1], [], []>} : vector<16x32xbf16>, vector<32x32xbf16>, vector<16x32xf32> -> vector<16x32xf32>
    %250 = vector.broadcast %1 : vector<1x32xf32> to vector<16x32xf32>
    %251 = arith.addf %249, %250 : vector<16x32xf32>
    %252 = arith.addf %206, %251 : vector<16x32xf32>
    %cst_89 = arith.constant dense<0.000000e+00> : vector<16xf32>
    %253 = vector.multi_reduction <add>, %252, %cst_89 [1] : vector<16x32xf32> to vector<16xf32>
    %254 = vector.shape_cast %253 : vector<16xf32> to vector<16x1xf32>
    %cst_90 = arith.constant 3.200000e+01 : f32
    %255 = vector.broadcast %cst_90 : f32 to vector<16x1xf32>
    %256 = arith.divf %254, %255 : vector<16x1xf32>
    %257 = arith.mulf %252, %252 : vector<16x32xf32>
    %cst_91 = arith.constant dense<0.000000e+00> : vector<16xf32>
    %258 = vector.multi_reduction <add>, %257, %cst_91 [1] : vector<16x32xf32> to vector<16xf32>
    %259 = vector.shape_cast %258 : vector<16xf32> to vector<16x1xf32>
    %cst_92 = arith.constant 3.200000e+01 : f32
    %260 = vector.broadcast %cst_92 : f32 to vector<16x1xf32>
    %261 = arith.divf %259, %260 : vector<16x1xf32>
    %262 = arith.mulf %256, %256 : vector<16x1xf32>
    %263 = arith.subf %261, %262 : vector<16x1xf32>
    %264 = vector.broadcast %256 : vector<16x1xf32> to vector<16x32xf32>
    %265 = arith.subf %252, %264 : vector<16x32xf32>
    %cst_93 = arith.constant 9.99999974E-6 : f32
    %266 = vector.broadcast %cst_93 : f32 to vector<16x1xf32>
    %267 = arith.addf %263, %266 : vector<16x1xf32>
    %268 = math.rsqrt %267 : vector<16x1xf32>
    %269 = vector.broadcast %268 : vector<16x1xf32> to vector<16x32xf32>
    %270 = arith.mulf %265, %269 : vector<16x32xf32>
    %271 = vector.broadcast %5 : vector<1x32xf32> to vector<16x32xf32>
    %272 = arith.mulf %270, %271 : vector<16x32xf32>
    %273 = vector.broadcast %6 : vector<1x32xf32> to vector<16x32xf32>
    %274 = arith.addf %272, %273 : vector<16x32xf32>
    %275 = arith.truncf %274 : vector<16x32xf32> to vector<16x32xbf16>
    %c0_94 = arith.constant 0 : index
    %c0_95 = arith.constant 0 : index
    %276 = vector.load %arg8[%c0_94, %c0_95] : memref<32x32xbf16, #tpu.memory_space<vmem>>, vector<32x32xbf16>
    %cst_96 = arith.constant dense<0.000000e+00> : vector<16x32xf32>
    %277 = tpu.matmul %275, %276, %cst_96 {dimension_numbers = #tpu.dot_dimension_numbers<[1], [0], [0], [1], [0, 0, 1, 1], [], []>} : vector<16x32xbf16>, vector<32x32xbf16>, vector<16x32xf32> -> vector<16x32xf32>
    %278 = vector.broadcast %2 : vector<1x32xf32> to vector<16x32xf32>
    %279 = arith.addf %277, %278 : vector<16x32xf32>
    %280 = vector.extract_strided_slice %37 {offsets = [0, 0], sizes = [8, 32], strides = [1, 1]} : vector<16x32xf32> to vector<8x32xf32>
    %281 = vector.extract_strided_slice %37 {offsets = [0, 0], sizes = [8, 32], strides = [1, 1]} : vector<16x32xf32> to vector<8x32xf32>
    %282 = vector.extract_strided_slice %37 {offsets = [8, 0], sizes = [8, 32], strides = [1, 1]} : vector<16x32xf32> to vector<8x32xf32>
    %283 = vector.extract_strided_slice %37 {offsets = [8, 0], sizes = [8, 32], strides = [1, 1]} : vector<16x32xf32> to vector<8x32xf32>
    %284 = tpu.concatenate %280, %281, %282, %283 in 0 : vector<8x32xf32>, vector<8x32xf32>, vector<8x32xf32>, vector<8x32xf32> -> vector<32x32xf32>
    %285 = vector.extract_strided_slice %38 {offsets = [0, 0], sizes = [8, 32], strides = [1, 1]} : vector<16x32xf32> to vector<8x32xf32>
    %286 = vector.extract_strided_slice %38 {offsets = [0, 0], sizes = [8, 32], strides = [1, 1]} : vector<16x32xf32> to vector<8x32xf32>
    %287 = vector.extract_strided_slice %38 {offsets = [8, 0], sizes = [8, 32], strides = [1, 1]} : vector<16x32xf32> to vector<8x32xf32>
    %288 = vector.extract_strided_slice %38 {offsets = [8, 0], sizes = [8, 32], strides = [1, 1]} : vector<16x32xf32> to vector<8x32xf32>
    %289 = tpu.concatenate %285, %286, %287, %288 in 0 : vector<8x32xf32>, vector<8x32xf32>, vector<8x32xf32>, vector<8x32xf32> -> vector<32x32xf32>
    %290 = tpu.concatenate %279, %279 in 0 : vector<16x32xf32>, vector<16x32xf32> -> vector<32x32xf32>
    %291 = arith.mulf %290, %284 : vector<32x32xf32>
    %292 = arith.truncf %291 : vector<32x32xf32> to vector<32x32xbf16>
    %cst_97 = arith.constant dense<0.000000e+00> : vector<32x8xf32>
    %293 = tpu.matmul %292, %14, %cst_97 {dimension_numbers = #tpu.dot_dimension_numbers<[1], [0], [0], [1], [0, 0, 1, 1], [], []>} : vector<32x32xbf16>, vector<32x8xbf16>, vector<32x8xf32> -> vector<32x8xf32>
    %294 = vector.extract_strided_slice %293 {offsets = [0, 0], sizes = [16, 8], strides = [1, 1]} : vector<32x8xf32> to vector<16x8xf32>
    %295 = vector.extract_strided_slice %293 {offsets = [16, 0], sizes = [16, 8], strides = [1, 1]} : vector<32x8xf32> to vector<16x8xf32>
    %296 = arith.maximumf %294, %295 : vector<16x8xf32>
    %297 = tpu.concatenate %296, %296 in 0 : vector<16x8xf32>, vector<16x8xf32> -> vector<32x8xf32>
    %298 = arith.subf %293, %297 : vector<32x8xf32>
    %299 = math.exp %298 : vector<32x8xf32>
    %300 = vector.extract_strided_slice %299 {offsets = [0, 0], sizes = [16, 8], strides = [1, 1]} : vector<32x8xf32> to vector<16x8xf32>
    %301 = vector.extract_strided_slice %299 {offsets = [16, 0], sizes = [16, 8], strides = [1, 1]} : vector<32x8xf32> to vector<16x8xf32>
    %302 = arith.addf %300, %301 : vector<16x8xf32>
    %303 = tpu.reciprocal %302 {approx = true} : vector<16x8xf32> -> vector<16x8xf32>
    %304 = tpu.concatenate %303, %303 in 0 : vector<16x8xf32>, vector<16x8xf32> -> vector<32x8xf32>
    %305 = arith.mulf %299, %304 : vector<32x8xf32>
    %306 = arith.truncf %305 : vector<32x8xf32> to vector<32x8xbf16>
    %cst_98 = arith.constant dense<0.000000e+00> : vector<32x32xf32>
    %307 = tpu.matmul %306, %15, %cst_98 {dimension_numbers = #tpu.dot_dimension_numbers<[1], [0], [0], [1], [0, 0, 1, 1], [], []>} : vector<32x8xbf16>, vector<8x32xbf16>, vector<32x32xf32> -> vector<32x32xf32>
    %308 = arith.mulf %307, %289 : vector<32x32xf32>
    %309 = vector.extract_strided_slice %308 {offsets = [0, 0], sizes = [16, 32], strides = [1, 1]} : vector<32x32xf32> to vector<16x32xf32>
    %310 = vector.extract_strided_slice %308 {offsets = [16, 0], sizes = [16, 32], strides = [1, 1]} : vector<32x32xf32> to vector<16x32xf32>
    %311 = arith.addf %309, %310 : vector<16x32xf32>
    %312 = arith.truncf %311 : vector<16x32xf32> to vector<16x32xbf16>
    %c0_99 = arith.constant 0 : index
    %c0_100 = arith.constant 0 : index
    %313 = vector.load %arg12[%c0_99, %c0_100] : memref<32x32xbf16, #tpu.memory_space<vmem>>, vector<32x32xbf16>
    %cst_101 = arith.constant dense<0.000000e+00> : vector<16x32xf32>
    %314 = tpu.matmul %312, %313, %cst_101 {dimension_numbers = #tpu.dot_dimension_numbers<[1], [0], [0], [1], [0, 0, 1, 1], [], []>} : vector<16x32xbf16>, vector<32x32xbf16>, vector<16x32xf32> -> vector<16x32xf32>
    %315 = vector.broadcast %4 : vector<1x32xf32> to vector<16x32xf32>
    %316 = arith.addf %314, %315 : vector<16x32xf32>
    %317 = arith.addf %274, %316 : vector<16x32xf32>
    %cst_102 = arith.constant dense<0.000000e+00> : vector<16xf32>
    %318 = vector.multi_reduction <add>, %317, %cst_102 [1] : vector<16x32xf32> to vector<16xf32>
    %319 = vector.shape_cast %318 : vector<16xf32> to vector<16x1xf32>
    %cst_103 = arith.constant 3.200000e+01 : f32
    %320 = vector.broadcast %cst_103 : f32 to vector<16x1xf32>
    %321 = arith.divf %319, %320 : vector<16x1xf32>
    %322 = arith.mulf %317, %317 : vector<16x32xf32>
    %cst_104 = arith.constant dense<0.000000e+00> : vector<16xf32>
    %323 = vector.multi_reduction <add>, %322, %cst_104 [1] : vector<16x32xf32> to vector<16xf32>
    %324 = vector.shape_cast %323 : vector<16xf32> to vector<16x1xf32>
    %cst_105 = arith.constant 3.200000e+01 : f32
    %325 = vector.broadcast %cst_105 : f32 to vector<16x1xf32>
    %326 = arith.divf %324, %325 : vector<16x1xf32>
    %327 = arith.mulf %321, %321 : vector<16x1xf32>
    %328 = arith.subf %326, %327 : vector<16x1xf32>
    %329 = vector.broadcast %321 : vector<16x1xf32> to vector<16x32xf32>
    %330 = arith.subf %317, %329 : vector<16x32xf32>
    %cst_106 = arith.constant 9.99999974E-6 : f32
    %331 = vector.broadcast %cst_106 : f32 to vector<16x1xf32>
    %332 = arith.addf %328, %331 : vector<16x1xf32>
    %333 = math.rsqrt %332 : vector<16x1xf32>
    %334 = vector.broadcast %333 : vector<16x1xf32> to vector<16x32xf32>
    %335 = arith.mulf %330, %334 : vector<16x32xf32>
    %336 = vector.broadcast %7 : vector<1x32xf32> to vector<16x32xf32>
    %337 = arith.mulf %335, %336 : vector<16x32xf32>
    %338 = vector.broadcast %8 : vector<1x32xf32> to vector<16x32xf32>
    %339 = arith.addf %337, %338 : vector<16x32xf32>
    %340 = arith.truncf %339 : vector<16x32xf32> to vector<16x32xbf16>
    %c0_107 = arith.constant 0 : index
    %c0_108 = arith.constant 0 : index
    %341 = vector.load %arg20[%c0_107, %c0_108] : memref<32x64xbf16, #tpu.memory_space<vmem>>, vector<32x64xbf16>
    %cst_109 = arith.constant dense<0.000000e+00> : vector<16x64xf32>
    %342 = tpu.matmul %340, %341, %cst_109 {dimension_numbers = #tpu.dot_dimension_numbers<[1], [0], [0], [1], [0, 0, 1, 1], [], []>} : vector<16x32xbf16>, vector<32x64xbf16>, vector<16x64xf32> -> vector<16x64xf32>
    %343 = vector.broadcast %11 : vector<1x64xf32> to vector<16x64xf32>
    %344 = arith.addf %342, %343 : vector<16x64xf32>
    %cst_110 = arith.constant 0.000000e+00 : f32
    %345 = vector.broadcast %cst_110 : f32 to vector<16x64xf32>
    %346 = arith.maximumf %344, %345 : vector<16x64xf32>
    %347 = arith.truncf %346 : vector<16x64xf32> to vector<16x64xbf16>
    %c0_111 = arith.constant 0 : index
    %c0_112 = arith.constant 0 : index
    %348 = vector.load %arg22[%c0_111, %c0_112] : memref<64x32xbf16, #tpu.memory_space<vmem>>, vector<64x32xbf16>
    %cst_113 = arith.constant dense<0.000000e+00> : vector<16x32xf32>
    %349 = tpu.matmul %347, %348, %cst_113 {dimension_numbers = #tpu.dot_dimension_numbers<[1], [0], [0], [1], [0, 0, 1, 1], [], []>} : vector<16x64xbf16>, vector<64x32xbf16>, vector<16x32xf32> -> vector<16x32xf32>
    %350 = vector.broadcast %12 : vector<1x32xf32> to vector<16x32xf32>
    %351 = arith.addf %349, %350 : vector<16x32xf32>
    %352 = arith.addf %339, %351 : vector<16x32xf32>
    %cst_114 = arith.constant dense<0.000000e+00> : vector<16xf32>
    %353 = vector.multi_reduction <add>, %352, %cst_114 [1] : vector<16x32xf32> to vector<16xf32>
    %354 = vector.shape_cast %353 : vector<16xf32> to vector<16x1xf32>
    %cst_115 = arith.constant 3.200000e+01 : f32
    %355 = vector.broadcast %cst_115 : f32 to vector<16x1xf32>
    %356 = arith.divf %354, %355 : vector<16x1xf32>
    %357 = arith.mulf %352, %352 : vector<16x32xf32>
    %cst_116 = arith.constant dense<0.000000e+00> : vector<16xf32>
    %358 = vector.multi_reduction <add>, %357, %cst_116 [1] : vector<16x32xf32> to vector<16xf32>
    %359 = vector.shape_cast %358 : vector<16xf32> to vector<16x1xf32>
    %cst_117 = arith.constant 3.200000e+01 : f32
    %360 = vector.broadcast %cst_117 : f32 to vector<16x1xf32>
    %361 = arith.divf %359, %360 : vector<16x1xf32>
    %362 = arith.mulf %356, %356 : vector<16x1xf32>
    %363 = arith.subf %361, %362 : vector<16x1xf32>
    %364 = vector.broadcast %356 : vector<16x1xf32> to vector<16x32xf32>
    %365 = arith.subf %352, %364 : vector<16x32xf32>
    %cst_118 = arith.constant 9.99999974E-6 : f32
    %366 = vector.broadcast %cst_118 : f32 to vector<16x1xf32>
    %367 = arith.addf %363, %366 : vector<16x1xf32>
    %368 = math.rsqrt %367 : vector<16x1xf32>
    %369 = vector.broadcast %368 : vector<16x1xf32> to vector<16x32xf32>
    %370 = arith.mulf %365, %369 : vector<16x32xf32>
    %371 = vector.broadcast %9 : vector<1x32xf32> to vector<16x32xf32>
    %372 = arith.mulf %370, %371 : vector<16x32xf32>
    %373 = vector.broadcast %10 : vector<1x32xf32> to vector<16x32xf32>
    %374 = arith.addf %372, %373 : vector<16x32xf32>
    %c2_i32 = arith.constant 2 : i32
    %375 = arith.truncf %374 : vector<16x32xf32> to vector<16x32xbf16>
    %c0_119 = arith.constant 0 : index
    %c0_120 = arith.constant 0 : index
    %376 = vector.load %arg4[%c0_119, %c0_120] : memref<32x96xbf16, #tpu.memory_space<vmem>>, vector<32x96xbf16>
    %cst_121 = arith.constant dense<0.000000e+00> : vector<16x96xf32>
    %377 = tpu.matmul %375, %376, %cst_121 {dimension_numbers = #tpu.dot_dimension_numbers<[1], [0], [0], [1], [0, 0, 1, 1], [], []>} : vector<16x32xbf16>, vector<32x96xbf16>, vector<16x96xf32> -> vector<16x96xf32>
    %378 = vector.broadcast %0 : vector<1x96xf32> to vector<16x96xf32>
    %379 = arith.addf %377, %378 : vector<16x96xf32>
    %380 = vector.extract_strided_slice %379 {offsets = [0, 0], sizes = [16, 32], strides = [1, 1]} : vector<16x96xf32> to vector<16x32xf32>
    %381 = vector.extract_strided_slice %379 {offsets = [0, 32], sizes = [16, 32], strides = [1, 1]} : vector<16x96xf32> to vector<16x32xf32>
    %382 = vector.extract_strided_slice %379 {offsets = [0, 64], sizes = [16, 32], strides = [1, 1]} : vector<16x96xf32> to vector<16x32xf32>
    %383 = vector.extract_strided_slice %381 {offsets = [0, 0], sizes = [8, 32], strides = [1, 1]} : vector<16x32xf32> to vector<8x32xf32>
    %384 = vector.extract_strided_slice %381 {offsets = [0, 0], sizes = [8, 32], strides = [1, 1]} : vector<16x32xf32> to vector<8x32xf32>
    %385 = vector.extract_strided_slice %381 {offsets = [8, 0], sizes = [8, 32], strides = [1, 1]} : vector<16x32xf32> to vector<8x32xf32>
    %386 = vector.extract_strided_slice %381 {offsets = [8, 0], sizes = [8, 32], strides = [1, 1]} : vector<16x32xf32> to vector<8x32xf32>
    %387 = tpu.concatenate %383, %384, %385, %386 in 0 : vector<8x32xf32>, vector<8x32xf32>, vector<8x32xf32>, vector<8x32xf32> -> vector<32x32xf32>
    %388 = vector.extract_strided_slice %382 {offsets = [0, 0], sizes = [8, 32], strides = [1, 1]} : vector<16x32xf32> to vector<8x32xf32>
    %389 = vector.extract_strided_slice %382 {offsets = [0, 0], sizes = [8, 32], strides = [1, 1]} : vector<16x32xf32> to vector<8x32xf32>
    %390 = vector.extract_strided_slice %382 {offsets = [8, 0], sizes = [8, 32], strides = [1, 1]} : vector<16x32xf32> to vector<8x32xf32>
    %391 = vector.extract_strided_slice %382 {offsets = [8, 0], sizes = [8, 32], strides = [1, 1]} : vector<16x32xf32> to vector<8x32xf32>
    %392 = tpu.concatenate %388, %389, %390, %391 in 0 : vector<8x32xf32>, vector<8x32xf32>, vector<8x32xf32>, vector<8x32xf32> -> vector<32x32xf32>
    %393 = tpu.concatenate %380, %380 in 0 : vector<16x32xf32>, vector<16x32xf32> -> vector<32x32xf32>
    %394 = arith.mulf %393, %387 : vector<32x32xf32>
    %395 = arith.truncf %394 : vector<32x32xf32> to vector<32x32xbf16>
    %cst_122 = arith.constant dense<0.000000e+00> : vector<32x8xf32>
    %396 = tpu.matmul %395, %14, %cst_122 {dimension_numbers = #tpu.dot_dimension_numbers<[1], [0], [0], [1], [0, 0, 1, 1], [], []>} : vector<32x32xbf16>, vector<32x8xbf16>, vector<32x8xf32> -> vector<32x8xf32>
    %397 = vector.extract_strided_slice %396 {offsets = [0, 0], sizes = [16, 8], strides = [1, 1]} : vector<32x8xf32> to vector<16x8xf32>
    %398 = vector.extract_strided_slice %396 {offsets = [16, 0], sizes = [16, 8], strides = [1, 1]} : vector<32x8xf32> to vector<16x8xf32>
    %399 = arith.maximumf %397, %398 : vector<16x8xf32>
    %400 = tpu.concatenate %399, %399 in 0 : vector<16x8xf32>, vector<16x8xf32> -> vector<32x8xf32>
    %401 = arith.subf %396, %400 : vector<32x8xf32>
    %402 = math.exp %401 : vector<32x8xf32>
    %403 = vector.extract_strided_slice %402 {offsets = [0, 0], sizes = [16, 8], strides = [1, 1]} : vector<32x8xf32> to vector<16x8xf32>
    %404 = vector.extract_strided_slice %402 {offsets = [16, 0], sizes = [16, 8], strides = [1, 1]} : vector<32x8xf32> to vector<16x8xf32>
    %405 = arith.addf %403, %404 : vector<16x8xf32>
    %406 = tpu.reciprocal %405 {approx = true} : vector<16x8xf32> -> vector<16x8xf32>
    %407 = tpu.concatenate %406, %406 in 0 : vector<16x8xf32>, vector<16x8xf32> -> vector<32x8xf32>
    %408 = arith.mulf %402, %407 : vector<32x8xf32>
    %409 = arith.truncf %408 : vector<32x8xf32> to vector<32x8xbf16>
    %cst_123 = arith.constant dense<0.000000e+00> : vector<32x32xf32>
    %410 = tpu.matmul %409, %15, %cst_123 {dimension_numbers = #tpu.dot_dimension_numbers<[1], [0], [0], [1], [0, 0, 1, 1], [], []>} : vector<32x8xbf16>, vector<8x32xbf16>, vector<32x32xf32> -> vector<32x32xf32>
    %411 = arith.mulf %410, %392 : vector<32x32xf32>
    %412 = vector.extract_strided_slice %411 {offsets = [0, 0], sizes = [16, 32], strides = [1, 1]} : vector<32x32xf32> to vector<16x32xf32>
    %413 = vector.extract_strided_slice %411 {offsets = [16, 0], sizes = [16, 32], strides = [1, 1]} : vector<32x32xf32> to vector<16x32xf32>
    %414 = arith.addf %412, %413 : vector<16x32xf32>
    %415 = arith.truncf %414 : vector<16x32xf32> to vector<16x32xbf16>
    %c0_124 = arith.constant 0 : index
    %c0_125 = arith.constant 0 : index
    %416 = vector.load %arg6[%c0_124, %c0_125] : memref<32x32xbf16, #tpu.memory_space<vmem>>, vector<32x32xbf16>
    %cst_126 = arith.constant dense<0.000000e+00> : vector<16x32xf32>
    %417 = tpu.matmul %415, %416, %cst_126 {dimension_numbers = #tpu.dot_dimension_numbers<[1], [0], [0], [1], [0, 0, 1, 1], [], []>} : vector<16x32xbf16>, vector<32x32xbf16>, vector<16x32xf32> -> vector<16x32xf32>
    %418 = vector.broadcast %1 : vector<1x32xf32> to vector<16x32xf32>
    %419 = arith.addf %417, %418 : vector<16x32xf32>
    %420 = arith.addf %374, %419 : vector<16x32xf32>
    %cst_127 = arith.constant dense<0.000000e+00> : vector<16xf32>
    %421 = vector.multi_reduction <add>, %420, %cst_127 [1] : vector<16x32xf32> to vector<16xf32>
    %422 = vector.shape_cast %421 : vector<16xf32> to vector<16x1xf32>
    %cst_128 = arith.constant 3.200000e+01 : f32
    %423 = vector.broadcast %cst_128 : f32 to vector<16x1xf32>
    %424 = arith.divf %422, %423 : vector<16x1xf32>
    %425 = arith.mulf %420, %420 : vector<16x32xf32>
    %cst_129 = arith.constant dense<0.000000e+00> : vector<16xf32>
    %426 = vector.multi_reduction <add>, %425, %cst_129 [1] : vector<16x32xf32> to vector<16xf32>
    %427 = vector.shape_cast %426 : vector<16xf32> to vector<16x1xf32>
    %cst_130 = arith.constant 3.200000e+01 : f32
    %428 = vector.broadcast %cst_130 : f32 to vector<16x1xf32>
    %429 = arith.divf %427, %428 : vector<16x1xf32>
    %430 = arith.mulf %424, %424 : vector<16x1xf32>
    %431 = arith.subf %429, %430 : vector<16x1xf32>
    %432 = vector.broadcast %424 : vector<16x1xf32> to vector<16x32xf32>
    %433 = arith.subf %420, %432 : vector<16x32xf32>
    %cst_131 = arith.constant 9.99999974E-6 : f32
    %434 = vector.broadcast %cst_131 : f32 to vector<16x1xf32>
    %435 = arith.addf %431, %434 : vector<16x1xf32>
    %436 = math.rsqrt %435 : vector<16x1xf32>
    %437 = vector.broadcast %436 : vector<16x1xf32> to vector<16x32xf32>
    %438 = arith.mulf %433, %437 : vector<16x32xf32>
    %439 = vector.broadcast %5 : vector<1x32xf32> to vector<16x32xf32>
    %440 = arith.mulf %438, %439 : vector<16x32xf32>
    %441 = vector.broadcast %6 : vector<1x32xf32> to vector<16x32xf32>
    %442 = arith.addf %440, %441 : vector<16x32xf32>
    %443 = arith.truncf %442 : vector<16x32xf32> to vector<16x32xbf16>
    %c0_132 = arith.constant 0 : index
    %c0_133 = arith.constant 0 : index
    %444 = vector.load %arg8[%c0_132, %c0_133] : memref<32x32xbf16, #tpu.memory_space<vmem>>, vector<32x32xbf16>
    %cst_134 = arith.constant dense<0.000000e+00> : vector<16x32xf32>
    %445 = tpu.matmul %443, %444, %cst_134 {dimension_numbers = #tpu.dot_dimension_numbers<[1], [0], [0], [1], [0, 0, 1, 1], [], []>} : vector<16x32xbf16>, vector<32x32xbf16>, vector<16x32xf32> -> vector<16x32xf32>
    %446 = vector.broadcast %2 : vector<1x32xf32> to vector<16x32xf32>
    %447 = arith.addf %445, %446 : vector<16x32xf32>
    %448 = vector.extract_strided_slice %37 {offsets = [0, 0], sizes = [8, 32], strides = [1, 1]} : vector<16x32xf32> to vector<8x32xf32>
    %449 = vector.extract_strided_slice %37 {offsets = [0, 0], sizes = [8, 32], strides = [1, 1]} : vector<16x32xf32> to vector<8x32xf32>
    %450 = vector.extract_strided_slice %37 {offsets = [8, 0], sizes = [8, 32], strides = [1, 1]} : vector<16x32xf32> to vector<8x32xf32>
    %451 = vector.extract_strided_slice %37 {offsets = [8, 0], sizes = [8, 32], strides = [1, 1]} : vector<16x32xf32> to vector<8x32xf32>
    %452 = tpu.concatenate %448, %449, %450, %451 in 0 : vector<8x32xf32>, vector<8x32xf32>, vector<8x32xf32>, vector<8x32xf32> -> vector<32x32xf32>
    %453 = vector.extract_strided_slice %38 {offsets = [0, 0], sizes = [8, 32], strides = [1, 1]} : vector<16x32xf32> to vector<8x32xf32>
    %454 = vector.extract_strided_slice %38 {offsets = [0, 0], sizes = [8, 32], strides = [1, 1]} : vector<16x32xf32> to vector<8x32xf32>
    %455 = vector.extract_strided_slice %38 {offsets = [8, 0], sizes = [8, 32], strides = [1, 1]} : vector<16x32xf32> to vector<8x32xf32>
    %456 = vector.extract_strided_slice %38 {offsets = [8, 0], sizes = [8, 32], strides = [1, 1]} : vector<16x32xf32> to vector<8x32xf32>
    %457 = tpu.concatenate %453, %454, %455, %456 in 0 : vector<8x32xf32>, vector<8x32xf32>, vector<8x32xf32>, vector<8x32xf32> -> vector<32x32xf32>
    %458 = tpu.concatenate %447, %447 in 0 : vector<16x32xf32>, vector<16x32xf32> -> vector<32x32xf32>
    %459 = arith.mulf %458, %452 : vector<32x32xf32>
    %460 = arith.truncf %459 : vector<32x32xf32> to vector<32x32xbf16>
    %cst_135 = arith.constant dense<0.000000e+00> : vector<32x8xf32>
    %461 = tpu.matmul %460, %14, %cst_135 {dimension_numbers = #tpu.dot_dimension_numbers<[1], [0], [0], [1], [0, 0, 1, 1], [], []>} : vector<32x32xbf16>, vector<32x8xbf16>, vector<32x8xf32> -> vector<32x8xf32>
    %462 = vector.extract_strided_slice %461 {offsets = [0, 0], sizes = [16, 8], strides = [1, 1]} : vector<32x8xf32> to vector<16x8xf32>
    %463 = vector.extract_strided_slice %461 {offsets = [16, 0], sizes = [16, 8], strides = [1, 1]} : vector<32x8xf32> to vector<16x8xf32>
    %464 = arith.maximumf %462, %463 : vector<16x8xf32>
    %465 = tpu.concatenate %464, %464 in 0 : vector<16x8xf32>, vector<16x8xf32> -> vector<32x8xf32>
    %466 = arith.subf %461, %465 : vector<32x8xf32>
    %467 = math.exp %466 : vector<32x8xf32>
    %468 = vector.extract_strided_slice %467 {offsets = [0, 0], sizes = [16, 8], strides = [1, 1]} : vector<32x8xf32> to vector<16x8xf32>
    %469 = vector.extract_strided_slice %467 {offsets = [16, 0], sizes = [16, 8], strides = [1, 1]} : vector<32x8xf32> to vector<16x8xf32>
    %470 = arith.addf %468, %469 : vector<16x8xf32>
    %471 = tpu.reciprocal %470 {approx = true} : vector<16x8xf32> -> vector<16x8xf32>
    %472 = tpu.concatenate %471, %471 in 0 : vector<16x8xf32>, vector<16x8xf32> -> vector<32x8xf32>
    %473 = arith.mulf %467, %472 : vector<32x8xf32>
    %474 = arith.truncf %473 : vector<32x8xf32> to vector<32x8xbf16>
    %cst_136 = arith.constant dense<0.000000e+00> : vector<32x32xf32>
    %475 = tpu.matmul %474, %15, %cst_136 {dimension_numbers = #tpu.dot_dimension_numbers<[1], [0], [0], [1], [0, 0, 1, 1], [], []>} : vector<32x8xbf16>, vector<8x32xbf16>, vector<32x32xf32> -> vector<32x32xf32>
    %476 = arith.mulf %475, %457 : vector<32x32xf32>
    %477 = vector.extract_strided_slice %476 {offsets = [0, 0], sizes = [16, 32], strides = [1, 1]} : vector<32x32xf32> to vector<16x32xf32>
    %478 = vector.extract_strided_slice %476 {offsets = [16, 0], sizes = [16, 32], strides = [1, 1]} : vector<32x32xf32> to vector<16x32xf32>
    %479 = arith.addf %477, %478 : vector<16x32xf32>
    %480 = arith.truncf %479 : vector<16x32xf32> to vector<16x32xbf16>
    %c0_137 = arith.constant 0 : index
    %c0_138 = arith.constant 0 : index
    %481 = vector.load %arg12[%c0_137, %c0_138] : memref<32x32xbf16, #tpu.memory_space<vmem>>, vector<32x32xbf16>
    %cst_139 = arith.constant dense<0.000000e+00> : vector<16x32xf32>
    %482 = tpu.matmul %480, %481, %cst_139 {dimension_numbers = #tpu.dot_dimension_numbers<[1], [0], [0], [1], [0, 0, 1, 1], [], []>} : vector<16x32xbf16>, vector<32x32xbf16>, vector<16x32xf32> -> vector<16x32xf32>
    %483 = vector.broadcast %4 : vector<1x32xf32> to vector<16x32xf32>
    %484 = arith.addf %482, %483 : vector<16x32xf32>
    %485 = arith.addf %442, %484 : vector<16x32xf32>
    %cst_140 = arith.constant dense<0.000000e+00> : vector<16xf32>
    %486 = vector.multi_reduction <add>, %485, %cst_140 [1] : vector<16x32xf32> to vector<16xf32>
    %487 = vector.shape_cast %486 : vector<16xf32> to vector<16x1xf32>
    %cst_141 = arith.constant 3.200000e+01 : f32
    %488 = vector.broadcast %cst_141 : f32 to vector<16x1xf32>
    %489 = arith.divf %487, %488 : vector<16x1xf32>
    %490 = arith.mulf %485, %485 : vector<16x32xf32>
    %cst_142 = arith.constant dense<0.000000e+00> : vector<16xf32>
    %491 = vector.multi_reduction <add>, %490, %cst_142 [1] : vector<16x32xf32> to vector<16xf32>
    %492 = vector.shape_cast %491 : vector<16xf32> to vector<16x1xf32>
    %cst_143 = arith.constant 3.200000e+01 : f32
    %493 = vector.broadcast %cst_143 : f32 to vector<16x1xf32>
    %494 = arith.divf %492, %493 : vector<16x1xf32>
    %495 = arith.mulf %489, %489 : vector<16x1xf32>
    %496 = arith.subf %494, %495 : vector<16x1xf32>
    %497 = vector.broadcast %489 : vector<16x1xf32> to vector<16x32xf32>
    %498 = arith.subf %485, %497 : vector<16x32xf32>
    %cst_144 = arith.constant 9.99999974E-6 : f32
    %499 = vector.broadcast %cst_144 : f32 to vector<16x1xf32>
    %500 = arith.addf %496, %499 : vector<16x1xf32>
    %501 = math.rsqrt %500 : vector<16x1xf32>
    %502 = vector.broadcast %501 : vector<16x1xf32> to vector<16x32xf32>
    %503 = arith.mulf %498, %502 : vector<16x32xf32>
    %504 = vector.broadcast %7 : vector<1x32xf32> to vector<16x32xf32>
    %505 = arith.mulf %503, %504 : vector<16x32xf32>
    %506 = vector.broadcast %8 : vector<1x32xf32> to vector<16x32xf32>
    %507 = arith.addf %505, %506 : vector<16x32xf32>
    %508 = arith.truncf %507 : vector<16x32xf32> to vector<16x32xbf16>
    %c0_145 = arith.constant 0 : index
    %c0_146 = arith.constant 0 : index
    %509 = vector.load %arg20[%c0_145, %c0_146] : memref<32x64xbf16, #tpu.memory_space<vmem>>, vector<32x64xbf16>
    %cst_147 = arith.constant dense<0.000000e+00> : vector<16x64xf32>
    %510 = tpu.matmul %508, %509, %cst_147 {dimension_numbers = #tpu.dot_dimension_numbers<[1], [0], [0], [1], [0, 0, 1, 1], [], []>} : vector<16x32xbf16>, vector<32x64xbf16>, vector<16x64xf32> -> vector<16x64xf32>
    %511 = vector.broadcast %11 : vector<1x64xf32> to vector<16x64xf32>
    %512 = arith.addf %510, %511 : vector<16x64xf32>
    %cst_148 = arith.constant 0.000000e+00 : f32
    %513 = vector.broadcast %cst_148 : f32 to vector<16x64xf32>
    %514 = arith.maximumf %512, %513 : vector<16x64xf32>
    %515 = arith.truncf %514 : vector<16x64xf32> to vector<16x64xbf16>
    %c0_149 = arith.constant 0 : index
    %c0_150 = arith.constant 0 : index
    %516 = vector.load %arg22[%c0_149, %c0_150] : memref<64x32xbf16, #tpu.memory_space<vmem>>, vector<64x32xbf16>
    %cst_151 = arith.constant dense<0.000000e+00> : vector<16x32xf32>
    %517 = tpu.matmul %515, %516, %cst_151 {dimension_numbers = #tpu.dot_dimension_numbers<[1], [0], [0], [1], [0, 0, 1, 1], [], []>} : vector<16x64xbf16>, vector<64x32xbf16>, vector<16x32xf32> -> vector<16x32xf32>
    %518 = vector.broadcast %12 : vector<1x32xf32> to vector<16x32xf32>
    %519 = arith.addf %517, %518 : vector<16x32xf32>
    %520 = arith.addf %507, %519 : vector<16x32xf32>
    %cst_152 = arith.constant dense<0.000000e+00> : vector<16xf32>
    %521 = vector.multi_reduction <add>, %520, %cst_152 [1] : vector<16x32xf32> to vector<16xf32>
    %522 = vector.shape_cast %521 : vector<16xf32> to vector<16x1xf32>
    %cst_153 = arith.constant 3.200000e+01 : f32
    %523 = vector.broadcast %cst_153 : f32 to vector<16x1xf32>
    %524 = arith.divf %522, %523 : vector<16x1xf32>
    %525 = arith.mulf %520, %520 : vector<16x32xf32>
    %cst_154 = arith.constant dense<0.000000e+00> : vector<16xf32>
    %526 = vector.multi_reduction <add>, %525, %cst_154 [1] : vector<16x32xf32> to vector<16xf32>
    %527 = vector.shape_cast %526 : vector<16xf32> to vector<16x1xf32>
    %cst_155 = arith.constant 3.200000e+01 : f32
    %528 = vector.broadcast %cst_155 : f32 to vector<16x1xf32>
    %529 = arith.divf %527, %528 : vector<16x1xf32>
    %530 = arith.mulf %524, %524 : vector<16x1xf32>
    %531 = arith.subf %529, %530 : vector<16x1xf32>
    %532 = vector.broadcast %524 : vector<16x1xf32> to vector<16x32xf32>
    %533 = arith.subf %520, %532 : vector<16x32xf32>
    %cst_156 = arith.constant 9.99999974E-6 : f32
    %534 = vector.broadcast %cst_156 : f32 to vector<16x1xf32>
    %535 = arith.addf %531, %534 : vector<16x1xf32>
    %536 = math.rsqrt %535 : vector<16x1xf32>
    %537 = vector.broadcast %536 : vector<16x1xf32> to vector<16x32xf32>
    %538 = arith.mulf %533, %537 : vector<16x32xf32>
    %539 = vector.broadcast %9 : vector<1x32xf32> to vector<16x32xf32>
    %540 = arith.mulf %538, %539 : vector<16x32xf32>
    %541 = vector.broadcast %10 : vector<1x32xf32> to vector<16x32xf32>
    %542 = arith.addf %540, %541 : vector<16x32xf32>
    %c3_i32 = arith.constant 3 : i32
    %543 = arith.truncf %542 : vector<16x32xf32> to vector<16x32xbf16>
    %c0_157 = arith.constant 0 : index
    %c0_158 = arith.constant 0 : index
    %544 = vector.load %arg4[%c0_157, %c0_158] : memref<32x96xbf16, #tpu.memory_space<vmem>>, vector<32x96xbf16>
    %cst_159 = arith.constant dense<0.000000e+00> : vector<16x96xf32>
    %545 = tpu.matmul %543, %544, %cst_159 {dimension_numbers = #tpu.dot_dimension_numbers<[1], [0], [0], [1], [0, 0, 1, 1], [], []>} : vector<16x32xbf16>, vector<32x96xbf16>, vector<16x96xf32> -> vector<16x96xf32>
    %546 = vector.broadcast %0 : vector<1x96xf32> to vector<16x96xf32>
    %547 = arith.addf %545, %546 : vector<16x96xf32>
    %548 = vector.extract_strided_slice %547 {offsets = [0, 0], sizes = [16, 32], strides = [1, 1]} : vector<16x96xf32> to vector<16x32xf32>
    %549 = vector.extract_strided_slice %547 {offsets = [0, 32], sizes = [16, 32], strides = [1, 1]} : vector<16x96xf32> to vector<16x32xf32>
    %550 = vector.extract_strided_slice %547 {offsets = [0, 64], sizes = [16, 32], strides = [1, 1]} : vector<16x96xf32> to vector<16x32xf32>
    %551 = vector.extract_strided_slice %549 {offsets = [0, 0], sizes = [8, 32], strides = [1, 1]} : vector<16x32xf32> to vector<8x32xf32>
    %552 = vector.extract_strided_slice %549 {offsets = [0, 0], sizes = [8, 32], strides = [1, 1]} : vector<16x32xf32> to vector<8x32xf32>
    %553 = vector.extract_strided_slice %549 {offsets = [8, 0], sizes = [8, 32], strides = [1, 1]} : vector<16x32xf32> to vector<8x32xf32>
    %554 = vector.extract_strided_slice %549 {offsets = [8, 0], sizes = [8, 32], strides = [1, 1]} : vector<16x32xf32> to vector<8x32xf32>
    %555 = tpu.concatenate %551, %552, %553, %554 in 0 : vector<8x32xf32>, vector<8x32xf32>, vector<8x32xf32>, vector<8x32xf32> -> vector<32x32xf32>
    %556 = vector.extract_strided_slice %550 {offsets = [0, 0], sizes = [8, 32], strides = [1, 1]} : vector<16x32xf32> to vector<8x32xf32>
    %557 = vector.extract_strided_slice %550 {offsets = [0, 0], sizes = [8, 32], strides = [1, 1]} : vector<16x32xf32> to vector<8x32xf32>
    %558 = vector.extract_strided_slice %550 {offsets = [8, 0], sizes = [8, 32], strides = [1, 1]} : vector<16x32xf32> to vector<8x32xf32>
    %559 = vector.extract_strided_slice %550 {offsets = [8, 0], sizes = [8, 32], strides = [1, 1]} : vector<16x32xf32> to vector<8x32xf32>
    %560 = tpu.concatenate %556, %557, %558, %559 in 0 : vector<8x32xf32>, vector<8x32xf32>, vector<8x32xf32>, vector<8x32xf32> -> vector<32x32xf32>
    %561 = tpu.concatenate %548, %548 in 0 : vector<16x32xf32>, vector<16x32xf32> -> vector<32x32xf32>
    %562 = arith.mulf %561, %555 : vector<32x32xf32>
    %563 = arith.truncf %562 : vector<32x32xf32> to vector<32x32xbf16>
    %cst_160 = arith.constant dense<0.000000e+00> : vector<32x8xf32>
    %564 = tpu.matmul %563, %14, %cst_160 {dimension_numbers = #tpu.dot_dimension_numbers<[1], [0], [0], [1], [0, 0, 1, 1], [], []>} : vector<32x32xbf16>, vector<32x8xbf16>, vector<32x8xf32> -> vector<32x8xf32>
    %565 = vector.extract_strided_slice %564 {offsets = [0, 0], sizes = [16, 8], strides = [1, 1]} : vector<32x8xf32> to vector<16x8xf32>
    %566 = vector.extract_strided_slice %564 {offsets = [16, 0], sizes = [16, 8], strides = [1, 1]} : vector<32x8xf32> to vector<16x8xf32>
    %567 = arith.maximumf %565, %566 : vector<16x8xf32>
    %568 = tpu.concatenate %567, %567 in 0 : vector<16x8xf32>, vector<16x8xf32> -> vector<32x8xf32>
    %569 = arith.subf %564, %568 : vector<32x8xf32>
    %570 = math.exp %569 : vector<32x8xf32>
    %571 = vector.extract_strided_slice %570 {offsets = [0, 0], sizes = [16, 8], strides = [1, 1]} : vector<32x8xf32> to vector<16x8xf32>
    %572 = vector.extract_strided_slice %570 {offsets = [16, 0], sizes = [16, 8], strides = [1, 1]} : vector<32x8xf32> to vector<16x8xf32>
    %573 = arith.addf %571, %572 : vector<16x8xf32>
    %574 = tpu.reciprocal %573 {approx = true} : vector<16x8xf32> -> vector<16x8xf32>
    %575 = tpu.concatenate %574, %574 in 0 : vector<16x8xf32>, vector<16x8xf32> -> vector<32x8xf32>
    %576 = arith.mulf %570, %575 : vector<32x8xf32>
    %577 = arith.truncf %576 : vector<32x8xf32> to vector<32x8xbf16>
    %cst_161 = arith.constant dense<0.000000e+00> : vector<32x32xf32>
    %578 = tpu.matmul %577, %15, %cst_161 {dimension_numbers = #tpu.dot_dimension_numbers<[1], [0], [0], [1], [0, 0, 1, 1], [], []>} : vector<32x8xbf16>, vector<8x32xbf16>, vector<32x32xf32> -> vector<32x32xf32>
    %579 = arith.mulf %578, %560 : vector<32x32xf32>
    %580 = vector.extract_strided_slice %579 {offsets = [0, 0], sizes = [16, 32], strides = [1, 1]} : vector<32x32xf32> to vector<16x32xf32>
    %581 = vector.extract_strided_slice %579 {offsets = [16, 0], sizes = [16, 32], strides = [1, 1]} : vector<32x32xf32> to vector<16x32xf32>
    %582 = arith.addf %580, %581 : vector<16x32xf32>
    %583 = arith.truncf %582 : vector<16x32xf32> to vector<16x32xbf16>
    %c0_162 = arith.constant 0 : index
    %c0_163 = arith.constant 0 : index
    %584 = vector.load %arg6[%c0_162, %c0_163] : memref<32x32xbf16, #tpu.memory_space<vmem>>, vector<32x32xbf16>
    %cst_164 = arith.constant dense<0.000000e+00> : vector<16x32xf32>
    %585 = tpu.matmul %583, %584, %cst_164 {dimension_numbers = #tpu.dot_dimension_numbers<[1], [0], [0], [1], [0, 0, 1, 1], [], []>} : vector<16x32xbf16>, vector<32x32xbf16>, vector<16x32xf32> -> vector<16x32xf32>
    %586 = vector.broadcast %1 : vector<1x32xf32> to vector<16x32xf32>
    %587 = arith.addf %585, %586 : vector<16x32xf32>
    %588 = arith.addf %542, %587 : vector<16x32xf32>
    %cst_165 = arith.constant dense<0.000000e+00> : vector<16xf32>
    %589 = vector.multi_reduction <add>, %588, %cst_165 [1] : vector<16x32xf32> to vector<16xf32>
    %590 = vector.shape_cast %589 : vector<16xf32> to vector<16x1xf32>
    %cst_166 = arith.constant 3.200000e+01 : f32
    %591 = vector.broadcast %cst_166 : f32 to vector<16x1xf32>
    %592 = arith.divf %590, %591 : vector<16x1xf32>
    %593 = arith.mulf %588, %588 : vector<16x32xf32>
    %cst_167 = arith.constant dense<0.000000e+00> : vector<16xf32>
    %594 = vector.multi_reduction <add>, %593, %cst_167 [1] : vector<16x32xf32> to vector<16xf32>
    %595 = vector.shape_cast %594 : vector<16xf32> to vector<16x1xf32>
    %cst_168 = arith.constant 3.200000e+01 : f32
    %596 = vector.broadcast %cst_168 : f32 to vector<16x1xf32>
    %597 = arith.divf %595, %596 : vector<16x1xf32>
    %598 = arith.mulf %592, %592 : vector<16x1xf32>
    %599 = arith.subf %597, %598 : vector<16x1xf32>
    %600 = vector.broadcast %592 : vector<16x1xf32> to vector<16x32xf32>
    %601 = arith.subf %588, %600 : vector<16x32xf32>
    %cst_169 = arith.constant 9.99999974E-6 : f32
    %602 = vector.broadcast %cst_169 : f32 to vector<16x1xf32>
    %603 = arith.addf %599, %602 : vector<16x1xf32>
    %604 = math.rsqrt %603 : vector<16x1xf32>
    %605 = vector.broadcast %604 : vector<16x1xf32> to vector<16x32xf32>
    %606 = arith.mulf %601, %605 : vector<16x32xf32>
    %607 = vector.broadcast %5 : vector<1x32xf32> to vector<16x32xf32>
    %608 = arith.mulf %606, %607 : vector<16x32xf32>
    %609 = vector.broadcast %6 : vector<1x32xf32> to vector<16x32xf32>
    %610 = arith.addf %608, %609 : vector<16x32xf32>
    %611 = arith.truncf %610 : vector<16x32xf32> to vector<16x32xbf16>
    %c0_170 = arith.constant 0 : index
    %c0_171 = arith.constant 0 : index
    %612 = vector.load %arg8[%c0_170, %c0_171] : memref<32x32xbf16, #tpu.memory_space<vmem>>, vector<32x32xbf16>
    %cst_172 = arith.constant dense<0.000000e+00> : vector<16x32xf32>
    %613 = tpu.matmul %611, %612, %cst_172 {dimension_numbers = #tpu.dot_dimension_numbers<[1], [0], [0], [1], [0, 0, 1, 1], [], []>} : vector<16x32xbf16>, vector<32x32xbf16>, vector<16x32xf32> -> vector<16x32xf32>
    %614 = vector.broadcast %2 : vector<1x32xf32> to vector<16x32xf32>
    %615 = arith.addf %613, %614 : vector<16x32xf32>
    %616 = vector.extract_strided_slice %37 {offsets = [0, 0], sizes = [8, 32], strides = [1, 1]} : vector<16x32xf32> to vector<8x32xf32>
    %617 = vector.extract_strided_slice %37 {offsets = [0, 0], sizes = [8, 32], strides = [1, 1]} : vector<16x32xf32> to vector<8x32xf32>
    %618 = vector.extract_strided_slice %37 {offsets = [8, 0], sizes = [8, 32], strides = [1, 1]} : vector<16x32xf32> to vector<8x32xf32>
    %619 = vector.extract_strided_slice %37 {offsets = [8, 0], sizes = [8, 32], strides = [1, 1]} : vector<16x32xf32> to vector<8x32xf32>
    %620 = tpu.concatenate %616, %617, %618, %619 in 0 : vector<8x32xf32>, vector<8x32xf32>, vector<8x32xf32>, vector<8x32xf32> -> vector<32x32xf32>
    %621 = vector.extract_strided_slice %38 {offsets = [0, 0], sizes = [8, 32], strides = [1, 1]} : vector<16x32xf32> to vector<8x32xf32>
    %622 = vector.extract_strided_slice %38 {offsets = [0, 0], sizes = [8, 32], strides = [1, 1]} : vector<16x32xf32> to vector<8x32xf32>
    %623 = vector.extract_strided_slice %38 {offsets = [8, 0], sizes = [8, 32], strides = [1, 1]} : vector<16x32xf32> to vector<8x32xf32>
    %624 = vector.extract_strided_slice %38 {offsets = [8, 0], sizes = [8, 32], strides = [1, 1]} : vector<16x32xf32> to vector<8x32xf32>
    %625 = tpu.concatenate %621, %622, %623, %624 in 0 : vector<8x32xf32>, vector<8x32xf32>, vector<8x32xf32>, vector<8x32xf32> -> vector<32x32xf32>
    %626 = tpu.concatenate %615, %615 in 0 : vector<16x32xf32>, vector<16x32xf32> -> vector<32x32xf32>
    %627 = arith.mulf %626, %620 : vector<32x32xf32>
    %628 = arith.truncf %627 : vector<32x32xf32> to vector<32x32xbf16>
    %cst_173 = arith.constant dense<0.000000e+00> : vector<32x8xf32>
    %629 = tpu.matmul %628, %14, %cst_173 {dimension_numbers = #tpu.dot_dimension_numbers<[1], [0], [0], [1], [0, 0, 1, 1], [], []>} : vector<32x32xbf16>, vector<32x8xbf16>, vector<32x8xf32> -> vector<32x8xf32>
    %630 = vector.extract_strided_slice %629 {offsets = [0, 0], sizes = [16, 8], strides = [1, 1]} : vector<32x8xf32> to vector<16x8xf32>
    %631 = vector.extract_strided_slice %629 {offsets = [16, 0], sizes = [16, 8], strides = [1, 1]} : vector<32x8xf32> to vector<16x8xf32>
    %632 = arith.maximumf %630, %631 : vector<16x8xf32>
    %633 = tpu.concatenate %632, %632 in 0 : vector<16x8xf32>, vector<16x8xf32> -> vector<32x8xf32>
    %634 = arith.subf %629, %633 : vector<32x8xf32>
    %635 = math.exp %634 : vector<32x8xf32>
    %636 = vector.extract_strided_slice %635 {offsets = [0, 0], sizes = [16, 8], strides = [1, 1]} : vector<32x8xf32> to vector<16x8xf32>
    %637 = vector.extract_strided_slice %635 {offsets = [16, 0], sizes = [16, 8], strides = [1, 1]} : vector<32x8xf32> to vector<16x8xf32>
    %638 = arith.addf %636, %637 : vector<16x8xf32>
    %639 = tpu.reciprocal %638 {approx = true} : vector<16x8xf32> -> vector<16x8xf32>
    %640 = tpu.concatenate %639, %639 in 0 : vector<16x8xf32>, vector<16x8xf32> -> vector<32x8xf32>
    %641 = arith.mulf %635, %640 : vector<32x8xf32>
    %642 = arith.truncf %641 : vector<32x8xf32> to vector<32x8xbf16>
    %cst_174 = arith.constant dense<0.000000e+00> : vector<32x32xf32>
    %643 = tpu.matmul %642, %15, %cst_174 {dimension_numbers = #tpu.dot_dimension_numbers<[1], [0], [0], [1], [0, 0, 1, 1], [], []>} : vector<32x8xbf16>, vector<8x32xbf16>, vector<32x32xf32> -> vector<32x32xf32>
    %644 = arith.mulf %643, %625 : vector<32x32xf32>
    %645 = vector.extract_strided_slice %644 {offsets = [0, 0], sizes = [16, 32], strides = [1, 1]} : vector<32x32xf32> to vector<16x32xf32>
    %646 = vector.extract_strided_slice %644 {offsets = [16, 0], sizes = [16, 32], strides = [1, 1]} : vector<32x32xf32> to vector<16x32xf32>
    %647 = arith.addf %645, %646 : vector<16x32xf32>
    %648 = arith.truncf %647 : vector<16x32xf32> to vector<16x32xbf16>
    %c0_175 = arith.constant 0 : index
    %c0_176 = arith.constant 0 : index
    %649 = vector.load %arg12[%c0_175, %c0_176] : memref<32x32xbf16, #tpu.memory_space<vmem>>, vector<32x32xbf16>
    %cst_177 = arith.constant dense<0.000000e+00> : vector<16x32xf32>
    %650 = tpu.matmul %648, %649, %cst_177 {dimension_numbers = #tpu.dot_dimension_numbers<[1], [0], [0], [1], [0, 0, 1, 1], [], []>} : vector<16x32xbf16>, vector<32x32xbf16>, vector<16x32xf32> -> vector<16x32xf32>
    %651 = vector.broadcast %4 : vector<1x32xf32> to vector<16x32xf32>
    %652 = arith.addf %650, %651 : vector<16x32xf32>
    %653 = arith.addf %610, %652 : vector<16x32xf32>
    %cst_178 = arith.constant dense<0.000000e+00> : vector<16xf32>
    %654 = vector.multi_reduction <add>, %653, %cst_178 [1] : vector<16x32xf32> to vector<16xf32>
    %655 = vector.shape_cast %654 : vector<16xf32> to vector<16x1xf32>
    %cst_179 = arith.constant 3.200000e+01 : f32
    %656 = vector.broadcast %cst_179 : f32 to vector<16x1xf32>
    %657 = arith.divf %655, %656 : vector<16x1xf32>
    %658 = arith.mulf %653, %653 : vector<16x32xf32>
    %cst_180 = arith.constant dense<0.000000e+00> : vector<16xf32>
    %659 = vector.multi_reduction <add>, %658, %cst_180 [1] : vector<16x32xf32> to vector<16xf32>
    %660 = vector.shape_cast %659 : vector<16xf32> to vector<16x1xf32>
    %cst_181 = arith.constant 3.200000e+01 : f32
    %661 = vector.broadcast %cst_181 : f32 to vector<16x1xf32>
    %662 = arith.divf %660, %661 : vector<16x1xf32>
    %663 = arith.mulf %657, %657 : vector<16x1xf32>
    %664 = arith.subf %662, %663 : vector<16x1xf32>
    %665 = vector.broadcast %657 : vector<16x1xf32> to vector<16x32xf32>
    %666 = arith.subf %653, %665 : vector<16x32xf32>
    %cst_182 = arith.constant 9.99999974E-6 : f32
    %667 = vector.broadcast %cst_182 : f32 to vector<16x1xf32>
    %668 = arith.addf %664, %667 : vector<16x1xf32>
    %669 = math.rsqrt %668 : vector<16x1xf32>
    %670 = vector.broadcast %669 : vector<16x1xf32> to vector<16x32xf32>
    %671 = arith.mulf %666, %670 : vector<16x32xf32>
    %672 = vector.broadcast %7 : vector<1x32xf32> to vector<16x32xf32>
    %673 = arith.mulf %671, %672 : vector<16x32xf32>
    %674 = vector.broadcast %8 : vector<1x32xf32> to vector<16x32xf32>
    %675 = arith.addf %673, %674 : vector<16x32xf32>
    %676 = arith.truncf %675 : vector<16x32xf32> to vector<16x32xbf16>
    %c0_183 = arith.constant 0 : index
    %c0_184 = arith.constant 0 : index
    %677 = vector.load %arg20[%c0_183, %c0_184] : memref<32x64xbf16, #tpu.memory_space<vmem>>, vector<32x64xbf16>
    %cst_185 = arith.constant dense<0.000000e+00> : vector<16x64xf32>
    %678 = tpu.matmul %676, %677, %cst_185 {dimension_numbers = #tpu.dot_dimension_numbers<[1], [0], [0], [1], [0, 0, 1, 1], [], []>} : vector<16x32xbf16>, vector<32x64xbf16>, vector<16x64xf32> -> vector<16x64xf32>
    %679 = vector.broadcast %11 : vector<1x64xf32> to vector<16x64xf32>
    %680 = arith.addf %678, %679 : vector<16x64xf32>
    %cst_186 = arith.constant 0.000000e+00 : f32
    %681 = vector.broadcast %cst_186 : f32 to vector<16x64xf32>
    %682 = arith.maximumf %680, %681 : vector<16x64xf32>
    %683 = arith.truncf %682 : vector<16x64xf32> to vector<16x64xbf16>
    %c0_187 = arith.constant 0 : index
    %c0_188 = arith.constant 0 : index
    %684 = vector.load %arg22[%c0_187, %c0_188] : memref<64x32xbf16, #tpu.memory_space<vmem>>, vector<64x32xbf16>
    %cst_189 = arith.constant dense<0.000000e+00> : vector<16x32xf32>
    %685 = tpu.matmul %683, %684, %cst_189 {dimension_numbers = #tpu.dot_dimension_numbers<[1], [0], [0], [1], [0, 0, 1, 1], [], []>} : vector<16x64xbf16>, vector<64x32xbf16>, vector<16x32xf32> -> vector<16x32xf32>
    %686 = vector.broadcast %12 : vector<1x32xf32> to vector<16x32xf32>
    %687 = arith.addf %685, %686 : vector<16x32xf32>
    %688 = arith.addf %675, %687 : vector<16x32xf32>
    %cst_190 = arith.constant dense<0.000000e+00> : vector<16xf32>
    %689 = vector.multi_reduction <add>, %688, %cst_190 [1] : vector<16x32xf32> to vector<16xf32>
    %690 = vector.shape_cast %689 : vector<16xf32> to vector<16x1xf32>
    %cst_191 = arith.constant 3.200000e+01 : f32
    %691 = vector.broadcast %cst_191 : f32 to vector<16x1xf32>
    %692 = arith.divf %690, %691 : vector<16x1xf32>
    %693 = arith.mulf %688, %688 : vector<16x32xf32>
    %cst_192 = arith.constant dense<0.000000e+00> : vector<16xf32>
    %694 = vector.multi_reduction <add>, %693, %cst_192 [1] : vector<16x32xf32> to vector<16xf32>
    %695 = vector.shape_cast %694 : vector<16xf32> to vector<16x1xf32>
    %cst_193 = arith.constant 3.200000e+01 : f32
    %696 = vector.broadcast %cst_193 : f32 to vector<16x1xf32>
    %697 = arith.divf %695, %696 : vector<16x1xf32>
    %698 = arith.mulf %692, %692 : vector<16x1xf32>
    %699 = arith.subf %697, %698 : vector<16x1xf32>
    %700 = vector.broadcast %692 : vector<16x1xf32> to vector<16x32xf32>
    %701 = arith.subf %688, %700 : vector<16x32xf32>
    %cst_194 = arith.constant 9.99999974E-6 : f32
    %702 = vector.broadcast %cst_194 : f32 to vector<16x1xf32>
    %703 = arith.addf %699, %702 : vector<16x1xf32>
    %704 = math.rsqrt %703 : vector<16x1xf32>
    %705 = vector.broadcast %704 : vector<16x1xf32> to vector<16x32xf32>
    %706 = arith.mulf %701, %705 : vector<16x32xf32>
    %707 = vector.broadcast %9 : vector<1x32xf32> to vector<16x32xf32>
    %708 = arith.mulf %706, %707 : vector<16x32xf32>
    %709 = vector.broadcast %10 : vector<1x32xf32> to vector<16x32xf32>
    %710 = arith.addf %708, %709 : vector<16x32xf32>
    %c4_i32 = arith.constant 4 : i32
    %711 = arith.truncf %710 : vector<16x32xf32> to vector<16x32xbf16>
    %c0_195 = arith.constant 0 : index
    %c0_196 = arith.constant 0 : index
    %712 = vector.load %arg4[%c0_195, %c0_196] : memref<32x96xbf16, #tpu.memory_space<vmem>>, vector<32x96xbf16>
    %cst_197 = arith.constant dense<0.000000e+00> : vector<16x96xf32>
    %713 = tpu.matmul %711, %712, %cst_197 {dimension_numbers = #tpu.dot_dimension_numbers<[1], [0], [0], [1], [0, 0, 1, 1], [], []>} : vector<16x32xbf16>, vector<32x96xbf16>, vector<16x96xf32> -> vector<16x96xf32>
    %714 = vector.broadcast %0 : vector<1x96xf32> to vector<16x96xf32>
    %715 = arith.addf %713, %714 : vector<16x96xf32>
    %716 = vector.extract_strided_slice %715 {offsets = [0, 0], sizes = [16, 32], strides = [1, 1]} : vector<16x96xf32> to vector<16x32xf32>
    %717 = vector.extract_strided_slice %715 {offsets = [0, 32], sizes = [16, 32], strides = [1, 1]} : vector<16x96xf32> to vector<16x32xf32>
    %718 = vector.extract_strided_slice %715 {offsets = [0, 64], sizes = [16, 32], strides = [1, 1]} : vector<16x96xf32> to vector<16x32xf32>
    %719 = vector.extract_strided_slice %717 {offsets = [0, 0], sizes = [8, 32], strides = [1, 1]} : vector<16x32xf32> to vector<8x32xf32>
    %720 = vector.extract_strided_slice %717 {offsets = [0, 0], sizes = [8, 32], strides = [1, 1]} : vector<16x32xf32> to vector<8x32xf32>
    %721 = vector.extract_strided_slice %717 {offsets = [8, 0], sizes = [8, 32], strides = [1, 1]} : vector<16x32xf32> to vector<8x32xf32>
    %722 = vector.extract_strided_slice %717 {offsets = [8, 0], sizes = [8, 32], strides = [1, 1]} : vector<16x32xf32> to vector<8x32xf32>
    %723 = tpu.concatenate %719, %720, %721, %722 in 0 : vector<8x32xf32>, vector<8x32xf32>, vector<8x32xf32>, vector<8x32xf32> -> vector<32x32xf32>
    %724 = vector.extract_strided_slice %718 {offsets = [0, 0], sizes = [8, 32], strides = [1, 1]} : vector<16x32xf32> to vector<8x32xf32>
    %725 = vector.extract_strided_slice %718 {offsets = [0, 0], sizes = [8, 32], strides = [1, 1]} : vector<16x32xf32> to vector<8x32xf32>
    %726 = vector.extract_strided_slice %718 {offsets = [8, 0], sizes = [8, 32], strides = [1, 1]} : vector<16x32xf32> to vector<8x32xf32>
    %727 = vector.extract_strided_slice %718 {offsets = [8, 0], sizes = [8, 32], strides = [1, 1]} : vector<16x32xf32> to vector<8x32xf32>
    %728 = tpu.concatenate %724, %725, %726, %727 in 0 : vector<8x32xf32>, vector<8x32xf32>, vector<8x32xf32>, vector<8x32xf32> -> vector<32x32xf32>
    %729 = tpu.concatenate %716, %716 in 0 : vector<16x32xf32>, vector<16x32xf32> -> vector<32x32xf32>
    %730 = arith.mulf %729, %723 : vector<32x32xf32>
    %731 = arith.truncf %730 : vector<32x32xf32> to vector<32x32xbf16>
    %cst_198 = arith.constant dense<0.000000e+00> : vector<32x8xf32>
    %732 = tpu.matmul %731, %14, %cst_198 {dimension_numbers = #tpu.dot_dimension_numbers<[1], [0], [0], [1], [0, 0, 1, 1], [], []>} : vector<32x32xbf16>, vector<32x8xbf16>, vector<32x8xf32> -> vector<32x8xf32>
    %733 = vector.extract_strided_slice %732 {offsets = [0, 0], sizes = [16, 8], strides = [1, 1]} : vector<32x8xf32> to vector<16x8xf32>
    %734 = vector.extract_strided_slice %732 {offsets = [16, 0], sizes = [16, 8], strides = [1, 1]} : vector<32x8xf32> to vector<16x8xf32>
    %735 = arith.maximumf %733, %734 : vector<16x8xf32>
    %736 = tpu.concatenate %735, %735 in 0 : vector<16x8xf32>, vector<16x8xf32> -> vector<32x8xf32>
    %737 = arith.subf %732, %736 : vector<32x8xf32>
    %738 = math.exp %737 : vector<32x8xf32>
    %739 = vector.extract_strided_slice %738 {offsets = [0, 0], sizes = [16, 8], strides = [1, 1]} : vector<32x8xf32> to vector<16x8xf32>
    %740 = vector.extract_strided_slice %738 {offsets = [16, 0], sizes = [16, 8], strides = [1, 1]} : vector<32x8xf32> to vector<16x8xf32>
    %741 = arith.addf %739, %740 : vector<16x8xf32>
    %742 = tpu.reciprocal %741 {approx = true} : vector<16x8xf32> -> vector<16x8xf32>
    %743 = tpu.concatenate %742, %742 in 0 : vector<16x8xf32>, vector<16x8xf32> -> vector<32x8xf32>
    %744 = arith.mulf %738, %743 : vector<32x8xf32>
    %745 = arith.truncf %744 : vector<32x8xf32> to vector<32x8xbf16>
    %cst_199 = arith.constant dense<0.000000e+00> : vector<32x32xf32>
    %746 = tpu.matmul %745, %15, %cst_199 {dimension_numbers = #tpu.dot_dimension_numbers<[1], [0], [0], [1], [0, 0, 1, 1], [], []>} : vector<32x8xbf16>, vector<8x32xbf16>, vector<32x32xf32> -> vector<32x32xf32>
    %747 = arith.mulf %746, %728 : vector<32x32xf32>
    %748 = vector.extract_strided_slice %747 {offsets = [0, 0], sizes = [16, 32], strides = [1, 1]} : vector<32x32xf32> to vector<16x32xf32>
    %749 = vector.extract_strided_slice %747 {offsets = [16, 0], sizes = [16, 32], strides = [1, 1]} : vector<32x32xf32> to vector<16x32xf32>
    %750 = arith.addf %748, %749 : vector<16x32xf32>
    %751 = arith.truncf %750 : vector<16x32xf32> to vector<16x32xbf16>
    %c0_200 = arith.constant 0 : index
    %c0_201 = arith.constant 0 : index
    %752 = vector.load %arg6[%c0_200, %c0_201] : memref<32x32xbf16, #tpu.memory_space<vmem>>, vector<32x32xbf16>
    %cst_202 = arith.constant dense<0.000000e+00> : vector<16x32xf32>
    %753 = tpu.matmul %751, %752, %cst_202 {dimension_numbers = #tpu.dot_dimension_numbers<[1], [0], [0], [1], [0, 0, 1, 1], [], []>} : vector<16x32xbf16>, vector<32x32xbf16>, vector<16x32xf32> -> vector<16x32xf32>
    %754 = vector.broadcast %1 : vector<1x32xf32> to vector<16x32xf32>
    %755 = arith.addf %753, %754 : vector<16x32xf32>
    %756 = arith.addf %710, %755 : vector<16x32xf32>
    %cst_203 = arith.constant dense<0.000000e+00> : vector<16xf32>
    %757 = vector.multi_reduction <add>, %756, %cst_203 [1] : vector<16x32xf32> to vector<16xf32>
    %758 = vector.shape_cast %757 : vector<16xf32> to vector<16x1xf32>
    %cst_204 = arith.constant 3.200000e+01 : f32
    %759 = vector.broadcast %cst_204 : f32 to vector<16x1xf32>
    %760 = arith.divf %758, %759 : vector<16x1xf32>
    %761 = arith.mulf %756, %756 : vector<16x32xf32>
    %cst_205 = arith.constant dense<0.000000e+00> : vector<16xf32>
    %762 = vector.multi_reduction <add>, %761, %cst_205 [1] : vector<16x32xf32> to vector<16xf32>
    %763 = vector.shape_cast %762 : vector<16xf32> to vector<16x1xf32>
    %cst_206 = arith.constant 3.200000e+01 : f32
    %764 = vector.broadcast %cst_206 : f32 to vector<16x1xf32>
    %765 = arith.divf %763, %764 : vector<16x1xf32>
    %766 = arith.mulf %760, %760 : vector<16x1xf32>
    %767 = arith.subf %765, %766 : vector<16x1xf32>
    %768 = vector.broadcast %760 : vector<16x1xf32> to vector<16x32xf32>
    %769 = arith.subf %756, %768 : vector<16x32xf32>
    %cst_207 = arith.constant 9.99999974E-6 : f32
    %770 = vector.broadcast %cst_207 : f32 to vector<16x1xf32>
    %771 = arith.addf %767, %770 : vector<16x1xf32>
    %772 = math.rsqrt %771 : vector<16x1xf32>
    %773 = vector.broadcast %772 : vector<16x1xf32> to vector<16x32xf32>
    %774 = arith.mulf %769, %773 : vector<16x32xf32>
    %775 = vector.broadcast %5 : vector<1x32xf32> to vector<16x32xf32>
    %776 = arith.mulf %774, %775 : vector<16x32xf32>
    %777 = vector.broadcast %6 : vector<1x32xf32> to vector<16x32xf32>
    %778 = arith.addf %776, %777 : vector<16x32xf32>
    %779 = arith.truncf %778 : vector<16x32xf32> to vector<16x32xbf16>
    %c0_208 = arith.constant 0 : index
    %c0_209 = arith.constant 0 : index
    %780 = vector.load %arg8[%c0_208, %c0_209] : memref<32x32xbf16, #tpu.memory_space<vmem>>, vector<32x32xbf16>
    %cst_210 = arith.constant dense<0.000000e+00> : vector<16x32xf32>
    %781 = tpu.matmul %779, %780, %cst_210 {dimension_numbers = #tpu.dot_dimension_numbers<[1], [0], [0], [1], [0, 0, 1, 1], [], []>} : vector<16x32xbf16>, vector<32x32xbf16>, vector<16x32xf32> -> vector<16x32xf32>
    %782 = vector.broadcast %2 : vector<1x32xf32> to vector<16x32xf32>
    %783 = arith.addf %781, %782 : vector<16x32xf32>
    %784 = vector.extract_strided_slice %37 {offsets = [0, 0], sizes = [8, 32], strides = [1, 1]} : vector<16x32xf32> to vector<8x32xf32>
    %785 = vector.extract_strided_slice %37 {offsets = [0, 0], sizes = [8, 32], strides = [1, 1]} : vector<16x32xf32> to vector<8x32xf32>
    %786 = vector.extract_strided_slice %37 {offsets = [8, 0], sizes = [8, 32], strides = [1, 1]} : vector<16x32xf32> to vector<8x32xf32>
    %787 = vector.extract_strided_slice %37 {offsets = [8, 0], sizes = [8, 32], strides = [1, 1]} : vector<16x32xf32> to vector<8x32xf32>
    %788 = tpu.concatenate %784, %785, %786, %787 in 0 : vector<8x32xf32>, vector<8x32xf32>, vector<8x32xf32>, vector<8x32xf32> -> vector<32x32xf32>
    %789 = vector.extract_strided_slice %38 {offsets = [0, 0], sizes = [8, 32], strides = [1, 1]} : vector<16x32xf32> to vector<8x32xf32>
    %790 = vector.extract_strided_slice %38 {offsets = [0, 0], sizes = [8, 32], strides = [1, 1]} : vector<16x32xf32> to vector<8x32xf32>
    %791 = vector.extract_strided_slice %38 {offsets = [8, 0], sizes = [8, 32], strides = [1, 1]} : vector<16x32xf32> to vector<8x32xf32>
    %792 = vector.extract_strided_slice %38 {offsets = [8, 0], sizes = [8, 32], strides = [1, 1]} : vector<16x32xf32> to vector<8x32xf32>
    %793 = tpu.concatenate %789, %790, %791, %792 in 0 : vector<8x32xf32>, vector<8x32xf32>, vector<8x32xf32>, vector<8x32xf32> -> vector<32x32xf32>
    %794 = tpu.concatenate %783, %783 in 0 : vector<16x32xf32>, vector<16x32xf32> -> vector<32x32xf32>
    %795 = arith.mulf %794, %788 : vector<32x32xf32>
    %796 = arith.truncf %795 : vector<32x32xf32> to vector<32x32xbf16>
    %cst_211 = arith.constant dense<0.000000e+00> : vector<32x8xf32>
    %797 = tpu.matmul %796, %14, %cst_211 {dimension_numbers = #tpu.dot_dimension_numbers<[1], [0], [0], [1], [0, 0, 1, 1], [], []>} : vector<32x32xbf16>, vector<32x8xbf16>, vector<32x8xf32> -> vector<32x8xf32>
    %798 = vector.extract_strided_slice %797 {offsets = [0, 0], sizes = [16, 8], strides = [1, 1]} : vector<32x8xf32> to vector<16x8xf32>
    %799 = vector.extract_strided_slice %797 {offsets = [16, 0], sizes = [16, 8], strides = [1, 1]} : vector<32x8xf32> to vector<16x8xf32>
    %800 = arith.maximumf %798, %799 : vector<16x8xf32>
    %801 = tpu.concatenate %800, %800 in 0 : vector<16x8xf32>, vector<16x8xf32> -> vector<32x8xf32>
    %802 = arith.subf %797, %801 : vector<32x8xf32>
    %803 = math.exp %802 : vector<32x8xf32>
    %804 = vector.extract_strided_slice %803 {offsets = [0, 0], sizes = [16, 8], strides = [1, 1]} : vector<32x8xf32> to vector<16x8xf32>
    %805 = vector.extract_strided_slice %803 {offsets = [16, 0], sizes = [16, 8], strides = [1, 1]} : vector<32x8xf32> to vector<16x8xf32>
    %806 = arith.addf %804, %805 : vector<16x8xf32>
    %807 = tpu.reciprocal %806 {approx = true} : vector<16x8xf32> -> vector<16x8xf32>
    %808 = tpu.concatenate %807, %807 in 0 : vector<16x8xf32>, vector<16x8xf32> -> vector<32x8xf32>
    %809 = arith.mulf %803, %808 : vector<32x8xf32>
    %810 = arith.truncf %809 : vector<32x8xf32> to vector<32x8xbf16>
    %cst_212 = arith.constant dense<0.000000e+00> : vector<32x32xf32>
    %811 = tpu.matmul %810, %15, %cst_212 {dimension_numbers = #tpu.dot_dimension_numbers<[1], [0], [0], [1], [0, 0, 1, 1], [], []>} : vector<32x8xbf16>, vector<8x32xbf16>, vector<32x32xf32> -> vector<32x32xf32>
    %812 = arith.mulf %811, %793 : vector<32x32xf32>
    %813 = vector.extract_strided_slice %812 {offsets = [0, 0], sizes = [16, 32], strides = [1, 1]} : vector<32x32xf32> to vector<16x32xf32>
    %814 = vector.extract_strided_slice %812 {offsets = [16, 0], sizes = [16, 32], strides = [1, 1]} : vector<32x32xf32> to vector<16x32xf32>
    %815 = arith.addf %813, %814 : vector<16x32xf32>
    %816 = arith.truncf %815 : vector<16x32xf32> to vector<16x32xbf16>
    %c0_213 = arith.constant 0 : index
    %c0_214 = arith.constant 0 : index
    %817 = vector.load %arg12[%c0_213, %c0_214] : memref<32x32xbf16, #tpu.memory_space<vmem>>, vector<32x32xbf16>
    %cst_215 = arith.constant dense<0.000000e+00> : vector<16x32xf32>
    %818 = tpu.matmul %816, %817, %cst_215 {dimension_numbers = #tpu.dot_dimension_numbers<[1], [0], [0], [1], [0, 0, 1, 1], [], []>} : vector<16x32xbf16>, vector<32x32xbf16>, vector<16x32xf32> -> vector<16x32xf32>
    %819 = vector.broadcast %4 : vector<1x32xf32> to vector<16x32xf32>
    %820 = arith.addf %818, %819 : vector<16x32xf32>
    %821 = arith.addf %778, %820 : vector<16x32xf32>
    %cst_216 = arith.constant dense<0.000000e+00> : vector<16xf32>
    %822 = vector.multi_reduction <add>, %821, %cst_216 [1] : vector<16x32xf32> to vector<16xf32>
    %823 = vector.shape_cast %822 : vector<16xf32> to vector<16x1xf32>
    %cst_217 = arith.constant 3.200000e+01 : f32
    %824 = vector.broadcast %cst_217 : f32 to vector<16x1xf32>
    %825 = arith.divf %823, %824 : vector<16x1xf32>
    %826 = arith.mulf %821, %821 : vector<16x32xf32>
    %cst_218 = arith.constant dense<0.000000e+00> : vector<16xf32>
    %827 = vector.multi_reduction <add>, %826, %cst_218 [1] : vector<16x32xf32> to vector<16xf32>
    %828 = vector.shape_cast %827 : vector<16xf32> to vector<16x1xf32>
    %cst_219 = arith.constant 3.200000e+01 : f32
    %829 = vector.broadcast %cst_219 : f32 to vector<16x1xf32>
    %830 = arith.divf %828, %829 : vector<16x1xf32>
    %831 = arith.mulf %825, %825 : vector<16x1xf32>
    %832 = arith.subf %830, %831 : vector<16x1xf32>
    %833 = vector.broadcast %825 : vector<16x1xf32> to vector<16x32xf32>
    %834 = arith.subf %821, %833 : vector<16x32xf32>
    %cst_220 = arith.constant 9.99999974E-6 : f32
    %835 = vector.broadcast %cst_220 : f32 to vector<16x1xf32>
    %836 = arith.addf %832, %835 : vector<16x1xf32>
    %837 = math.rsqrt %836 : vector<16x1xf32>
    %838 = vector.broadcast %837 : vector<16x1xf32> to vector<16x32xf32>
    %839 = arith.mulf %834, %838 : vector<16x32xf32>
    %840 = vector.broadcast %7 : vector<1x32xf32> to vector<16x32xf32>
    %841 = arith.mulf %839, %840 : vector<16x32xf32>
    %842 = vector.broadcast %8 : vector<1x32xf32> to vector<16x32xf32>
    %843 = arith.addf %841, %842 : vector<16x32xf32>
    %844 = arith.truncf %843 : vector<16x32xf32> to vector<16x32xbf16>
    %c0_221 = arith.constant 0 : index
    %c0_222 = arith.constant 0 : index
    %845 = vector.load %arg20[%c0_221, %c0_222] : memref<32x64xbf16, #tpu.memory_space<vmem>>, vector<32x64xbf16>
    %cst_223 = arith.constant dense<0.000000e+00> : vector<16x64xf32>
    %846 = tpu.matmul %844, %845, %cst_223 {dimension_numbers = #tpu.dot_dimension_numbers<[1], [0], [0], [1], [0, 0, 1, 1], [], []>} : vector<16x32xbf16>, vector<32x64xbf16>, vector<16x64xf32> -> vector<16x64xf32>
    %847 = vector.broadcast %11 : vector<1x64xf32> to vector<16x64xf32>
    %848 = arith.addf %846, %847 : vector<16x64xf32>
    %cst_224 = arith.constant 0.000000e+00 : f32
    %849 = vector.broadcast %cst_224 : f32 to vector<16x64xf32>
    %850 = arith.maximumf %848, %849 : vector<16x64xf32>
    %851 = arith.truncf %850 : vector<16x64xf32> to vector<16x64xbf16>
    %c0_225 = arith.constant 0 : index
    %c0_226 = arith.constant 0 : index
    %852 = vector.load %arg22[%c0_225, %c0_226] : memref<64x32xbf16, #tpu.memory_space<vmem>>, vector<64x32xbf16>
    %cst_227 = arith.constant dense<0.000000e+00> : vector<16x32xf32>
    %853 = tpu.matmul %851, %852, %cst_227 {dimension_numbers = #tpu.dot_dimension_numbers<[1], [0], [0], [1], [0, 0, 1, 1], [], []>} : vector<16x64xbf16>, vector<64x32xbf16>, vector<16x32xf32> -> vector<16x32xf32>
    %854 = vector.broadcast %12 : vector<1x32xf32> to vector<16x32xf32>
    %855 = arith.addf %853, %854 : vector<16x32xf32>
    %856 = arith.addf %843, %855 : vector<16x32xf32>
    %cst_228 = arith.constant dense<0.000000e+00> : vector<16xf32>
    %857 = vector.multi_reduction <add>, %856, %cst_228 [1] : vector<16x32xf32> to vector<16xf32>
    %858 = vector.shape_cast %857 : vector<16xf32> to vector<16x1xf32>
    %cst_229 = arith.constant 3.200000e+01 : f32
    %859 = vector.broadcast %cst_229 : f32 to vector<16x1xf32>
    %860 = arith.divf %858, %859 : vector<16x1xf32>
    %861 = arith.mulf %856, %856 : vector<16x32xf32>
    %cst_230 = arith.constant dense<0.000000e+00> : vector<16xf32>
    %862 = vector.multi_reduction <add>, %861, %cst_230 [1] : vector<16x32xf32> to vector<16xf32>
    %863 = vector.shape_cast %862 : vector<16xf32> to vector<16x1xf32>
    %cst_231 = arith.constant 3.200000e+01 : f32
    %864 = vector.broadcast %cst_231 : f32 to vector<16x1xf32>
    %865 = arith.divf %863, %864 : vector<16x1xf32>
    %866 = arith.mulf %860, %860 : vector<16x1xf32>
    %867 = arith.subf %865, %866 : vector<16x1xf32>
    %868 = vector.broadcast %860 : vector<16x1xf32> to vector<16x32xf32>
    %869 = arith.subf %856, %868 : vector<16x32xf32>
    %cst_232 = arith.constant 9.99999974E-6 : f32
    %870 = vector.broadcast %cst_232 : f32 to vector<16x1xf32>
    %871 = arith.addf %867, %870 : vector<16x1xf32>
    %872 = math.rsqrt %871 : vector<16x1xf32>
    %873 = vector.broadcast %872 : vector<16x1xf32> to vector<16x32xf32>
    %874 = arith.mulf %869, %873 : vector<16x32xf32>
    %875 = vector.broadcast %9 : vector<1x32xf32> to vector<16x32xf32>
    %876 = arith.mulf %874, %875 : vector<16x32xf32>
    %877 = vector.broadcast %10 : vector<1x32xf32> to vector<16x32xf32>
    %878 = arith.addf %876, %877 : vector<16x32xf32>
    %c5_i32 = arith.constant 5 : i32
    %879 = arith.truncf %878 : vector<16x32xf32> to vector<16x32xbf16>
    %c0_233 = arith.constant 0 : index
    %c0_234 = arith.constant 0 : index
    %880 = vector.load %arg4[%c0_233, %c0_234] : memref<32x96xbf16, #tpu.memory_space<vmem>>, vector<32x96xbf16>
    %cst_235 = arith.constant dense<0.000000e+00> : vector<16x96xf32>
    %881 = tpu.matmul %879, %880, %cst_235 {dimension_numbers = #tpu.dot_dimension_numbers<[1], [0], [0], [1], [0, 0, 1, 1], [], []>} : vector<16x32xbf16>, vector<32x96xbf16>, vector<16x96xf32> -> vector<16x96xf32>
    %882 = vector.broadcast %0 : vector<1x96xf32> to vector<16x96xf32>
    %883 = arith.addf %881, %882 : vector<16x96xf32>
    %884 = vector.extract_strided_slice %883 {offsets = [0, 0], sizes = [16, 32], strides = [1, 1]} : vector<16x96xf32> to vector<16x32xf32>
    %885 = vector.extract_strided_slice %883 {offsets = [0, 32], sizes = [16, 32], strides = [1, 1]} : vector<16x96xf32> to vector<16x32xf32>
    %886 = vector.extract_strided_slice %883 {offsets = [0, 64], sizes = [16, 32], strides = [1, 1]} : vector<16x96xf32> to vector<16x32xf32>
    %887 = vector.extract_strided_slice %885 {offsets = [0, 0], sizes = [8, 32], strides = [1, 1]} : vector<16x32xf32> to vector<8x32xf32>
    %888 = vector.extract_strided_slice %885 {offsets = [0, 0], sizes = [8, 32], strides = [1, 1]} : vector<16x32xf32> to vector<8x32xf32>
    %889 = vector.extract_strided_slice %885 {offsets = [8, 0], sizes = [8, 32], strides = [1, 1]} : vector<16x32xf32> to vector<8x32xf32>
    %890 = vector.extract_strided_slice %885 {offsets = [8, 0], sizes = [8, 32], strides = [1, 1]} : vector<16x32xf32> to vector<8x32xf32>
    %891 = tpu.concatenate %887, %888, %889, %890 in 0 : vector<8x32xf32>, vector<8x32xf32>, vector<8x32xf32>, vector<8x32xf32> -> vector<32x32xf32>
    %892 = vector.extract_strided_slice %886 {offsets = [0, 0], sizes = [8, 32], strides = [1, 1]} : vector<16x32xf32> to vector<8x32xf32>
    %893 = vector.extract_strided_slice %886 {offsets = [0, 0], sizes = [8, 32], strides = [1, 1]} : vector<16x32xf32> to vector<8x32xf32>
    %894 = vector.extract_strided_slice %886 {offsets = [8, 0], sizes = [8, 32], strides = [1, 1]} : vector<16x32xf32> to vector<8x32xf32>
    %895 = vector.extract_strided_slice %886 {offsets = [8, 0], sizes = [8, 32], strides = [1, 1]} : vector<16x32xf32> to vector<8x32xf32>
    %896 = tpu.concatenate %892, %893, %894, %895 in 0 : vector<8x32xf32>, vector<8x32xf32>, vector<8x32xf32>, vector<8x32xf32> -> vector<32x32xf32>
    %897 = tpu.concatenate %884, %884 in 0 : vector<16x32xf32>, vector<16x32xf32> -> vector<32x32xf32>
    %898 = arith.mulf %897, %891 : vector<32x32xf32>
    %899 = arith.truncf %898 : vector<32x32xf32> to vector<32x32xbf16>
    %cst_236 = arith.constant dense<0.000000e+00> : vector<32x8xf32>
    %900 = tpu.matmul %899, %14, %cst_236 {dimension_numbers = #tpu.dot_dimension_numbers<[1], [0], [0], [1], [0, 0, 1, 1], [], []>} : vector<32x32xbf16>, vector<32x8xbf16>, vector<32x8xf32> -> vector<32x8xf32>
    %901 = vector.extract_strided_slice %900 {offsets = [0, 0], sizes = [16, 8], strides = [1, 1]} : vector<32x8xf32> to vector<16x8xf32>
    %902 = vector.extract_strided_slice %900 {offsets = [16, 0], sizes = [16, 8], strides = [1, 1]} : vector<32x8xf32> to vector<16x8xf32>
    %903 = arith.maximumf %901, %902 : vector<16x8xf32>
    %904 = tpu.concatenate %903, %903 in 0 : vector<16x8xf32>, vector<16x8xf32> -> vector<32x8xf32>
    %905 = arith.subf %900, %904 : vector<32x8xf32>
    %906 = math.exp %905 : vector<32x8xf32>
    %907 = vector.extract_strided_slice %906 {offsets = [0, 0], sizes = [16, 8], strides = [1, 1]} : vector<32x8xf32> to vector<16x8xf32>
    %908 = vector.extract_strided_slice %906 {offsets = [16, 0], sizes = [16, 8], strides = [1, 1]} : vector<32x8xf32> to vector<16x8xf32>
    %909 = arith.addf %907, %908 : vector<16x8xf32>
    %910 = tpu.reciprocal %909 {approx = true} : vector<16x8xf32> -> vector<16x8xf32>
    %911 = tpu.concatenate %910, %910 in 0 : vector<16x8xf32>, vector<16x8xf32> -> vector<32x8xf32>
    %912 = arith.mulf %906, %911 : vector<32x8xf32>
    %913 = arith.truncf %912 : vector<32x8xf32> to vector<32x8xbf16>
    %cst_237 = arith.constant dense<0.000000e+00> : vector<32x32xf32>
    %914 = tpu.matmul %913, %15, %cst_237 {dimension_numbers = #tpu.dot_dimension_numbers<[1], [0], [0], [1], [0, 0, 1, 1], [], []>} : vector<32x8xbf16>, vector<8x32xbf16>, vector<32x32xf32> -> vector<32x32xf32>
    %915 = arith.mulf %914, %896 : vector<32x32xf32>
    %916 = vector.extract_strided_slice %915 {offsets = [0, 0], sizes = [16, 32], strides = [1, 1]} : vector<32x32xf32> to vector<16x32xf32>
    %917 = vector.extract_strided_slice %915 {offsets = [16, 0], sizes = [16, 32], strides = [1, 1]} : vector<32x32xf32> to vector<16x32xf32>
    %918 = arith.addf %916, %917 : vector<16x32xf32>
    %919 = arith.truncf %918 : vector<16x32xf32> to vector<16x32xbf16>
    %c0_238 = arith.constant 0 : index
    %c0_239 = arith.constant 0 : index
    %920 = vector.load %arg6[%c0_238, %c0_239] : memref<32x32xbf16, #tpu.memory_space<vmem>>, vector<32x32xbf16>
    %cst_240 = arith.constant dense<0.000000e+00> : vector<16x32xf32>
    %921 = tpu.matmul %919, %920, %cst_240 {dimension_numbers = #tpu.dot_dimension_numbers<[1], [0], [0], [1], [0, 0, 1, 1], [], []>} : vector<16x32xbf16>, vector<32x32xbf16>, vector<16x32xf32> -> vector<16x32xf32>
    %922 = vector.broadcast %1 : vector<1x32xf32> to vector<16x32xf32>
    %923 = arith.addf %921, %922 : vector<16x32xf32>
    %924 = arith.addf %878, %923 : vector<16x32xf32>
    %cst_241 = arith.constant dense<0.000000e+00> : vector<16xf32>
    %925 = vector.multi_reduction <add>, %924, %cst_241 [1] : vector<16x32xf32> to vector<16xf32>
    %926 = vector.shape_cast %925 : vector<16xf32> to vector<16x1xf32>
    %cst_242 = arith.constant 3.200000e+01 : f32
    %927 = vector.broadcast %cst_242 : f32 to vector<16x1xf32>
    %928 = arith.divf %926, %927 : vector<16x1xf32>
    %929 = arith.mulf %924, %924 : vector<16x32xf32>
    %cst_243 = arith.constant dense<0.000000e+00> : vector<16xf32>
    %930 = vector.multi_reduction <add>, %929, %cst_243 [1] : vector<16x32xf32> to vector<16xf32>
    %931 = vector.shape_cast %930 : vector<16xf32> to vector<16x1xf32>
    %cst_244 = arith.constant 3.200000e+01 : f32
    %932 = vector.broadcast %cst_244 : f32 to vector<16x1xf32>
    %933 = arith.divf %931, %932 : vector<16x1xf32>
    %934 = arith.mulf %928, %928 : vector<16x1xf32>
    %935 = arith.subf %933, %934 : vector<16x1xf32>
    %936 = vector.broadcast %928 : vector<16x1xf32> to vector<16x32xf32>
    %937 = arith.subf %924, %936 : vector<16x32xf32>
    %cst_245 = arith.constant 9.99999974E-6 : f32
    %938 = vector.broadcast %cst_245 : f32 to vector<16x1xf32>
    %939 = arith.addf %935, %938 : vector<16x1xf32>
    %940 = math.rsqrt %939 : vector<16x1xf32>
    %941 = vector.broadcast %940 : vector<16x1xf32> to vector<16x32xf32>
    %942 = arith.mulf %937, %941 : vector<16x32xf32>
    %943 = vector.broadcast %5 : vector<1x32xf32> to vector<16x32xf32>
    %944 = arith.mulf %942, %943 : vector<16x32xf32>
    %945 = vector.broadcast %6 : vector<1x32xf32> to vector<16x32xf32>
    %946 = arith.addf %944, %945 : vector<16x32xf32>
    %947 = arith.truncf %946 : vector<16x32xf32> to vector<16x32xbf16>
    %c0_246 = arith.constant 0 : index
    %c0_247 = arith.constant 0 : index
    %948 = vector.load %arg8[%c0_246, %c0_247] : memref<32x32xbf16, #tpu.memory_space<vmem>>, vector<32x32xbf16>
    %cst_248 = arith.constant dense<0.000000e+00> : vector<16x32xf32>
    %949 = tpu.matmul %947, %948, %cst_248 {dimension_numbers = #tpu.dot_dimension_numbers<[1], [0], [0], [1], [0, 0, 1, 1], [], []>} : vector<16x32xbf16>, vector<32x32xbf16>, vector<16x32xf32> -> vector<16x32xf32>
    %950 = vector.broadcast %2 : vector<1x32xf32> to vector<16x32xf32>
    %951 = arith.addf %949, %950 : vector<16x32xf32>
    %952 = vector.extract_strided_slice %37 {offsets = [0, 0], sizes = [8, 32], strides = [1, 1]} : vector<16x32xf32> to vector<8x32xf32>
    %953 = vector.extract_strided_slice %37 {offsets = [0, 0], sizes = [8, 32], strides = [1, 1]} : vector<16x32xf32> to vector<8x32xf32>
    %954 = vector.extract_strided_slice %37 {offsets = [8, 0], sizes = [8, 32], strides = [1, 1]} : vector<16x32xf32> to vector<8x32xf32>
    %955 = vector.extract_strided_slice %37 {offsets = [8, 0], sizes = [8, 32], strides = [1, 1]} : vector<16x32xf32> to vector<8x32xf32>
    %956 = tpu.concatenate %952, %953, %954, %955 in 0 : vector<8x32xf32>, vector<8x32xf32>, vector<8x32xf32>, vector<8x32xf32> -> vector<32x32xf32>
    %957 = vector.extract_strided_slice %38 {offsets = [0, 0], sizes = [8, 32], strides = [1, 1]} : vector<16x32xf32> to vector<8x32xf32>
    %958 = vector.extract_strided_slice %38 {offsets = [0, 0], sizes = [8, 32], strides = [1, 1]} : vector<16x32xf32> to vector<8x32xf32>
    %959 = vector.extract_strided_slice %38 {offsets = [8, 0], sizes = [8, 32], strides = [1, 1]} : vector<16x32xf32> to vector<8x32xf32>
    %960 = vector.extract_strided_slice %38 {offsets = [8, 0], sizes = [8, 32], strides = [1, 1]} : vector<16x32xf32> to vector<8x32xf32>
    %961 = tpu.concatenate %957, %958, %959, %960 in 0 : vector<8x32xf32>, vector<8x32xf32>, vector<8x32xf32>, vector<8x32xf32> -> vector<32x32xf32>
    %962 = tpu.concatenate %951, %951 in 0 : vector<16x32xf32>, vector<16x32xf32> -> vector<32x32xf32>
    %963 = arith.mulf %962, %956 : vector<32x32xf32>
    %964 = arith.truncf %963 : vector<32x32xf32> to vector<32x32xbf16>
    %cst_249 = arith.constant dense<0.000000e+00> : vector<32x8xf32>
    %965 = tpu.matmul %964, %14, %cst_249 {dimension_numbers = #tpu.dot_dimension_numbers<[1], [0], [0], [1], [0, 0, 1, 1], [], []>} : vector<32x32xbf16>, vector<32x8xbf16>, vector<32x8xf32> -> vector<32x8xf32>
    %966 = vector.extract_strided_slice %965 {offsets = [0, 0], sizes = [16, 8], strides = [1, 1]} : vector<32x8xf32> to vector<16x8xf32>
    %967 = vector.extract_strided_slice %965 {offsets = [16, 0], sizes = [16, 8], strides = [1, 1]} : vector<32x8xf32> to vector<16x8xf32>
    %968 = arith.maximumf %966, %967 : vector<16x8xf32>
    %969 = tpu.concatenate %968, %968 in 0 : vector<16x8xf32>, vector<16x8xf32> -> vector<32x8xf32>
    %970 = arith.subf %965, %969 : vector<32x8xf32>
    %971 = math.exp %970 : vector<32x8xf32>
    %972 = vector.extract_strided_slice %971 {offsets = [0, 0], sizes = [16, 8], strides = [1, 1]} : vector<32x8xf32> to vector<16x8xf32>
    %973 = vector.extract_strided_slice %971 {offsets = [16, 0], sizes = [16, 8], strides = [1, 1]} : vector<32x8xf32> to vector<16x8xf32>
    %974 = arith.addf %972, %973 : vector<16x8xf32>
    %975 = tpu.reciprocal %974 {approx = true} : vector<16x8xf32> -> vector<16x8xf32>
    %976 = tpu.concatenate %975, %975 in 0 : vector<16x8xf32>, vector<16x8xf32> -> vector<32x8xf32>
    %977 = arith.mulf %971, %976 : vector<32x8xf32>
    %978 = arith.truncf %977 : vector<32x8xf32> to vector<32x8xbf16>
    %cst_250 = arith.constant dense<0.000000e+00> : vector<32x32xf32>
    %979 = tpu.matmul %978, %15, %cst_250 {dimension_numbers = #tpu.dot_dimension_numbers<[1], [0], [0], [1], [0, 0, 1, 1], [], []>} : vector<32x8xbf16>, vector<8x32xbf16>, vector<32x32xf32> -> vector<32x32xf32>
    %980 = arith.mulf %979, %961 : vector<32x32xf32>
    %981 = vector.extract_strided_slice %980 {offsets = [0, 0], sizes = [16, 32], strides = [1, 1]} : vector<32x32xf32> to vector<16x32xf32>
    %982 = vector.extract_strided_slice %980 {offsets = [16, 0], sizes = [16, 32], strides = [1, 1]} : vector<32x32xf32> to vector<16x32xf32>
    %983 = arith.addf %981, %982 : vector<16x32xf32>
    %984 = arith.truncf %983 : vector<16x32xf32> to vector<16x32xbf16>
    %c0_251 = arith.constant 0 : index
    %c0_252 = arith.constant 0 : index
    %985 = vector.load %arg12[%c0_251, %c0_252] : memref<32x32xbf16, #tpu.memory_space<vmem>>, vector<32x32xbf16>
    %cst_253 = arith.constant dense<0.000000e+00> : vector<16x32xf32>
    %986 = tpu.matmul %984, %985, %cst_253 {dimension_numbers = #tpu.dot_dimension_numbers<[1], [0], [0], [1], [0, 0, 1, 1], [], []>} : vector<16x32xbf16>, vector<32x32xbf16>, vector<16x32xf32> -> vector<16x32xf32>
    %987 = vector.broadcast %4 : vector<1x32xf32> to vector<16x32xf32>
    %988 = arith.addf %986, %987 : vector<16x32xf32>
    %989 = arith.addf %946, %988 : vector<16x32xf32>
    %cst_254 = arith.constant dense<0.000000e+00> : vector<16xf32>
    %990 = vector.multi_reduction <add>, %989, %cst_254 [1] : vector<16x32xf32> to vector<16xf32>
    %991 = vector.shape_cast %990 : vector<16xf32> to vector<16x1xf32>
    %cst_255 = arith.constant 3.200000e+01 : f32
    %992 = vector.broadcast %cst_255 : f32 to vector<16x1xf32>
    %993 = arith.divf %991, %992 : vector<16x1xf32>
    %994 = arith.mulf %989, %989 : vector<16x32xf32>
    %cst_256 = arith.constant dense<0.000000e+00> : vector<16xf32>
    %995 = vector.multi_reduction <add>, %994, %cst_256 [1] : vector<16x32xf32> to vector<16xf32>
    %996 = vector.shape_cast %995 : vector<16xf32> to vector<16x1xf32>
    %cst_257 = arith.constant 3.200000e+01 : f32
    %997 = vector.broadcast %cst_257 : f32 to vector<16x1xf32>
    %998 = arith.divf %996, %997 : vector<16x1xf32>
    %999 = arith.mulf %993, %993 : vector<16x1xf32>
    %1000 = arith.subf %998, %999 : vector<16x1xf32>
    %1001 = vector.broadcast %993 : vector<16x1xf32> to vector<16x32xf32>
    %1002 = arith.subf %989, %1001 : vector<16x32xf32>
    %cst_258 = arith.constant 9.99999974E-6 : f32
    %1003 = vector.broadcast %cst_258 : f32 to vector<16x1xf32>
    %1004 = arith.addf %1000, %1003 : vector<16x1xf32>
    %1005 = math.rsqrt %1004 : vector<16x1xf32>
    %1006 = vector.broadcast %1005 : vector<16x1xf32> to vector<16x32xf32>
    %1007 = arith.mulf %1002, %1006 : vector<16x32xf32>
    %1008 = vector.broadcast %7 : vector<1x32xf32> to vector<16x32xf32>
    %1009 = arith.mulf %1007, %1008 : vector<16x32xf32>
    %1010 = vector.broadcast %8 : vector<1x32xf32> to vector<16x32xf32>
    %1011 = arith.addf %1009, %1010 : vector<16x32xf32>
    %1012 = arith.truncf %1011 : vector<16x32xf32> to vector<16x32xbf16>
    %c0_259 = arith.constant 0 : index
    %c0_260 = arith.constant 0 : index
    %1013 = vector.load %arg20[%c0_259, %c0_260] : memref<32x64xbf16, #tpu.memory_space<vmem>>, vector<32x64xbf16>
    %cst_261 = arith.constant dense<0.000000e+00> : vector<16x64xf32>
    %1014 = tpu.matmul %1012, %1013, %cst_261 {dimension_numbers = #tpu.dot_dimension_numbers<[1], [0], [0], [1], [0, 0, 1, 1], [], []>} : vector<16x32xbf16>, vector<32x64xbf16>, vector<16x64xf32> -> vector<16x64xf32>
    %1015 = vector.broadcast %11 : vector<1x64xf32> to vector<16x64xf32>
    %1016 = arith.addf %1014, %1015 : vector<16x64xf32>
    %cst_262 = arith.constant 0.000000e+00 : f32
    %1017 = vector.broadcast %cst_262 : f32 to vector<16x64xf32>
    %1018 = arith.maximumf %1016, %1017 : vector<16x64xf32>
    %1019 = arith.truncf %1018 : vector<16x64xf32> to vector<16x64xbf16>
    %c0_263 = arith.constant 0 : index
    %c0_264 = arith.constant 0 : index
    %1020 = vector.load %arg22[%c0_263, %c0_264] : memref<64x32xbf16, #tpu.memory_space<vmem>>, vector<64x32xbf16>
    %cst_265 = arith.constant dense<0.000000e+00> : vector<16x32xf32>
    %1021 = tpu.matmul %1019, %1020, %cst_265 {dimension_numbers = #tpu.dot_dimension_numbers<[1], [0], [0], [1], [0, 0, 1, 1], [], []>} : vector<16x64xbf16>, vector<64x32xbf16>, vector<16x32xf32> -> vector<16x32xf32>
    %1022 = vector.broadcast %12 : vector<1x32xf32> to vector<16x32xf32>
    %1023 = arith.addf %1021, %1022 : vector<16x32xf32>
    %1024 = arith.addf %1011, %1023 : vector<16x32xf32>
    %cst_266 = arith.constant dense<0.000000e+00> : vector<16xf32>
    %1025 = vector.multi_reduction <add>, %1024, %cst_266 [1] : vector<16x32xf32> to vector<16xf32>
    %1026 = vector.shape_cast %1025 : vector<16xf32> to vector<16x1xf32>
    %cst_267 = arith.constant 3.200000e+01 : f32
    %1027 = vector.broadcast %cst_267 : f32 to vector<16x1xf32>
    %1028 = arith.divf %1026, %1027 : vector<16x1xf32>
    %1029 = arith.mulf %1024, %1024 : vector<16x32xf32>
    %cst_268 = arith.constant dense<0.000000e+00> : vector<16xf32>
    %1030 = vector.multi_reduction <add>, %1029, %cst_268 [1] : vector<16x32xf32> to vector<16xf32>
    %1031 = vector.shape_cast %1030 : vector<16xf32> to vector<16x1xf32>
    %cst_269 = arith.constant 3.200000e+01 : f32
    %1032 = vector.broadcast %cst_269 : f32 to vector<16x1xf32>
    %1033 = arith.divf %1031, %1032 : vector<16x1xf32>
    %1034 = arith.mulf %1028, %1028 : vector<16x1xf32>
    %1035 = arith.subf %1033, %1034 : vector<16x1xf32>
    %1036 = vector.broadcast %1028 : vector<16x1xf32> to vector<16x32xf32>
    %1037 = arith.subf %1024, %1036 : vector<16x32xf32>
    %cst_270 = arith.constant 9.99999974E-6 : f32
    %1038 = vector.broadcast %cst_270 : f32 to vector<16x1xf32>
    %1039 = arith.addf %1035, %1038 : vector<16x1xf32>
    %1040 = math.rsqrt %1039 : vector<16x1xf32>
    %1041 = vector.broadcast %1040 : vector<16x1xf32> to vector<16x32xf32>
    %1042 = arith.mulf %1037, %1041 : vector<16x32xf32>
    %1043 = vector.broadcast %9 : vector<1x32xf32> to vector<16x32xf32>
    %1044 = arith.mulf %1042, %1043 : vector<16x32xf32>
    %1045 = vector.broadcast %10 : vector<1x32xf32> to vector<16x32xf32>
    %1046 = arith.addf %1044, %1045 : vector<16x32xf32>
    %1047 = arith.truncf %1046 : vector<16x32xf32> to vector<16x32xbf16>
    %c0_271 = arith.constant 0 : index
    %c0_272 = arith.constant 0 : index
    %1048 = vector.load %arg24[%c0_271, %c0_272] : memref<32x128xbf16, #tpu.memory_space<vmem>>, vector<32x128xbf16>
    %cst_273 = arith.constant dense<0.000000e+00> : vector<16x128xf32>
    %1049 = tpu.matmul %1047, %1048, %cst_273 {dimension_numbers = #tpu.dot_dimension_numbers<[1], [0], [0], [1], [0, 0, 1, 1], [], []>} : vector<16x32xbf16>, vector<32x128xbf16>, vector<16x128xf32> -> vector<16x128xf32>
    %1050 = vector.broadcast %13 : vector<1x128xf32> to vector<16x128xf32>
    %1051 = arith.addf %1049, %1050 : vector<16x128xf32>
    %c0_274 = arith.constant 0 : index
    %c0_275 = arith.constant 0 : index
    %1052 = vector.load %arg28[%c0_274, %c0_275] : memref<16x128xf32, #tpu.memory_space<vmem>>, vector<16x128xf32>
    tpu.vector_store %arg28[%c0_274, %c0_275], %1051 {strides = array<i32>} : memref<16x128xf32, #tpu.memory_space<vmem>>, vector<16x128xf32>,
    return
  }
}

</mosaic_0001>

<bundles_post_ra>
// kernel: forward.1
= control target key start
LH: loop header
LB: loop body
LE: loop exit
PB: predicated region body
PF: predicated region fallthrough
CT: control target
= control target key end

     0   :  { %s5081_s0 = inlined_call_operand.vmem [shape: s32[16,1], index: 0, kind: input, shape index: {}]   ;;  %s5082_s1 = inlined_call_operand.vmem [shape: s32[16,1], index: 1, kind: input, shape index: {}]   ;;  %s5083_s2 = inlined_call_operand.vmem [shape: f32[128,32], index: 2, kind: input, shape index: {}]   ;;  %s5084_s3 = inlined_call_operand.vmem [shape: f32[16,32], index: 3, kind: input, shape index: {}]   ;;  %s5085_s4 = inlined_call_operand.vmem [shape: bf16[32,96], index: 4, kind: input, shape index: {}]   ;;  %s5086_s5 = inlined_call_operand.vmem [shape: f32[1,96], index: 5, kind: input, shape index: {}]   ;;  %s5087_s6 = inlined_call_operand.vmem [shape: bf16[32,32], index: 6, kind: input, shape index: {}]   ;;  %s5088_s7 = inlined_call_operand.vmem [shape: f32[1,32], index: 7, kind: input, shape index: {}]   ;;  %s5089_s8 = inlined_call_operand.vmem [shape: bf16[32,32], index: 8, kind: input, shape index: {}]   ;;  %s5090_s9 = inlined_call_operand.vmem [shape: f32[1,32], index: 9, kind: input, shape index: {}]   ;;  %s5091_s10 = inlined_call_operand.vmem [shape: bf16[32,64], index: 10, kind: input, shape index: {}]   ;;  %s5092_s11 = inlined_call_operand.vmem [shape: f32[1,64], index: 11, kind: input, shape index: {}]   ;;  %s5093_s12 = inlined_call_operand.vmem [shape: bf16[32,32], index: 12, kind: input, shape index: {}]   ;;  %s5094_s13 = inlined_call_operand.vmem [shape: f32[1,32], index: 13, kind: input, shape index: {}]   ;;  %s5095_s14 = inlined_call_operand.vmem [shape: f32[1,32], index: 14, kind: input, shape index: {}]   ;;  %s5096_s15 = inlined_call_operand.vmem [shape: f32[1,32], index: 15, kind: input, shape index: {}]   ;;  %s5097_s16 = inlined_call_operand.vmem [shape: f32[1,32], index: 16, kind: input, shape index: {}]   ;;  %s5098_s17 = inlined_call_operand.vmem [shape: f32[1,32], index: 17, kind: input, shape index: {}]   ;;  %s5099_s18 = inlined_call_operand.vmem [shape: f32[1,32], index: 18, kind: input, shape index: {}]   ;;  %s5100_s19 = inlined_call_operand.vmem [shape: f32[1,32], index: 19, kind: input, shape index: {}]   ;;  %s5101_s20 = inlined_call_operand.vmem [shape: bf16[32,64], index: 20, kind: input, shape index: {}]   ;;  %s5102_s21 = inlined_call_operand.vmem [shape: f32[1,64], index: 21, kind: input, shape index: {}]   ;;  %s5103_s22 = inlined_call_operand.vmem [shape: bf16[64,32], index: 22, kind: input, shape index: {}]   ;;  %s5104_s23 = inlined_call_operand.vmem [shape: f32[1,32], index: 23, kind: input, shape index: {}]   ;;  %s5105_s24 = inlined_call_operand.vmem [shape: bf16[32,128], index: 24, kind: input, shape index: {}]   ;;  %s5106_s25 = inlined_call_operand.vmem [shape: f32[1,128], index: 25, kind: input, shape index: {}]   ;;  %s5107_s26 = inlined_call_operand.vmem [shape: bf16[32,8], index: 26, kind: input, shape index: {}]   ;;  %s5108_s27 = inlined_call_operand.vmem [shape: bf16[8,32], index: 27, kind: input, shape index: {}]   ;;  %s5109_s28 = inlined_call_operand.hbm [shape: f32[16,128], index: 28, kind: output, shape index: {}]  }
   0x1   :  { %5123 = sst [smem:[#allocation5_spill]] %s5081_s0 }
   0x2   :  { %5124 = sst [smem:[#allocation6_spill]] %s5082_s1 }
   0x3   :  { %5125 = sst [smem:[#allocation7_spill]] %s5083_s2 }
   0x4   :  { %5126 = sst [smem:[#allocation8_spill]] %s5084_s3 }
   0x5   :  { %5127 = sst [smem:[#allocation9_spill]] %s5085_s4 }
   0x6   :  { %5128 = sst [smem:[#allocation10_spill]] %s5086_s5 }
   0x7   :  { %5129 = sst [smem:[#allocation11_spill]] %s5087_s6 }
   0x8   :  { %5130 = sst [smem:[#allocation12_spill]] %s5088_s7 }
   0x9   :  { %5131 = sst [smem:[#allocation13_spill]] %s5089_s8 }
   0xa   :  { %5132 = sst [smem:[#allocation14_spill]] %s5090_s9 }
   0xb   :  { %5133 = sst [smem:[#allocation15_spill]] %s5091_s10 }
   0xc   :  { %5134 = sst [smem:[#allocation16_spill]] %s5092_s11 }
   0xd   :  { %5135 = sst [smem:[#allocation17_spill]] %s5093_s12 }
   0xe   :  { %5136 = sst [smem:[#allocation18_spill]] %s5100_s19 }
   0xf   :  { %s5137_s9 = sld [smem:[#allocation5_spill]]  ;;  %v3746_v2 = vmov 0  }
  0x10   :  { %s5138_s19 = sld [smem:[#allocation7_spill]]  ;;  %3430 = vset.pattern.permute.xlu0 %v3746_v2  ;;  %3431 = vset.pattern.permute.xlu1 %v3746_v2 }
  0x15   :  { %v128_v0 = vld [vmem:[%s5137_s9] sm:$0xff]  ;;  %v129_v6 = vld [vmem:[%s5137_s9 + $0x8] sm:$0xff] }
  0x16   :  { %v125_v1 = vld [vmem:[%s5138_s19 + $0x78] sm:$0xff]  ;;  %v124_v3 = vld [vmem:[%s5138_s19 + $0x70] sm:$0xff]  ;;  %131 = vperm.xlu0 %3430, %v128_v0   ;;  %v123_v4 = vld [vmem:[%s5138_s19 + $0x68] sm:$0xff] }
  0x17   :  { %144 = vmatpush.msra.mxu0 %v125_v1  ;;  %181 = vmatpush.msra.mxu1 %v125_v1  ;;  %v122_v5 = vld [vmem:[%s5138_s19 + $0x60] sm:$0xff]  ;;  %v121_v7 = vld [vmem:[%s5138_s19 + $0x58] sm:$0xff]  ;;  %v120_v8 = vld [vmem:[%s5138_s19 + $0x50] sm:$0xff] }
  0x18   :  { %v119_v9 = vld [vmem:[%s5138_s19 + $0x48] sm:$0xff] }
  0x19   :  { %145 = vmatpush.msra.mxu0 %v124_v3  ;;  %182 = vmatpush.msra.mxu1 %v124_v3 }
  0x1b   :  { %146 = vmatpush.msra.mxu0 %v123_v4  ;;  %183 = vmatpush.msra.mxu1 %v123_v4 }
  0x1d   :  { %147 = vmatpush.msra.mxu0 %v122_v5  ;;  %184 = vmatpush.msra.mxu1 %v122_v5 }
  0x1e   :  { %134 = vperm.xlu0 %3430, %v129_v6  }
  0x1f   :  { %148 = vmatpush.msra.mxu0 %v121_v7 }
  0x20   :  { %33 = vsyncpa [#allocation3], 0  ;;  %185 = vmatpush.msra.mxu1 %v121_v7  ;;  %v118_v10 = vld [vmem:[%s5138_s19 + $0x40] sm:$0xff]  ;;  %v117_v11 = vld [vmem:[%s5138_s19 + $0x38] sm:$0xff]  ;;  %s5139_s29 = sld [smem:[#allocation6_spill]]  ;;  %v126_v21 = vlaneseq  ;;  %v3747_v24 = vmov 1.0  }
  0x21   :  { %149 = vmatpush.msra.mxu0 %v120_v8  ;;  %v116_v12 = vld [vmem:[%s5138_s19 + $0x30] sm:$0xff]  ;;  %v115_v13 = vld [vmem:[%s5138_s19 + $0x28] sm:$0xff]  ;;  %v114_v14 = vld [vmem:[%s5138_s19 + $0x20] sm:$0xff]  ;;  %s5140_s1 = sld [smem:[#allocation9_spill]]  ;;  %vm224_vm4 = vcmask 261120   ;;  %s3749_s9 = smov 96  }
  0x22   :  { %186 = vmatpush.msra.mxu1 %v120_v8  ;;  %v113_v15 = vld [vmem:[%s5138_s19 + $0x18] sm:$0xff]  ;;  %v112_v16 = vld [vmem:[%s5138_s19 + $0x10] sm:$0xff]  ;;  %v111_v17 = vld [vmem:[%s5138_s19 + $0x8] sm:$0xff]  ;;  %v127_v22 = vand.u32 127, %v126_v21  ;;  %s5141_s3 = sld [smem:[#allocation8_spill]]  ;;  %vm361_vm5 = vcmask 1043456  }
  0x23   :  { %150 = vmatpush.msra.mxu0 %v119_v9  ;;  %v110_v18 = vld [vmem:[%s5138_s19] sm:$0xff]  ;;  %s5142_s11 = sld [smem:[#allocation15_spill]]  ;;  %v3993_v40 = vld [vmem:[%s5107_s26 + $0x8] sm:$0xff]  ;;  %vm354_vm6 = vcmask 64512   ;;  %s3751_s7 = smov [#allocation2]  }
  0x24   :  { %187 = vmatpush.msra.mxu1 %v119_v9  ;;  %v3999_v42 = vld [vmem:[%s5107_s26] sm:$0xff]  ;;  %s5143_s30 = sld [smem:[#allocation10_spill]]  ;;  %s3752_s4 = smov 128  }
  0x25   :  { %151 = vmatpush.msra.mxu0 %v118_v10  ;;  %v109_v61 = vld [vmem:[%s5108_s27] sm:$0xf]  ;;  %s5145_s12 = sld [smem:[#allocation12_spill]] }
  0x26   :  { %188 = vmatpush.msra.mxu1 %v118_v10  ;;  %v167_v19 = vld [vmem:[%s5139_s29] sm:$0xff]  ;;  %v168_v20 = vld [vmem:[%s5139_s29 + $0x8] sm:$0xff]  ;;  %v4027_v62 = vsel %vm361_vm5, %v109_v61, 0  ;;  %s5146_s5 = sld [smem:[#allocation16_spill]]  ;;  %vm803_vm5 = vcmask 523264  }
  0x27   :  { %152 = vmatpush.msra.mxu0 %v117_v11  ;;  %170 = vperm.xlu1 %3431, %v167_v19   ;;  %v3962_v26 = vld [vmem:[%s5140_s1 + $0x8] sm:$0xff]  ;;  %v3968_v27 = vld [vmem:[%s5140_s1] sm:$0xff]  ;;  %s5147_s27 = sld [smem:[#allocation13_spill]] }
  0x28   :  { %189 = vmatpush.msra.mxu1 %v117_v11  ;;  %271 = vmatpush.bf16.msra.mxu3 %v3962_v26  ;;  %v142_v31 = vld [vmem:[%s5141_s3] sm:$0xff]  ;;  %v143_v32 = vld [vmem:[%s5141_s3 + $0x8] sm:$0xff]  ;;  %s3748_s3 = smov 64   ;;  %s5148_s6 = sld [smem:[#allocation14_spill]] }
  0x29   :  { %153 = vmatpush.msra.mxu0 %v116_v12  ;;  %v3405_v38 = vld [vmem:[%s5142_s11 + $0x8] sm:$0xff]  ;;  %v3404_v39 = vld [vmem:[%s5142_s11] sm:$0xff]  ;;  %s5144_s11 = sld [smem:[#allocation11_spill]] }
  0x2a   :  { %190 = vmatpush.msra.mxu1 %v116_v12  ;;  %234 = vmatpush.bf16.msra.mxu2 %v3405_v38  ;;  %v4008_v44 = vld [vmem:[%s5143_s30] ss:$0 sm:$0xff]  ;;  %s5149_s29 = sld [smem:[#allocation17_spill]] }
  0x2b   :  { %154 = vmatpush.msra.mxu0 %v115_v13  ;;  %s5150_s8 = sld [smem:[#allocation18_spill]] }
  0x2c   :  { %191 = vmatpush.msra.mxu1 %v115_v13  ;;  %272 = vmatpush.bf16.msra.mxu3 %v3968_v27  ;;  %v3433_v61 = vld [vmem:[%s5146_s5] ss:$0 sm:$0xff] }
  0x2d   :  { %155 = vmatpush.msra.mxu0 %v114_v14 }
  0x2e   :  { %192 = vmatpush.msra.mxu1 %v114_v14  ;;  %235 = vmatpush.bf16.msra.mxu2 %v3404_v39 }
  0x2f   :  { %156 = vmatpush.msra.mxu0 %v113_v15  ;;  %173 = vperm.xlu1 %3431, %v168_v20  }
  0x30   :  { %193 = vmatpush.msra.mxu1 %v113_v15  ;;  %372 = vmatpush.bf16.msrb.mxu3 %v4027_v62 }
  0x31   :  { %157 = vmatpush.msra.mxu0 %v112_v16 }
  0x32   :  { %194 = vmatpush.msra.mxu1 %v112_v16  ;;  %317 = vmatpush.bf16.msrb.mxu2 %v3993_v40 }
  0x33   :  { %158 = vmatpush.msra.mxu0 %v111_v17 }
  0x34   :  { %195 = vmatpush.msra.mxu1 %v111_v17 }
  0x35   :  { %159 = vmatpush.msra.mxu0 %v110_v18 }
  0x36   :  { %196 = vmatpush.msra.mxu1 %v110_v18  ;;  %318 = vmatpush.bf16.msrb.mxu2 %v3999_v42 }
  0x88   :  { %v132_v23 = vpop.permute.xlu0 %131 }
  0x89   :  { %vm136_vm0 = vcmp.eq.s32.totalorder %v127_v22, %v132_v23 }
  0x8a   :  { %3230 = vmatmul.msk.f32.vlgmr.msra.gmra.mxu0 %vm136_vm0, %v3747_v24 }
  0x90   :  { %v135_v25 = vpop.permute.xlu0 %134 }
  0x91   :  { %vm137_vm1 = vcmp.eq.s32.totalorder %v127_v22, %v135_v25  ;;  %v4037_v25 = vld [vmem:[%s5144_s11 + $0x8] sm:$0xff] }
  0x92   :  { %3231 = vmatmul.msk.f32.gmra.mxu0 %vm137_vm1, %v3747_v24 }
  0x93   :  { %425 = vmatpush.bf16.msrb.mxu0 %v4037_v25 }
  0x99   :  { %v171_v28 = vpop.permute.xlu1 %170 }
  0x9a   :  { %vm175_vm2 = vcmp.eq.s32.totalorder %v127_v22, %v171_v28  ;;  %v4043_v28 = vld [vmem:[%s5144_s11] sm:$0xff] }
  0x9b   :  { %3234 = vmatmul.msk.f32.vlgmr.msra.gmra.mxu1 %vm175_vm2, %v3747_v24  ;;  %426 = vmatpush.bf16.msrb.mxu0 %v4043_v28 }
  0xa1   :  { %v174_v29 = vpop.permute.xlu1 %173 }
  0xa2   :  { %vm176_vm3 = vcmp.eq.s32.totalorder %v127_v22, %v174_v29 }
  0xa3   :  { %3235 = vmatmul.msk.f32.gmra.mxu1 %vm176_vm3, %v3747_v24 }
 0x107   :  { %v161_v30 = vpop.f32.mrf.mxu0 }
 0x108   :  { %v3977_v34 = vadd.f32 %v161_v30, %v142_v31 }
 0x10f   :  { %v164_v33 = vpop.f32.mrf.mxu0 }
 0x110   :  { %v3979_v35 = vadd.f32 %v164_v33, %v143_v32 }
 0x112   :  { %v242_v36 = vpack.c.bf16 %v3979_v35, %v3977_v34 }
 0x114   :  { %3253 = vmatmul.msk.bf16.vlgmr.msra.gmra.mxu3 %vm224_vm4, %v242_v36 }
 0x115   :  { %605 = vmatpush.bf16.msra.mxu3 %v4027_v62 }
 0x118   :  { %v198_v37 = vpop.f32.mrf.mxu1 }
 0x120   :  { %v201_v41 = vpop.f32.mrf.mxu1 }
 0x121   :  { %v204_v43 = vpack.c.bf16 %v201_v41, %v198_v37 }
 0x123   :  { %3244 = vmatmul.msk.bf16.vlgmr.msra.gmra.mxu2 %vm224_vm4, %v204_v43 }
 0x124   :  { %555 = vmatpush.bf16.msra.mxu2 %v3993_v40 }
 0x128   :  { %556 = vmatpush.bf16.msra.mxu2 %v3999_v42 }
 0x197   :  { %v274_v45 = vpop.f32.mrf.mxu3 }
 0x198   :  { %v275_v46 = vadd.f32 %v4008_v44, %v274_v45 }
 0x19a   :  { %384 = vrot.lane.b32.xlu0 %v275_v46, %s3748_s3  ;;  %281 = vrot.lane.b32.xlu2 %v275_v46, %s3749_s9 }
 0x19f   :  { %v276_v47 = vpop.f32.mrf.mxu3 }
 0x1a0   :  { %v277_v48 = vadd.f32 %v4008_v44, %v276_v47  ;;  %v4050_v47 = vld [vmem:[%s5145_s12] ss:$0 sm:$0xff] }
 0x1a2   :  { %386 = vrot.lane.b32.xlu1 %v277_v48, %s3748_s3  ;;  %283 = vrot.lane.b32.xlu2 %v277_v48, %s3749_s9 }
 0x1a6   :  { %v4020_v57 = vpop.f32.mrf.mxu2 }
 0x1ae   :  { %v4022_v58 = vpop.f32.mrf.mxu2 }
 0x1f4   :  { %v282_v49 = vpop.permute.xlu2 %281 }
 0x1f5   :  { %v287_v50 = vmul.f32 %v282_v49, %v275_v46  ;;  %v288_v51 = vmul.f32 %v282_v49, %v277_v48 }
 0x1f7   :  { %v291_v52 = vpack.c.bf16 %v288_v51, %v287_v50 }
 0x1f9   :  { %3262 = vmatmul.msk.bf16.vlgmr.msrb.gmra.mxu2 %vm224_vm4, %v291_v52 }
 0x1fa   :  { %925 = vmatpush.bf16.msrb.mxu2 %v3993_v40 }
 0x1fc   :  { %v284_v53 = vpop.permute.xlu2 %283 }
 0x1fd   :  { %v289_v54 = vmul.f32 %v284_v53, %v275_v46  ;;  %v290_v55 = vmul.f32 %v284_v53, %v277_v48 }
 0x1fe   :  { %926 = vmatpush.bf16.msrb.mxu2 %v3999_v42 }
 0x1ff   :  { %v292_v56 = vpack.c.bf16 %v290_v55, %v289_v54 }
 0x209   :  { %3263 = vmatmul.msk.bf16.gmra.mxu2 %vm224_vm4, %v292_v56 }
 0x20c   :  { %v385_v36 = vpop.permute.xlu0 %384 }
 0x214   :  { %v387_v32 = vpop.permute.xlu1 %386 }
 0x27c   :  { %v320_v59 = vpop.f32.mrf.mxu2 }
 0x284   :  { %v322_v60 = vpop.f32.mrf.mxu2 }
 0x28c   :  { %v325_v63 = vpop.f32.mrf.mxu2 }
 0x28d   :  { %v330_v0 = vmax.f32 %v320_v59, %v325_v63 }
 0x28f   :  { %v332_v1 = vsub.f32 %v320_v59, %v330_v0  ;;  %v334_v2 = vsub.f32 %v325_v63, %v330_v0  ;;  %v4074_v63 = vadd.f32 %v3433_v61, %v4022_v58  ;;  %v3750_v0 = vmov 32.0  }
 0x291   :  { %v336_v3 = vmul.f32 1.442695, %v332_v1  ;;  %v340_v4 = vmul.f32 1.442695, %v334_v2 }
 0x293   :  { %3446 = vpow2.f32 %v336_v3 }
 0x294   :  { %v327_v5 = vpop.f32.mrf.mxu2  ;;  %3448 = vpow2.f32 %v340_v4 }
 0x295   :  { %v331_v6 = vmax.f32 %v322_v60, %v327_v5 }
 0x297   :  { %v333_v7 = vsub.f32 %v322_v60, %v331_v6  ;;  %v335_v8 = vsub.f32 %v327_v5, %v331_v6 }
 0x299   :  { %v338_v9 = vmul.f32 1.442695, %v333_v7  ;;  %v342_v10 = vmul.f32 1.442695, %v335_v8  ;;  %v3447_v11 = vpop.eup %3446 }
 0x29a   :  { %v3449_v12 = vpop.eup %3448 }
 0x29b   :  { %3450 = vpow2.f32 %v338_v9  ;;  %v344_v13 = vadd.f32 %v3449_v12, %v3447_v11 }
 0x29c   :  { %3452 = vpow2.f32 %v342_v10 }
 0x29d   :  { %3454 = vrcp.f32 %v344_v13 }
 0x2a1   :  { %v3451_v14 = vpop.eup %3450 }
 0x2a2   :  { %v3453_v15 = vpop.eup %3452 }
 0x2a3   :  { %v345_v16 = vadd.f32 %v3453_v15, %v3451_v14  ;;  %v3455_v17 = vpop.eup %3454 }
 0x2a4   :  { %v348_v19 = vmul.f32 %v3455_v17, %v3447_v11  ;;  %v350_v23 = vmul.f32 %v3455_v17, %v3449_v12  ;;  %v4096_v11 = vld [vmem:[%s5147_s27] sm:$0xff] }
 0x2a5   :  { %3456 = vrcp.f32 %v345_v16 }
 0x2a6   :  { %3458 = vrcp.f32 %v3750_v0 }
 0x2ab   :  { %v3457_v18 = vpop.eup %3456 }
 0x2ac   :  { %v349_v20 = vmul.f32 %v3457_v18, %v3451_v14  ;;  %v351_v22 = vmul.f32 %v3457_v18, %v3453_v15  ;;  %v3459_v1 = vpop.eup %3458 }
 0x2ad   :  { %v442_v2 = vmul.f32 32.0, %v3459_v1  ;;  %vm446_vm7 = vweird.f32 %v3459_v1 }
 0x2ae   :  { %v352_v21 = vpack.c.bf16 %v349_v20, %v348_v19  ;;  %v353_v24 = vpack.c.bf16 %v351_v22, %v350_v23 }
 0x2af   :  { %v443_v3 = vsub.f32 1.0, %v442_v2 }
 0x2b0   :  { %3264 = vmatmul.msk.bf16.vlgmr.msrb.gmra.mxu3 %vm354_vm6, %v352_v21 }
 0x2b1   :  { %975 = vmatpush.bf16.msrb.mxu3 %v4027_v62  ;;  %v444_v4 = vmul.f32 %v3459_v1, %v443_v3 }
 0x2b3   :  { %v445_v5 = vadd.f32 %v3459_v1, %v444_v4 }
 0x2b5   :  { %v4083_v6 = vsel %vm446_vm7, %v3459_v1, %v445_v5 }
 0x2c0   :  { %3265 = vmatmul.msk.bf16.gmra.mxu3 %vm354_vm6, %v353_v24 }
 0x333   :  { %v374_v29 = vpop.f32.mrf.mxu3 }
 0x334   :  { %v390_v38 = vmul.f32 %v385_v36, %v374_v29 }
 0x33b   :  { %v376_v30 = vpop.f32.mrf.mxu3 }
 0x33c   :  { %v391_v39 = vmul.f32 %v385_v36, %v376_v30 }
 0x343   :  { %v379_v31 = vpop.f32.mrf.mxu3 }
 0x344   :  { %v392_v33 = vmul.f32 %v387_v32, %v379_v31 }
 0x346   :  { %v394_v43 = vadd.f32 %v392_v33, %v390_v38 }
 0x34b   :  { %v381_v37 = vpop.f32.mrf.mxu3 }
 0x34c   :  { %v393_v41 = vmul.f32 %v387_v32, %v381_v37 }
 0x34e   :  { %v395_v45 = vadd.f32 %v393_v41, %v391_v39 }
 0x350   :  { %v396_v46 = vpack.c.bf16 %v395_v45, %v394_v43  ;;  %v4105_v43 = vld [vmem:[%s5095_s14] ss:$0 sm:$0xff] }
 0x352   :  { %3274 = vmatmul.msk.bf16.vlgmr.msrb.gmra.mxu0 %vm224_vm4, %v396_v46 }
 0x3cf   :  { %v428_v48 = vpop.f32.mrf.mxu0 }
 0x3d0   :  { %v429_v49 = vadd.f32 %v4050_v47, %v428_v48 }
 0x3d2   :  { %v4054_v50 = vadd.f32 %v429_v49, %v3977_v34 }
 0x3d4   :  { %v435_v51 = vsel %vm224_vm4, %v4054_v50, 0.0  ;;  %v450_v52 = vmul.f32 %v4054_v50, %v4054_v50 }
 0x3d5   :  { %436 = vadd.xlane.f32.xlu2 %v435_v51 }
 0x3d6   :  { %v452_v53 = vsel %vm224_vm4, %v450_v52, 0.0 }
 0x3d7   :  { %v430_v54 = vpop.f32.mrf.mxu0  ;;  %453 = vadd.xlane.f32.xlu1 %v452_v53 }
 0x3d8   :  { %v431_v55 = vadd.f32 %v4050_v47, %v430_v54 }
 0x3da   :  { %v4063_v56 = vadd.f32 %v431_v55, %v3979_v35  ;;  %v4079_v35 = vadd.f32 %v3433_v61, %v4020_v57  ;;  %v4089_v57 = vld [vmem:[%s5147_s27 + $0x8] sm:$0xff] }
 0x3db   :  { %529 = vmatpush.bf16.msrb.mxu1 %v4089_v57 }
 0x3dc   :  { %v438_v34 = vsel %vm224_vm4, %v4063_v56, 0.0  ;;  %v451_v59 = vmul.f32 %v4063_v56, %v4063_v56 }
 0x3dd   :  { %439 = vadd.xlane.f32.xlu0 %v438_v34  ;;  %v4127_v34 = vld [vmem:[%s5148_s6] ss:$0 sm:$0xff] }
 0x3de   :  { %v455_v60 = vsel %vm224_vm4, %v451_v59, 0.0 }
 0x3df   :  { %456 = vadd.xlane.f32.xlu2 %v455_v60  ;;  %530 = vmatpush.bf16.msrb.mxu1 %v4096_v11 }
 0x3f1   :  { %621 = vrot.lane.b32.xlu0 %v4074_v63, %s3749_s9 }
 0x3f7   :  { %619 = vrot.lane.b32.xlu2 %v4079_v35, %s3749_s9 }
 0x448   :  { %v437_v58 = vpop.xlane.xlu2 %436 }
 0x449   :  { %v448_v7 = vmul.f32 %v4083_v6, %v437_v58 }
 0x44a   :  { %v454_v8 = vpop.xlane.xlu1 %453 }
 0x44b   :  { %v460_v9 = vmul.f32 %v448_v7, %v448_v7  ;;  %v458_v10 = vmul.f32 %v454_v8, %v4083_v6  ;;  %v464_v38 = vsub.f32 %v4054_v50, %v448_v7  ;;  %v4112_v50 = vld [vmem:[%s5096_s15] ss:$0 sm:$0xff] }
 0x44d   :  { %v462_v12 = vsub.f32 %v458_v10, %v460_v9 }
 0x44f   :  { %v466_v13 = vadd.f32 1e-05, %v462_v12 }
 0x450   :  { %v440_v14 = vpop.xlane.xlu0 %439 }
 0x451   :  { %3460 = vrsqrt.f32 %v466_v13  ;;  %v449_v15 = vmul.f32 %v4083_v6, %v440_v14  ;;  %vm474_vm9 = vweird.f32 %v466_v13 }
 0x452   :  { %v457_v16 = vpop.xlane.xlu2 %456 }
 0x453   :  { %v461_v17 = vmul.f32 %v449_v15, %v449_v15  ;;  %v459_v18 = vmul.f32 %v457_v16, %v4083_v6  ;;  %v465_v46 = vsub.f32 %v4063_v56, %v449_v15 }
 0x455   :  { %v463_v19 = vsub.f32 %v459_v18, %v461_v17 }
 0x457   :  { %v3461_v20 = vpop.eup %3460  ;;  %v467_v21 = vadd.f32 1e-05, %v463_v19 }
 0x458   :  { %v469_v22 = vmul.f32 %v3461_v20, %v466_v13  ;;  %vm475_vm8 = vweird.f32 %v3461_v20 }
 0x459   :  { %3462 = vrsqrt.f32 %v467_v21  ;;  %vm476_vm10 = vmor %vm474_vm9, %vm475_vm8  ;;  %vm484_vm12 = vweird.f32 %v467_v21 }
 0x45a   :  { %v470_v23 = vmul.f32 %v3461_v20, %v469_v22 }
 0x45c   :  { %v471_v24 = vmul.f32 0.5, %v470_v23 }
 0x45e   :  { %v472_v29 = vsub.f32 1.5, %v471_v24 }
 0x45f   :  { %v3463_v30 = vpop.eup %3462 }
 0x460   :  { %v473_v31 = vmul.f32 %v3461_v20, %v472_v29  ;;  %v479_v32 = vmul.f32 %v3463_v30, %v467_v21  ;;  %vm485_vm11 = vweird.f32 %v3463_v30 }
 0x461   :  { %vm486_vm13 = vmor %vm484_vm12, %vm485_vm11 }
 0x462   :  { %v480_v33 = vmul.f32 %v3463_v30, %v479_v32  ;;  %v477_v36 = vsel %vm476_vm10, %v3461_v20, %v473_v31 }
 0x463   :  { %v488_v41 = vmul.f32 %v477_v36, %v464_v38 }
 0x464   :  { %v481_v37 = vmul.f32 0.5, %v480_v33 }
 0x465   :  { %v493_v51 = vmul.f32 %v4105_v43, %v488_v41 }
 0x466   :  { %v482_v39 = vsub.f32 1.5, %v481_v37 }
 0x467   :  { %v4116_v53 = vadd.f32 %v4112_v50, %v493_v51 }
 0x468   :  { %v483_v45 = vmul.f32 %v3463_v30, %v482_v39 }
 0x46a   :  { %v487_v48 = vsel %vm486_vm13, %v3463_v30, %v483_v45  ;;  %v4142_v45 = vld [vmem:[%s5149_s29 + $0x8] sm:$0xff] }
 0x46b   :  { %v489_v49 = vmul.f32 %v487_v48, %v465_v46  ;;  %660 = vmatpush.bf16.msra.mxu0 %v4142_v45  ;;  %v4149_v46 = vld [vmem:[%s5149_s29] sm:$0xff] }
 0x46d   :  { %v494_v52 = vmul.f32 %v4105_v43, %v489_v49 }
 0x46f   :  { %v4119_v54 = vadd.f32 %v4112_v50, %v494_v52  ;;  %661 = vmatpush.bf16.msra.mxu0 %v4149_v46  ;;  %v4153_v52 = vpop.permute.xlu0 %621 }
 0x471   :  { %v500_v55 = vpack.c.bf16 %v4119_v54, %v4116_v53 }
 0x473   :  { %3283 = vmatmul.msk.bf16.vlgmr.msrb.gmra.mxu1 %vm224_vm4, %v500_v55 }
 0x4f0   :  { %v532_v56 = vpop.f32.mrf.mxu1 }
 0x4f1   :  { %v533_v59 = vadd.f32 %v4127_v34, %v532_v56  ;;  %v4156_v56 = vpop.permute.xlu2 %619 }
 0x4f3   :  { %v537_v0 = vmul.f32 %v533_v59, %v4079_v35  ;;  %v539_v4 = vmul.f32 %v533_v59, %v4074_v63 }
 0x4f8   :  { %v534_v60 = vpop.f32.mrf.mxu1 }
 0x4f9   :  { %v535_v61 = vadd.f32 %v4127_v34, %v534_v60 }
 0x4fb   :  { %v538_v1 = vmul.f32 %v535_v61, %v4079_v35  ;;  %v540_v3 = vmul.f32 %v535_v61, %v4074_v63 }
 0x4fd   :  { %v541_v2 = vpack.c.bf16 %v538_v1, %v537_v0  ;;  %v542_v5 = vpack.c.bf16 %v540_v3, %v539_v4  ;;  %v4165_v4 = vld [vmem:[%s5094_s13] ss:$0 sm:$0xff] }
 0x4ff   :  { %3284 = vmatmul.msk.bf16.vlgmr.msra.gmra.mxu2 %vm224_vm4, %v541_v2 }
 0x500   :  { %1185 = vmatpush.bf16.msra.mxu2 %v4142_v45 }
 0x504   :  { %1186 = vmatpush.bf16.msra.mxu2 %v4149_v46 }
 0x50f   :  { %3285 = vmatmul.msk.bf16.gmra.mxu2 %vm224_vm4, %v542_v5 }
 0x582   :  { %v558_v58 = vpop.f32.mrf.mxu2 }
 0x58a   :  { %v560_v7 = vpop.f32.mrf.mxu2 }
 0x592   :  { %v563_v8 = vpop.f32.mrf.mxu2 }
 0x593   :  { %v568_v9 = vmax.f32 %v558_v58, %v563_v8 }
 0x595   :  { %v570_v10 = vsub.f32 %v558_v58, %v568_v9  ;;  %v572_v12 = vsub.f32 %v563_v8, %v568_v9 }
 0x597   :  { %v574_v13 = vmul.f32 1.442695, %v570_v10  ;;  %v578_v14 = vmul.f32 1.442695, %v572_v12 }
 0x599   :  { %3464 = vpow2.f32 %v574_v13 }
 0x59a   :  { %v565_v15 = vpop.f32.mrf.mxu2  ;;  %3466 = vpow2.f32 %v578_v14 }
 0x59b   :  { %v569_v16 = vmax.f32 %v560_v7, %v565_v15 }
 0x59d   :  { %v571_v17 = vsub.f32 %v560_v7, %v569_v16  ;;  %v573_v18 = vsub.f32 %v565_v15, %v569_v16 }
 0x59f   :  { %v576_v19 = vmul.f32 1.442695, %v571_v17  ;;  %v580_v20 = vmul.f32 1.442695, %v573_v18  ;;  %v3465_v21 = vpop.eup %3464 }
 0x5a0   :  { %v3467_v22 = vpop.eup %3466 }
 0x5a1   :  { %3468 = vpow2.f32 %v576_v19  ;;  %v582_v23 = vadd.f32 %v3467_v22, %v3465_v21  ;;  %v4183_v19 = vld [vmem:[%s5101_s20 + $0x8] sm:$0xff] }
 0x5a2   :  { %3470 = vpow2.f32 %v580_v20  ;;  %757 = vmatpush.bf16.msra.mxu1 %v4183_v19 }
 0x5a3   :  { %3472 = vrcp.f32 %v582_v23  ;;  %v4192_v23 = vld [vmem:[%s5101_s20] sm:$0xff] }
 0x5a6   :  { %758 = vmatpush.bf16.msra.mxu1 %v4192_v23 }
 0x5a7   :  { %v3469_v24 = vpop.eup %3468 }
 0x5a8   :  { %v3471_v29 = vpop.eup %3470 }
 0x5a9   :  { %v583_v30 = vadd.f32 %v3471_v29, %v3469_v24  ;;  %v3473_v31 = vpop.eup %3472 }
 0x5aa   :  { %v586_v33 = vmul.f32 %v3473_v31, %v3465_v21  ;;  %v588_v39 = vmul.f32 %v3473_v31, %v3467_v22  ;;  %891 = vmatpush.bf16.msrb.mxu1 %v3962_v26 }
 0x5ab   :  { %3474 = vrcp.f32 %v583_v30 }
 0x5ae   :  { %892 = vmatpush.bf16.msrb.mxu1 %v3968_v27 }
 0x5b1   :  { %v3475_v32 = vpop.eup %3474 }
 0x5b2   :  { %v587_v36 = vmul.f32 %v3475_v32, %v3469_v24  ;;  %v589_v38 = vmul.f32 %v3475_v32, %v3471_v29 }
 0x5b4   :  { %v590_v37 = vpack.c.bf16 %v587_v36, %v586_v33  ;;  %v591_v41 = vpack.c.bf16 %v589_v38, %v588_v39  ;;  %v4202_v36 = vld [vmem:[%s5103_s22 + $0x18] sm:$0xff] }
 0x5b5   :  { %811 = vmatpush.bf16.msrb.mxu0 %v4202_v36 }
 0x5b6   :  { %3286 = vmatmul.msk.bf16.vlgmr.msra.gmra.mxu3 %vm354_vm6, %v590_v37 }
 0x5b7   :  { %1257 = vmatpush.bf16.msra.mxu3 %v4183_v19 }
 0x5bb   :  { %1258 = vmatpush.bf16.msra.mxu3 %v4192_v23 }
 0x5c6   :  { %3287 = vmatmul.msk.bf16.gmra.mxu3 %vm354_vm6, %v591_v41 }
 0x639   :  { %v607_v48 = vpop.f32.mrf.mxu3 }
 0x63a   :  { %v625_v60 = vmul.f32 %v4156_v56, %v607_v48 }
 0x641   :  { %v609_v49 = vpop.f32.mrf.mxu3 }
 0x642   :  { %v626_v61 = vmul.f32 %v4156_v56, %v609_v49 }
 0x649   :  { %v612_v51 = vpop.f32.mrf.mxu3 }
 0x64a   :  { %v627_v55 = vmul.f32 %v4153_v52, %v612_v51 }
 0x64c   :  { %v629_v1 = vadd.f32 %v627_v55, %v625_v60 }
 0x651   :  { %v614_v59 = vpop.f32.mrf.mxu3 }
 0x652   :  { %v628_v0 = vmul.f32 %v4153_v52, %v614_v59 }
 0x654   :  { %v630_v2 = vadd.f32 %v628_v0, %v626_v61 }
 0x656   :  { %v631_v3 = vpack.c.bf16 %v630_v2, %v629_v1 }
 0x658   :  { %3296 = vmatmul.msk.bf16.vlgmr.msra.gmra.mxu0 %vm224_vm4, %v631_v3 }
 0x6d5   :  { %v663_v5 = vpop.f32.mrf.mxu0 }
 0x6d6   :  { %v664_v58 = vadd.f32 %v4165_v4, %v663_v5  ;;  %v4209_v5 = vld [vmem:[%s5097_s16] ss:$0 sm:$0xff] }
 0x6d8   :  { %v4169_v7 = vadd.f32 %v664_v58, %v4116_v53 }
 0x6da   :  { %v670_v8 = vsel %vm224_vm4, %v4169_v7, 0.0  ;;  %v678_v53 = vmul.f32 %v4169_v7, %v4169_v7 }
 0x6db   :  { %671 = vadd.xlane.f32.xlu1 %v670_v8 }
 0x6dc   :  { %v680_v16 = vsel %vm224_vm4, %v678_v53, 0.0 }
 0x6dd   :  { %v665_v9 = vpop.f32.mrf.mxu0 }
 0x6de   :  { %v666_v10 = vadd.f32 %v4165_v4, %v665_v9 }
 0x6e0   :  { %v669_v12 = vadd.f32 %v666_v10, %v4119_v54 }
 0x6e2   :  { %v673_v13 = vsel %vm224_vm4, %v669_v12, 0.0  ;;  %v679_v14 = vmul.f32 %v669_v12, %v669_v12 }
 0x6e3   :  { %674 = vadd.xlane.f32.xlu1 %v673_v13 }
 0x6e4   :  { %v683_v15 = vsel %vm224_vm4, %v679_v14, 0.0 }
 0x6e5   :  { %684 = vadd.xlane.f32.xlu0 %v683_v15 }
 0x6eb   :  { %681 = vadd.xlane.f32.xlu1 %v680_v16 }
 0x74e   :  { %v672_v17 = vpop.xlane.xlu1 %671 }
 0x74f   :  { %v676_v24 = vmul.f32 %v672_v17, %v4083_v6 }
 0x751   :  { %v688_v32 = vmul.f32 %v676_v24, %v676_v24  ;;  %v692_v9 = vsub.f32 %v4169_v7, %v676_v24  ;;  %v4227_v7 = vld [vmem:[%s5103_s22 + $0x10] sm:$0xff] }
 0x752   :  { %812 = vmatpush.bf16.msrb.mxu0 %v4227_v7 }
 0x756   :  { %v675_v18 = vpop.xlane.xlu1 %674 }
 0x757   :  { %v677_v54 = vmul.f32 %v675_v18, %v4083_v6  ;;  %v4233_v18 = vld [vmem:[%s5103_s22 + $0x8] sm:$0xff] }
 0x758   :  { %v685_v20 = vpop.xlane.xlu0 %684  ;;  %813 = vmatpush.bf16.msrb.mxu0 %v4233_v18 }
 0x759   :  { %v689_v21 = vmul.f32 %v677_v54, %v677_v54  ;;  %v687_v22 = vmul.f32 %v685_v20, %v4083_v6  ;;  %v693_v2 = vsub.f32 %v669_v12, %v677_v54  ;;  %v4216_v12 = vld [vmem:[%s5098_s17] ss:$0 sm:$0xff] }
 0x75a   :  { %v4247_v54 = vld [vmem:[%s5102_s21] ss:$0 sm:$0xff] }
 0x75b   :  { %v691_v29 = vsub.f32 %v687_v22, %v689_v21 }
 0x75d   :  { %v695_v30 = vadd.f32 1e-05, %v691_v29 }
 0x75e   :  { %v682_v31 = vpop.xlane.xlu1 %681 }
 0x75f   :  { %3476 = vrsqrt.f32 %v695_v30  ;;  %v686_v33 = vmul.f32 %v682_v31, %v4083_v6  ;;  %vm712_vm15 = vweird.f32 %v695_v30 }
 0x761   :  { %v690_v37 = vsub.f32 %v686_v33, %v688_v32 }
 0x763   :  { %v694_v38 = vadd.f32 1e-05, %v690_v37 }
 0x765   :  { %v3477_v39 = vpop.eup %3476  ;;  %3478 = vrsqrt.f32 %v694_v38  ;;  %vm702_vm2 = vweird.f32 %v694_v38 }
 0x766   :  { %v707_v41 = vmul.f32 %v3477_v39, %v695_v30  ;;  %vm713_vm14 = vweird.f32 %v3477_v39 }
 0x767   :  { %vm714_vm0 = vmor %vm712_vm15, %vm713_vm14 }
 0x768   :  { %v708_v48 = vmul.f32 %v3477_v39, %v707_v41 }
 0x76a   :  { %v709_v49 = vmul.f32 0.5, %v708_v48 }
 0x76b   :  { %v3479_v51 = vpop.eup %3478 }
 0x76c   :  { %v710_v55 = vsub.f32 1.5, %v709_v49  ;;  %v697_v59 = vmul.f32 %v3479_v51, %v694_v38  ;;  %vm703_vm1 = vweird.f32 %v3479_v51 }
 0x76d   :  { %vm704_vm3 = vmor %vm702_vm2, %vm703_vm1 }
 0x76e   :  { %v711_v60 = vmul.f32 %v3477_v39, %v710_v55  ;;  %v698_v61 = vmul.f32 %v3479_v51, %v697_v59 }
 0x770   :  { %v715_v0 = vsel %vm714_vm0, %v3477_v39, %v711_v60  ;;  %v699_v1 = vmul.f32 0.5, %v698_v61 }
 0x771   :  { %v717_v58 = vmul.f32 %v715_v0, %v693_v2 }
 0x772   :  { %v700_v3 = vsub.f32 1.5, %v699_v1 }
 0x773   :  { %v722_v13 = vmul.f32 %v4209_v5, %v717_v58 }
 0x774   :  { %v701_v8 = vmul.f32 %v3479_v51, %v700_v3 }
 0x775   :  { %v727_v16 = vadd.f32 %v4216_v12, %v722_v13 }
 0x776   :  { %v705_v10 = vsel %vm704_vm3, %v3479_v51, %v701_v8 }
 0x777   :  { %v716_v14 = vmul.f32 %v705_v10, %v692_v9 }
 0x779   :  { %v721_v15 = vmul.f32 %v4209_v5, %v716_v14 }
 0x77b   :  { %v726_v53 = vadd.f32 %v4216_v12, %v721_v15 }
 0x77d   :  { %v728_v17 = vpack.c.bf16 %v727_v16, %v726_v53 }
 0x77f   :  { %3305 = vmatmul.msk.bf16.vlgmr.msra.gmra.mxu1 %vm224_vm4, %v728_v17 }
 0x780   :  { %1081 = vmatpush.bf16.msra.mxu1 %v4089_v57  ;;  %v4239_v57 = vld [vmem:[%s5103_s22] sm:$0xff] }
 0x781   :  { %814 = vmatpush.bf16.msrb.mxu0 %v4239_v57 }
 0x784   :  { %1082 = vmatpush.bf16.msra.mxu1 %v4096_v11 }
 0x785   :  { %1009 = vmatpush.bf16.msra.mxu0 %v4037_v25  ;;  %v4257_v25 = vld [vmem:[%s5104_s23] ss:$0 sm:$0xff] }
 0x789   :  { %1010 = vmatpush.bf16.msra.mxu0 %v4043_v28 }
 0x7fc   :  { %v760_v11 = vpop.f32.mrf.mxu1 }
 0x7fd   :  { %v761_v20 = vadd.f32 %v4247_v54, %v760_v11 }
 0x7ff   :  { %v765_v24 = vmax.f32 %v761_v20, 0.0 }
 0x804   :  { %v762_v21 = vpop.f32.mrf.mxu1 }
 0x805   :  { %v763_v22 = vadd.f32 %v4247_v54, %v762_v21 }
 0x807   :  { %v766_v29 = vmax.f32 %v763_v22, 0.0 }
 0x809   :  { %v767_v30 = vpack.c.bf16 %v766_v29, %v765_v24 }
 0x80b   :  { %3322 = vmatmul.msk.bf16.vlgmr.msrb.gmra.mxu0 %vm803_vm5, %v767_v30 }
 0x80c   :  { %1107 = vmatpush.bf16.msrb.mxu0 %v3993_v40 }
 0x810   :  { %1108 = vmatpush.bf16.msrb.mxu0 %v3999_v42 }
 0x888   :  { %v816_v28 = vpop.f32.mrf.mxu0 }
 0x889   :  { %v817_v31 = vadd.f32 %v4257_v25, %v816_v28 }
 0x88b   :  { %v821_v32 = vadd.f32 %v817_v31, %v726_v53 }
 0x88d   :  { %v823_v33 = vsel %vm224_vm4, %v821_v32, 0.0  ;;  %v831_v37 = vmul.f32 %v821_v32, %v821_v32 }
 0x88e   :  { %824 = vadd.xlane.f32.xlu2 %v823_v33 }
 0x88f   :  { %v833_v38 = vsel %vm224_vm4, %v831_v37, 0.0  ;;  %v4272_v37 = vld [vmem:[%s5099_s18] ss:$0 sm:$0xff] }
 0x890   :  { %v818_v39 = vpop.f32.mrf.mxu0  ;;  %834 = vadd.xlane.f32.xlu1 %v833_v38 }
 0x891   :  { %v819_v41 = vadd.f32 %v4257_v25, %v818_v39 }
 0x893   :  { %v822_v48 = vadd.f32 %v819_v41, %v727_v16 }
 0x895   :  { %v826_v49 = vsel %vm224_vm4, %v822_v48, 0.0  ;;  %v832_v51 = vmul.f32 %v822_v48, %v822_v48 }
 0x897   :  { %v836_v55 = vsel %vm224_vm4, %v832_v51, 0.0 }
 0x898   :  { %827 = vadd.xlane.f32.xlu1 %v826_v49 }
 0x8a0   :  { %837 = vadd.xlane.f32.xlu1 %v836_v55 }
 0x901   :  { %v825_v59 = vpop.xlane.xlu2 %824 }
 0x902   :  { %v829_v60 = vmul.f32 %v825_v59, %v4083_v6 }
 0x903   :  { %v835_v61 = vpop.xlane.xlu1 %834 }
 0x904   :  { %v841_v0 = vmul.f32 %v829_v60, %v829_v60  ;;  %v839_v1 = vmul.f32 %v835_v61, %v4083_v6  ;;  %v845_v31 = vsub.f32 %v821_v32, %v829_v60  ;;  %v4278_v32 = vld [vmem:[%s5150_s8] ss:$0 sm:$0xff] }
 0x906   :  { %v843_v2 = vsub.f32 %v839_v1, %v841_v0 }
 0x908   :  { %v847_v3 = vadd.f32 1e-05, %v843_v2 }
 0x90a   :  { %3480 = vrsqrt.f32 %v847_v3  ;;  %vm855_vm8 = vweird.f32 %v847_v3 }
 0x90b   :  { %v828_v58 = vpop.xlane.xlu1 %827 }
 0x90c   :  { %v830_v9 = vmul.f32 %v828_v58, %v4083_v6 }
 0x90e   :  { %v842_v14 = vmul.f32 %v830_v9, %v830_v9  ;;  %v846_v41 = vsub.f32 %v822_v48, %v830_v9 }
 0x910   :  { %v3481_v8 = vpop.eup %3480 }
 0x911   :  { %v850_v10 = vmul.f32 %v3481_v8, %v847_v3  ;;  %vm856_vm7 = vweird.f32 %v3481_v8 }
 0x912   :  { %vm857_vm9 = vmor %vm855_vm8, %vm856_vm7 }
 0x913   :  { %v838_v13 = vpop.xlane.xlu1 %837  ;;  %v851_v53 = vmul.f32 %v3481_v8, %v850_v10 }
 0x914   :  { %v840_v15 = vmul.f32 %v838_v13, %v4083_v6 }
 0x915   :  { %v852_v11 = vmul.f32 0.5, %v851_v53 }
 0x916   :  { %v844_v16 = vsub.f32 %v840_v15, %v842_v14 }
 0x917   :  { %v853_v20 = vsub.f32 1.5, %v852_v11 }
 0x918   :  { %v848_v17 = vadd.f32 1e-05, %v844_v16 }
 0x919   :  { %v854_v22 = vmul.f32 %v3481_v8, %v853_v20 }
 0x91a   :  { %3482 = vrsqrt.f32 %v848_v17  ;;  %vm865_vm11 = vweird.f32 %v848_v17 }
 0x91b   :  { %v858_v30 = vsel %vm857_vm9, %v3481_v8, %v854_v22 }
 0x91c   :  { %v869_v38 = vmul.f32 %v858_v30, %v845_v31 }
 0x91e   :  { %v874_v51 = vmul.f32 %v4272_v37, %v869_v38 }
 0x920   :  { %v3483_v21 = vpop.eup %3482  ;;  %v4282_v60 = vadd.f32 %v4278_v32, %v874_v51 }
 0x921   :  { %v860_v24 = vmul.f32 %v3483_v21, %v848_v17  ;;  %vm866_vm10 = vweird.f32 %v3483_v21 }
 0x922   :  { %vm867_vm12 = vmor %vm865_vm11, %vm866_vm10 }
 0x923   :  { %v861_v29 = vmul.f32 %v3483_v21, %v860_v24 }
 0x925   :  { %v862_v28 = vmul.f32 0.5, %v861_v29 }
 0x927   :  { %v863_v33 = vsub.f32 1.5, %v862_v28 }
 0x929   :  { %v864_v39 = vmul.f32 %v3483_v21, %v863_v33 }
 0x92b   :  { %v868_v49 = vsel %vm867_vm12, %v3483_v21, %v864_v39 }
 0x92c   :  { %v870_v55 = vmul.f32 %v868_v49, %v846_v41 }
 0x92e   :  { %v875_v59 = vmul.f32 %v4272_v37, %v870_v55 }
 0x930   :  { %v4285_v61 = vadd.f32 %v4278_v32, %v875_v59 }
 0x932   :  { %v881_v48 = vpack.c.bf16 %v4285_v61, %v4282_v60 }
 0x934   :  { %3323 = vmatmul.msk.bf16.vlgmr.msrb.gmra.mxu1 %vm224_vm4, %v881_v48 }
 0x935   :  { %1157 = vmatpush.bf16.msrb.mxu1 %v4027_v62 }
 0x9b1   :  { %v894_v0 = vpop.f32.mrf.mxu1 }
 0x9b2   :  { %v895_v1 = vadd.f32 %v4008_v44, %v894_v0 }
 0x9b4   :  { %987 = vrot.lane.b32.xlu2 %v895_v1, %s3748_s3  ;;  %901 = vrot.lane.b32.xlu1 %v895_v1, %s3749_s9 }
 0x9b9   :  { %v896_v2 = vpop.f32.mrf.mxu1 }
 0x9ba   :  { %v897_v3 = vadd.f32 %v4008_v44, %v896_v2 }
 0x9bc   :  { %903 = vrot.lane.b32.xlu0 %v897_v3, %s3749_s9  ;;  %989 = vrot.lane.b32.xlu1 %v897_v3, %s3748_s3 }
 0xa26   :  { %v902_v58 = vpop.permute.xlu1 %901 }
 0xa27   :  { %v907_v8 = vmul.f32 %v902_v58, %v895_v1  ;;  %v908_v9 = vmul.f32 %v902_v58, %v897_v3 }
 0xa29   :  { %v911_v10 = vpack.c.bf16 %v908_v9, %v907_v8 }
 0xa2b   :  { %3324 = vmatmul.msk.bf16.vlgmr.msrb.gmra.mxu2 %vm224_vm4, %v911_v10 }
 0xa2c   :  { %1275 = vmatpush.bf16.msrb.mxu2 %v4202_v36 }
 0xa2e   :  { %v904_v13 = vpop.permute.xlu0 %903 }
 0xa2f   :  { %v909_v14 = vmul.f32 %v904_v13, %v895_v1  ;;  %v910_v15 = vmul.f32 %v904_v13, %v897_v3 }
 0xa30   :  { %1276 = vmatpush.bf16.msrb.mxu2 %v4227_v7 }
 0xa31   :  { %v912_v44 = vpack.c.bf16 %v910_v15, %v909_v14  ;;  %v990_v15 = vpop.permute.xlu1 %989 }
 0xa34   :  { %1277 = vmatpush.bf16.msrb.mxu2 %v4233_v18 }
 0xa38   :  { %1278 = vmatpush.bf16.msrb.mxu2 %v4239_v57 }
 0xa3b   :  { %3325 = vmatmul.msk.bf16.gmra.mxu2 %vm224_vm4, %v912_v44 }
 0xaae   :  { %v928_v53 = vpop.f32.mrf.mxu2 }
 0xab6   :  { %v930_v16 = vpop.f32.mrf.mxu2 }
 0xabe   :  { %v933_v17 = vpop.f32.mrf.mxu2 }
 0xabf   :  { %v938_v11 = vmax.f32 %v928_v53, %v933_v17 }
 0xac1   :  { %v940_v20 = vsub.f32 %v928_v53, %v938_v11  ;;  %v942_v21 = vsub.f32 %v933_v17, %v938_v11  ;;  %v988_v53 = vpop.permute.xlu2 %987 }
 0xac3   :  { %v944_v22 = vmul.f32 1.442695, %v940_v20  ;;  %v948_v24 = vmul.f32 1.442695, %v942_v21 }
 0xac5   :  { %3484 = vpow2.f32 %v944_v22 }
 0xac6   :  { %v935_v29 = vpop.f32.mrf.mxu2  ;;  %3486 = vpow2.f32 %v948_v24 }
 0xac7   :  { %v939_v30 = vmax.f32 %v930_v16, %v935_v29 }
 0xac9   :  { %v941_v28 = vsub.f32 %v930_v16, %v939_v30  ;;  %v943_v31 = vsub.f32 %v935_v29, %v939_v30 }
 0xacb   :  { %v946_v33 = vmul.f32 1.442695, %v941_v28  ;;  %v950_v38 = vmul.f32 1.442695, %v943_v31  ;;  %v3485_v39 = vpop.eup %3484 }
 0xacc   :  { %v3487_v41 = vpop.eup %3486 }
 0xacd   :  { %3488 = vpow2.f32 %v946_v33  ;;  %v952_v49 = vadd.f32 %v3487_v41, %v3485_v39 }
 0xace   :  { %3490 = vpow2.f32 %v950_v38 }
 0xacf   :  { %3492 = vrcp.f32 %v952_v49 }
 0xad3   :  { %v3489_v51 = vpop.eup %3488 }
 0xad4   :  { %v3491_v55 = vpop.eup %3490 }
 0xad5   :  { %v953_v59 = vadd.f32 %v3491_v55, %v3489_v51  ;;  %v3493_v48 = vpop.eup %3492 }
 0xad6   :  { %v956_v1 = vmul.f32 %v3493_v48, %v3485_v39  ;;  %v958_v8 = vmul.f32 %v3493_v48, %v3487_v41 }
 0xad7   :  { %3494 = vrcp.f32 %v953_v59 }
 0xadd   :  { %v3495_v0 = vpop.eup %3494 }
 0xade   :  { %v957_v2 = vmul.f32 %v3495_v0, %v3489_v51  ;;  %v959_v58 = vmul.f32 %v3495_v0, %v3491_v55 }
 0xae0   :  { %v960_v3 = vpack.c.bf16 %v957_v2, %v956_v1  ;;  %v961_v9 = vpack.c.bf16 %v959_v58, %v958_v8 }
 0xae2   :  { %3326 = vmatmul.msk.bf16.vlgmr.msrb.gmra.mxu3 %vm354_vm6, %v960_v3 }
 0xae3   :  { %1349 = vmatpush.bf16.msrb.mxu3 %v3962_v26 }
 0xae7   :  { %1350 = vmatpush.bf16.msrb.mxu3 %v3968_v27 }
 0xaf2   :  { %3327 = vmatmul.msk.bf16.gmra.mxu3 %vm354_vm6, %v961_v9 }
 0xb65   :  { %v977_v10 = vpop.f32.mrf.mxu3 }
 0xb66   :  { %v993_v17 = vmul.f32 %v988_v53, %v977_v10 }
 0xb6d   :  { %v979_v13 = vpop.f32.mrf.mxu3 }
 0xb6e   :  { %v994_v11 = vmul.f32 %v988_v53, %v979_v13 }
 0xb75   :  { %v982_v14 = vpop.f32.mrf.mxu3 }
 0xb76   :  { %v995_v44 = vmul.f32 %v990_v15, %v982_v14 }
 0xb78   :  { %v997_v21 = vadd.f32 %v995_v44, %v993_v17 }
 0xb7d   :  { %v984_v16 = vpop.f32.mrf.mxu3 }
 0xb7e   :  { %v996_v20 = vmul.f32 %v990_v15, %v984_v16 }
 0xb80   :  { %v998_v22 = vadd.f32 %v996_v20, %v994_v11 }
 0xb82   :  { %v999_v26 = vpack.c.bf16 %v998_v22, %v997_v21 }
 0xb84   :  { %3328 = vmatmul.msk.bf16.vlgmr.msra.gmra.mxu0 %vm224_vm4, %v999_v26 }
 0xb85   :  { %1383 = vmatpush.bf16.msra.mxu0 %v3993_v40 }
 0xb89   :  { %1384 = vmatpush.bf16.msra.mxu0 %v3999_v42 }
 0xc01   :  { %v1012_v27 = vpop.f32.mrf.mxu0 }
 0xc02   :  { %v1013_v24 = vadd.f32 %v4050_v47, %v1012_v27 }
 0xc04   :  { %v1017_v29 = vadd.f32 %v1013_v24, %v4282_v60 }
 0xc06   :  { %v1019_v30 = vsel %vm224_vm4, %v1017_v29, 0.0  ;;  %v1027_v28 = vmul.f32 %v1017_v29, %v1017_v29 }
 0xc07   :  { %1020 = vadd.xlane.f32.xlu1 %v1019_v30 }
 0xc08   :  { %v1029_v31 = vsel %vm224_vm4, %v1027_v28, 0.0 }
 0xc09   :  { %v1014_v33 = vpop.f32.mrf.mxu0  ;;  %1030 = vadd.xlane.f32.xlu2 %v1029_v31 }
 0xc0a   :  { %v1015_v38 = vadd.f32 %v4050_v47, %v1014_v33 }
 0xc0c   :  { %v1018_v39 = vadd.f32 %v1015_v38, %v4285_v61 }
 0xc0e   :  { %v1022_v40 = vsel %vm224_vm4, %v1018_v39, 0.0  ;;  %v1028_v42 = vmul.f32 %v1018_v39, %v1018_v39 }
 0xc0f   :  { %1023 = vadd.xlane.f32.xlu0 %v1022_v40 }
 0xc10   :  { %v1032_v41 = vsel %vm224_vm4, %v1028_v42, 0.0 }
 0xc11   :  { %1033 = vadd.xlane.f32.xlu1 %v1032_v41 }
 0xc7a   :  { %v1021_v60 = vpop.xlane.xlu1 %1020 }
 0xc7b   :  { %v1025_v49 = vmul.f32 %v1021_v60, %v4083_v6 }
 0xc7c   :  { %v1031_v51 = vpop.xlane.xlu2 %1030 }
 0xc7d   :  { %v1037_v55 = vmul.f32 %v1025_v49, %v1025_v49  ;;  %v1035_v59 = vmul.f32 %v1031_v51, %v4083_v6  ;;  %v1041_v21 = vsub.f32 %v1017_v29, %v1025_v49 }
 0xc7f   :  { %v1039_v48 = vsub.f32 %v1035_v59, %v1037_v55 }
 0xc81   :  { %v1043_v0 = vadd.f32 1e-05, %v1039_v48 }
 0xc82   :  { %v1024_v1 = vpop.xlane.xlu0 %1023 }
 0xc83   :  { %3496 = vrsqrt.f32 %v1043_v0  ;;  %v1026_v47 = vmul.f32 %v1024_v1, %v4083_v6  ;;  %vm1051_vm14 = vweird.f32 %v1043_v0 }
 0xc84   :  { %v1034_v61 = vpop.xlane.xlu1 %1033 }
 0xc85   :  { %v1038_v2 = vmul.f32 %v1026_v47, %v1026_v47  ;;  %v1036_v3 = vmul.f32 %v1034_v61, %v4083_v6  ;;  %v1042_v24 = vsub.f32 %v1018_v39, %v1026_v47 }
 0xc87   :  { %v1040_v58 = vsub.f32 %v1036_v3, %v1038_v2 }
 0xc89   :  { %v3497_v8 = vpop.eup %3496  ;;  %v1044_v9 = vadd.f32 1e-05, %v1040_v58 }
 0xc8a   :  { %v1046_v10 = vmul.f32 %v3497_v8, %v1043_v0  ;;  %vm1052_vm13 = vweird.f32 %v3497_v8 }
 0xc8b   :  { %3498 = vrsqrt.f32 %v1044_v9  ;;  %vm1053_vm15 = vmor %vm1051_vm14, %vm1052_vm13  ;;  %vm1061_vm1 = vweird.f32 %v1044_v9 }
 0xc8c   :  { %v1047_v13 = vmul.f32 %v3497_v8, %v1046_v10 }
 0xc8e   :  { %v1048_v14 = vmul.f32 0.5, %v1047_v13 }
 0xc90   :  { %v1049_v15 = vsub.f32 1.5, %v1048_v14 }
 0xc91   :  { %v3499_v44 = vpop.eup %3498 }
 0xc92   :  { %v1050_v53 = vmul.f32 %v3497_v8, %v1049_v15  ;;  %v1056_v16 = vmul.f32 %v3499_v44, %v1044_v9  ;;  %vm1062_vm0 = vweird.f32 %v3499_v44 }
 0xc93   :  { %vm1063_vm2 = vmor %vm1061_vm1, %vm1062_vm0 }
 0xc94   :  { %v1057_v17 = vmul.f32 %v3499_v44, %v1056_v16  ;;  %v1054_v11 = vsel %vm1053_vm15, %v3497_v8, %v1050_v53 }
 0xc95   :  { %v1065_v26 = vmul.f32 %v1054_v11, %v1041_v21 }
 0xc96   :  { %v1058_v20 = vmul.f32 0.5, %v1057_v17 }
 0xc97   :  { %v1067_v28 = vmul.f32 %v4105_v43, %v1065_v26 }
 0xc98   :  { %v1059_v22 = vsub.f32 1.5, %v1058_v20 }
 0xc99   :  { %v4325_v38 = vadd.f32 %v4112_v50, %v1067_v28 }
 0xc9a   :  { %v1060_v27 = vmul.f32 %v3499_v44, %v1059_v22 }
 0xc9c   :  { %v1064_v30 = vsel %vm1063_vm2, %v3499_v44, %v1060_v27 }
 0xc9d   :  { %v1066_v31 = vmul.f32 %v1064_v30, %v1042_v24 }
 0xc9f   :  { %v1068_v33 = vmul.f32 %v4105_v43, %v1066_v31 }
 0xca1   :  { %v4328_v40 = vadd.f32 %v4112_v50, %v1068_v33 }
 0xca3   :  { %v1071_v29 = vpack.c.bf16 %v4328_v40, %v4325_v38 }
 0xca5   :  { %3329 = vmatmul.msk.bf16.vlgmr.msra.gmra.mxu1 %vm224_vm4, %v1071_v29 }
 0xca6   :  { %1433 = vmatpush.bf16.msra.mxu1 %v4027_v62 }
 0xd22   :  { %v1084_v39 = vpop.f32.mrf.mxu1 }
 0xd23   :  { %v1085_v42 = vadd.f32 %v4127_v34, %v1084_v39 }
 0xd25   :  { %v1089_v43 = vmul.f32 %v1085_v42, %v4079_v35  ;;  %v1091_v55 = vmul.f32 %v1085_v42, %v4074_v63 }
 0xd2a   :  { %v1086_v41 = vpop.f32.mrf.mxu1 }
 0xd2b   :  { %v1087_v60 = vadd.f32 %v4127_v34, %v1086_v41 }
 0xd2d   :  { %v1090_v49 = vmul.f32 %v1087_v60, %v4079_v35  ;;  %v1092_v50 = vmul.f32 %v1087_v60, %v4074_v63 }
 0xd2f   :  { %v1093_v51 = vpack.c.bf16 %v1090_v49, %v1089_v43  ;;  %v1094_v59 = vpack.c.bf16 %v1092_v50, %v1091_v55  ;;  %v4356_v43 = vld [vmem:[%s5144_s11 + $0x8] sm:$0xff]  ;;  %v4362_v49 = vld [vmem:[%s5144_s11] sm:$0xff] }
 0xd31   :  { %3330 = vmatmul.msk.bf16.vlgmr.msrb.gmra.mxu0 %vm224_vm4, %v1093_v51 }
 0xd32   :  { %1643 = vmatpush.bf16.msrb.mxu0 %v4142_v45 }
 0xd36   :  { %1644 = vmatpush.bf16.msrb.mxu0 %v4149_v46 }
 0xd41   :  { %3331 = vmatmul.msk.bf16.gmra.mxu0 %vm224_vm4, %v1094_v59 }
 0xdae   :  { %v1110_v48 = vpop.f32.mrf.mxu0 }
 0xdb6   :  { %v1112_v34 = vpop.f32.mrf.mxu0 }
 0xdbe   :  { %v1115_v0 = vpop.f32.mrf.mxu0 }
 0xdbf   :  { %v1120_v1 = vmax.f32 %v1110_v48, %v1115_v0 }
 0xdc1   :  { %v1122_v47 = vsub.f32 %v1110_v48, %v1120_v1  ;;  %v1124_v61 = vsub.f32 %v1115_v0, %v1120_v1 }
 0xdc3   :  { %v1126_v2 = vmul.f32 1.442695, %v1122_v47  ;;  %v1130_v3 = vmul.f32 1.442695, %v1124_v61 }
 0xdc5   :  { %3500 = vpow2.f32 %v1126_v2 }
 0xdc6   :  { %v1117_v58 = vpop.f32.mrf.mxu0  ;;  %3502 = vpow2.f32 %v1130_v3 }
 0xdc7   :  { %v1121_v45 = vmax.f32 %v1112_v34, %v1117_v58 }
 0xdc9   :  { %v1123_v46 = vsub.f32 %v1112_v34, %v1121_v45  ;;  %v1125_v8 = vsub.f32 %v1117_v58, %v1121_v45 }
 0xdcb   :  { %v1128_v9 = vmul.f32 1.442695, %v1123_v46  ;;  %v1132_v10 = vmul.f32 1.442695, %v1125_v8  ;;  %v3501_v13 = vpop.eup %3500 }
 0xdcc   :  { %v3503_v14 = vpop.eup %3502 }
 0xdcd   :  { %3504 = vpow2.f32 %v1128_v9  ;;  %v1134_v15 = vadd.f32 %v3503_v14, %v3501_v13 }
 0xdce   :  { %3506 = vpow2.f32 %v1132_v10 }
 0xdcf   :  { %3508 = vrcp.f32 %v1134_v15 }
 0xdd3   :  { %v3505_v44 = vpop.eup %3504 }
 0xdd4   :  { %v3507_v53 = vpop.eup %3506 }
 0xdd5   :  { %v1135_v16 = vadd.f32 %v3507_v53, %v3505_v44  ;;  %v3509_v17 = vpop.eup %3508 }
 0xdd6   :  { %v1138_v20 = vmul.f32 %v3509_v17, %v3501_v13  ;;  %v1140_v27 = vmul.f32 %v3509_v17, %v3503_v14 }
 0xdd7   :  { %3510 = vrcp.f32 %v1135_v16 }
 0xddd   :  { %v3511_v11 = vpop.eup %3510 }
 0xdde   :  { %v1139_v21 = vmul.f32 %v3511_v11, %v3505_v44  ;;  %v1141_v26 = vmul.f32 %v3511_v11, %v3507_v53 }
 0xde0   :  { %v1142_v22 = vpack.c.bf16 %v1139_v21, %v1138_v20  ;;  %v1143_v24 = vpack.c.bf16 %v1141_v26, %v1140_v27 }
 0xde2   :  { %3332 = vmatmul.msk.bf16.vlgmr.msrb.gmra.mxu1 %vm354_vm6, %v1142_v22 }
 0xde3   :  { %1715 = vmatpush.bf16.msrb.mxu1 %v4183_v19 }
 0xde7   :  { %1716 = vmatpush.bf16.msrb.mxu1 %v4192_v23 }
 0xdf2   :  { %3333 = vmatmul.msk.bf16.gmra.mxu1 %vm354_vm6, %v1143_v24 }
 0xe5f   :  { %v1159_v30 = vpop.f32.mrf.mxu1 }
 0xe60   :  { %v1169_v39 = vmul.f32 %v1159_v30, %v4156_v56 }
 0xe67   :  { %v1161_v28 = vpop.f32.mrf.mxu1 }
 0xe68   :  { %v1170_v42 = vmul.f32 %v1161_v28, %v4156_v56 }
 0xe6f   :  { %v1164_v31 = vpop.f32.mrf.mxu1 }
 0xe70   :  { %v1171_v33 = vmul.f32 %v1164_v31, %v4153_v52 }
 0xe72   :  { %v1173_v19 = vadd.f32 %v1171_v33, %v1169_v39 }
 0xe77   :  { %v1166_v29 = vpop.f32.mrf.mxu1 }
 0xe78   :  { %v1172_v41 = vmul.f32 %v1166_v29, %v4153_v52 }
 0xe7a   :  { %v1174_v60 = vadd.f32 %v1172_v41, %v1170_v42 }
 0xe7c   :  { %v1175_v23 = vpack.c.bf16 %v1174_v60, %v1173_v19 }
 0xe7e   :  { %3334 = vmatmul.msk.bf16.vlgmr.msra.gmra.mxu2 %vm224_vm4, %v1175_v23 }
 0xe7f   :  { %1467 = vmatpush.bf16.msra.mxu2 %v4356_v43 }
 0xe83   :  { %1468 = vmatpush.bf16.msra.mxu2 %v4362_v49 }
 0xf01   :  { %v1188_v51 = vpop.f32.mrf.mxu2 }
 0xf02   :  { %v1189_v50 = vadd.f32 %v4165_v4, %v1188_v51 }
 0xf04   :  { %v1193_v55 = vadd.f32 %v1189_v50, %v4325_v38 }
 0xf06   :  { %v1195_v59 = vsel %vm224_vm4, %v1193_v55, 0.0  ;;  %v1203_v48 = vmul.f32 %v1193_v55, %v1193_v55 }
 0xf07   :  { %1196 = vadd.xlane.f32.xlu0 %v1195_v59 }
 0xf08   :  { %v1205_v34 = vsel %vm224_vm4, %v1203_v48, 0.0  ;;  %v4391_v48 = vld [vmem:[%s5147_s27] sm:$0xff] }
 0xf09   :  { %v1190_v0 = vpop.f32.mrf.mxu2  ;;  %1206 = vadd.xlane.f32.xlu1 %v1205_v34 }
 0xf0a   :  { %v1191_v1 = vadd.f32 %v4165_v4, %v1190_v0 }
 0xf0c   :  { %v1194_v47 = vadd.f32 %v1191_v1, %v4328_v40 }
 0xf0e   :  { %v1198_v61 = vsel %vm224_vm4, %v1194_v47, 0.0  ;;  %v1204_v2 = vmul.f32 %v1194_v47, %v1194_v47 }
 0xf0f   :  { %1199 = vadd.xlane.f32.xlu2 %v1198_v61 }
 0xf10   :  { %v1208_v3 = vsel %vm224_vm4, %v1204_v2, 0.0  ;;  %v4400_v2 = vld [vmem:[%s5107_s26 + $0x8] sm:$0xff] }
 0xf11   :  { %1209 = vadd.xlane.f32.xlu0 %v1208_v3  ;;  %v4406_v3 = vld [vmem:[%s5107_s26] sm:$0xff] }
 0xf7a   :  { %v1197_v38 = vpop.xlane.xlu0 %1196 }
 0xf7b   :  { %v1201_v58 = vmul.f32 %v1197_v38, %v4083_v6 }
 0xf7c   :  { %v1207_v45 = vpop.xlane.xlu1 %1206 }
 0xf7d   :  { %v1213_v46 = vmul.f32 %v1201_v58, %v1201_v58  ;;  %v1211_v8 = vmul.f32 %v1207_v45, %v4083_v6  ;;  %v1217_v31 = vsub.f32 %v1193_v55, %v1201_v58  ;;  %v4385_v55 = vld [vmem:[%s5147_s27 + $0x8] sm:$0xff] }
 0xf7f   :  { %v1215_v9 = vsub.f32 %v1211_v8, %v1213_v46 }
 0xf81   :  { %v1219_v10 = vadd.f32 1e-05, %v1215_v9 }
 0xf82   :  { %v1200_v13 = vpop.xlane.xlu2 %1199 }
 0xf83   :  { %3512 = vrsqrt.f32 %v1219_v10  ;;  %v1202_v4 = vmul.f32 %v1200_v13, %v4083_v6  ;;  %vm1227_vm7 = vweird.f32 %v1219_v10 }
 0xf84   :  { %v1210_v40 = vpop.xlane.xlu0 %1209 }
 0xf85   :  { %v1214_v14 = vmul.f32 %v1202_v4, %v1202_v4  ;;  %v1212_v15 = vmul.f32 %v1210_v40, %v4083_v6  ;;  %v1218_v42 = vsub.f32 %v1194_v47, %v1202_v4 }
 0xf87   :  { %v1216_v44 = vsub.f32 %v1212_v15, %v1214_v14 }
 0xf89   :  { %v3513_v53 = vpop.eup %3512  ;;  %v1220_v16 = vadd.f32 1e-05, %v1216_v44 }
 0xf8a   :  { %v1222_v17 = vmul.f32 %v3513_v53, %v1219_v10  ;;  %vm1228_vm3 = vweird.f32 %v3513_v53 }
 0xf8b   :  { %3514 = vrsqrt.f32 %v1220_v16  ;;  %vm1229_vm8 = vmor %vm1227_vm7, %vm1228_vm3  ;;  %vm1237_vm10 = vweird.f32 %v1220_v16 }
 0xf8c   :  { %v1223_v11 = vmul.f32 %v3513_v53, %v1222_v17 }
 0xf8e   :  { %v1224_v20 = vmul.f32 0.5, %v1223_v11 }
 0xf90   :  { %v1225_v21 = vsub.f32 1.5, %v1224_v20 }
 0xf91   :  { %v3515_v22 = vpop.eup %3514 }
 0xf92   :  { %v1226_v26 = vmul.f32 %v3513_v53, %v1225_v21  ;;  %v1232_v27 = vmul.f32 %v3515_v22, %v1220_v16  ;;  %vm1238_vm9 = vweird.f32 %v3515_v22 }
 0xf93   :  { %vm1239_vm11 = vmor %vm1237_vm10, %vm1238_vm9 }
 0xf94   :  { %v1233_v24 = vmul.f32 %v3515_v22, %v1232_v27  ;;  %v1230_v30 = vsel %vm1229_vm8, %v3513_v53, %v1226_v26 }
 0xf95   :  { %v1241_v29 = vmul.f32 %v1230_v30, %v1217_v31 }
 0xf96   :  { %v1234_v28 = vmul.f32 0.5, %v1233_v24 }
 0xf97   :  { %v1243_v19 = vmul.f32 %v4209_v5, %v1241_v29 }
 0xf98   :  { %v1235_v33 = vsub.f32 1.5, %v1234_v28 }
 0xf99   :  { %v1245_v51 = vadd.f32 %v4216_v12, %v1243_v19 }
 0xf9a   :  { %v1236_v39 = vmul.f32 %v3515_v22, %v1235_v33 }
 0xf9c   :  { %v1240_v41 = vsel %vm1239_vm11, %v3515_v22, %v1236_v39 }
 0xf9d   :  { %v1242_v60 = vmul.f32 %v1240_v41, %v1218_v42 }
 0xf9f   :  { %v1244_v23 = vmul.f32 %v4209_v5, %v1242_v60 }
 0xfa1   :  { %v1246_v50 = vadd.f32 %v4216_v12, %v1244_v23 }
 0xfa3   :  { %v1247_v59 = vpack.c.bf16 %v1246_v50, %v1245_v51 }
 0xfa5   :  { %3335 = vmatmul.msk.bf16.vlgmr.msra.gmra.mxu3 %vm224_vm4, %v1247_v59 }
 0xfa6   :  { %1539 = vmatpush.bf16.msra.mxu3 %v4385_v55 }
 0xfaa   :  { %1540 = vmatpush.bf16.msra.mxu3 %v4391_v48 }
0x1028   :  { %v1260_v5 = vpop.f32.mrf.mxu3 }
0x1029   :  { %v1261_v12 = vadd.f32 %v4247_v54, %v1260_v5 }
0x102b   :  { %v1265_v1 = vmax.f32 %v1261_v12, 0.0 }
0x1030   :  { %v1262_v34 = vpop.f32.mrf.mxu3 }
0x1031   :  { %v1263_v0 = vadd.f32 %v4247_v54, %v1262_v34 }
0x1033   :  { %v1266_v47 = vmax.f32 %v1263_v0, 0.0 }
0x1035   :  { %v1267_v61 = vpack.c.bf16 %v1266_v47, %v1265_v1 }
0x1037   :  { %3336 = vmatmul.msk.bf16.vlgmr.msrb.gmra.mxu2 %vm803_vm5, %v1267_v61 }
0x1038   :  { %1565 = vmatpush.bf16.msrb.mxu2 %v4400_v2 }
0x103c   :  { %1566 = vmatpush.bf16.msrb.mxu2 %v4406_v3 }
0x10ba   :  { %v1280_v54 = vpop.f32.mrf.mxu2 }
0x10bb   :  { %v1281_v38 = vadd.f32 %v4257_v25, %v1280_v54 }
0x10bd   :  { %v1285_v58 = vadd.f32 %v1281_v38, %v1245_v51 }
0x10bf   :  { %v1287_v45 = vsel %vm224_vm4, %v1285_v58, 0.0  ;;  %v1295_v46 = vmul.f32 %v1285_v58, %v1285_v58 }
0x10c0   :  { %1288 = vadd.xlane.f32.xlu2 %v1287_v45 }
0x10c1   :  { %v1297_v8 = vsel %vm224_vm4, %v1295_v46, 0.0  ;;  %v4434_v46 = vld [vmem:[%s5143_s30] ss:$0 sm:$0xff] }
0x10c2   :  { %v1282_v9 = vpop.f32.mrf.mxu2  ;;  %1298 = vadd.xlane.f32.xlu0 %v1297_v8 }
0x10c3   :  { %v1283_v10 = vadd.f32 %v4257_v25, %v1282_v9 }
0x10c5   :  { %v1286_v13 = vadd.f32 %v1283_v10, %v1246_v50 }
0x10c7   :  { %v1290_v4 = vsel %vm224_vm4, %v1286_v13, 0.0  ;;  %v1296_v40 = vmul.f32 %v1286_v13, %v1286_v13 }
0x10c8   :  { %1291 = vadd.xlane.f32.xlu1 %v1290_v4 }
0x10c9   :  { %v1300_v14 = vsel %vm224_vm4, %v1296_v40, 0.0 }
0x10ca   :  { %1301 = vadd.xlane.f32.xlu2 %v1300_v14 }
0x1133   :  { %v1289_v15 = vpop.xlane.xlu2 %1288 }
0x1134   :  { %v1293_v44 = vmul.f32 %v1289_v15, %v4083_v6 }
0x1135   :  { %v1299_v53 = vpop.xlane.xlu0 %1298 }
0x1136   :  { %v1305_v16 = vmul.f32 %v1293_v44, %v1293_v44  ;;  %v1303_v17 = vmul.f32 %v1299_v53, %v4083_v6  ;;  %v1309_v50 = vsub.f32 %v1285_v58, %v1293_v44 }
0x1138   :  { %v1307_v11 = vsub.f32 %v1303_v17, %v1305_v16 }
0x113a   :  { %v1311_v20 = vadd.f32 1e-05, %v1307_v11 }
0x113b   :  { %v1292_v21 = vpop.xlane.xlu1 %1291 }
0x113c   :  { %3516 = vrsqrt.f32 %v1311_v20  ;;  %v1294_v25 = vmul.f32 %v1292_v21, %v4083_v6  ;;  %vm1319_vm13 = vweird.f32 %v1311_v20 }
0x113d   :  { %v1302_v22 = vpop.xlane.xlu2 %1301 }
0x113e   :  { %v1306_v26 = vmul.f32 %v1294_v25, %v1294_v25  ;;  %v1304_v27 = vmul.f32 %v1302_v22, %v4083_v6  ;;  %v1310_v34 = vsub.f32 %v1286_v13, %v1294_v25 }
0x1140   :  { %v1308_v24 = vsub.f32 %v1304_v27, %v1306_v26 }
0x1142   :  { %v3517_v30 = vpop.eup %3516  ;;  %v1312_v28 = vadd.f32 1e-05, %v1308_v24 }
0x1143   :  { %v1314_v31 = vmul.f32 %v3517_v30, %v1311_v20  ;;  %vm1320_vm12 = vweird.f32 %v3517_v30 }
0x1144   :  { %3518 = vrsqrt.f32 %v1312_v28  ;;  %vm1321_vm14 = vmor %vm1319_vm13, %vm1320_vm12  ;;  %vm1329_vm0 = vweird.f32 %v1312_v28 }
0x1145   :  { %v1315_v33 = vmul.f32 %v3517_v30, %v1314_v31 }
0x1147   :  { %v1316_v29 = vmul.f32 0.5, %v1315_v33 }
0x1149   :  { %v1317_v39 = vsub.f32 1.5, %v1316_v29 }
0x114a   :  { %v3519_v42 = vpop.eup %3518 }
0x114b   :  { %v1318_v41 = vmul.f32 %v3517_v30, %v1317_v39  ;;  %v1324_v19 = vmul.f32 %v3519_v42, %v1312_v28  ;;  %vm1330_vm15 = vweird.f32 %v3519_v42 }
0x114c   :  { %vm1331_vm1 = vmor %vm1329_vm0, %vm1330_vm15 }
0x114d   :  { %v1325_v60 = vmul.f32 %v3519_v42, %v1324_v19  ;;  %v1322_v23 = vsel %vm1321_vm14, %v3517_v30, %v1318_v41 }
0x114e   :  { %v1333_v5 = vmul.f32 %v1322_v23, %v1309_v50  ;;  %v4452_v23 = vld [vmem:[%s5140_s1 + $0x8] sm:$0xff] }
0x114f   :  { %v1326_v51 = vmul.f32 0.5, %v1325_v60 }
0x1150   :  { %v1335_v1 = vmul.f32 %v4272_v37, %v1333_v5 }
0x1151   :  { %v1327_v59 = vsub.f32 1.5, %v1326_v51  ;;  %v4458_v51 = vld [vmem:[%s5140_s1] sm:$0xff] }
0x1152   :  { %v4422_v54 = vadd.f32 %v4278_v32, %v1335_v1 }
0x1153   :  { %v1328_v12 = vmul.f32 %v3519_v42, %v1327_v59 }
0x1155   :  { %v1332_v0 = vsel %vm1331_vm1, %v3519_v42, %v1328_v12 }
0x1156   :  { %v1334_v47 = vmul.f32 %v1332_v0, %v1310_v34 }
0x1158   :  { %v1336_v61 = vmul.f32 %v4272_v37, %v1334_v47 }
0x115a   :  { %v4425_v38 = vadd.f32 %v4278_v32, %v1336_v61 }
0x115c   :  { %v1339_v58 = vpack.c.bf16 %v4425_v38, %v4422_v54 }
0x115e   :  { %3337 = vmatmul.msk.bf16.vlgmr.msrb.gmra.mxu3 %vm224_vm4, %v1339_v58 }
0x115f   :  { %1615 = vmatpush.bf16.msrb.mxu3 %v4027_v62 }
0x11e1   :  { %v1352_v45 = vpop.f32.mrf.mxu3 }
0x11e2   :  { %v1353_v37 = vadd.f32 %v4434_v46, %v1352_v45 }
0x11e4   :  { %1445 = vrot.lane.b32.xlu2 %v1353_v37, %s3748_s3  ;;  %1359 = vrot.lane.b32.xlu1 %v1353_v37, %s3749_s9 }
0x11e9   :  { %v1354_v32 = vpop.f32.mrf.mxu3 }
0x11ea   :  { %v1355_v8 = vadd.f32 %v4434_v46, %v1354_v32 }
0x11ec   :  { %1361 = vrot.lane.b32.xlu0 %v1355_v8, %s3749_s9 }
0x11f4   :  { %1447 = vrot.lane.b32.xlu0 %v1355_v8, %s3748_s3 }
0x123e   :  { %v1446_v61 = vpop.permute.xlu2 %1445 }
0x1256   :  { %v1360_v9 = vpop.permute.xlu1 %1359 }
0x1257   :  { %v1365_v10 = vmul.f32 %v1360_v9, %v1353_v37  ;;  %v1366_v13 = vmul.f32 %v1360_v9, %v1355_v8 }
0x1259   :  { %v1369_v4 = vpack.c.bf16 %v1366_v13, %v1365_v10 }
0x125b   :  { %3338 = vmatmul.msk.bf16.vlgmr.msra.gmra.mxu0 %vm224_vm4, %v1369_v4  ;;  %v4468_v4 = vld [vmem:[%s5145_s12] ss:$0 sm:$0xff] }
0x125c   :  { %1733 = vmatpush.bf16.msra.mxu0 %v4202_v36 }
0x125e   :  { %v1362_v40 = vpop.permute.xlu0 %1361 }
0x125f   :  { %v1367_v14 = vmul.f32 %v1362_v40, %v1353_v37  ;;  %v1368_v15 = vmul.f32 %v1362_v40, %v1355_v8 }
0x1260   :  { %1734 = vmatpush.bf16.msra.mxu0 %v4227_v7 }
0x1261   :  { %v1370_v44 = vpack.c.bf16 %v1368_v15, %v1367_v14 }
0x1264   :  { %1735 = vmatpush.bf16.msra.mxu0 %v4233_v18 }
0x1266   :  { %v1448_v1 = vpop.permute.xlu0 %1447 }
0x1268   :  { %1736 = vmatpush.bf16.msra.mxu0 %v4239_v57 }
0x126b   :  { %3339 = vmatmul.msk.bf16.gmra.mxu0 %vm224_vm4, %v1370_v44 }
0x12d8   :  { %v1386_v53 = vpop.f32.mrf.mxu0 }
0x12e0   :  { %v1388_v16 = vpop.f32.mrf.mxu0 }
0x12e8   :  { %v1391_v17 = vpop.f32.mrf.mxu0 }
0x12e9   :  { %v1396_v11 = vmax.f32 %v1386_v53, %v1391_v17 }
0x12eb   :  { %v1398_v20 = vsub.f32 %v1386_v53, %v1396_v11  ;;  %v1400_v21 = vsub.f32 %v1391_v17, %v1396_v11 }
0x12ed   :  { %v1402_v25 = vmul.f32 1.442695, %v1398_v20  ;;  %v1406_v36 = vmul.f32 1.442695, %v1400_v21 }
0x12ef   :  { %3520 = vpow2.f32 %v1402_v25 }
0x12f0   :  { %v1393_v22 = vpop.f32.mrf.mxu0  ;;  %3522 = vpow2.f32 %v1406_v36 }
0x12f1   :  { %v1397_v7 = vmax.f32 %v1388_v16, %v1393_v22 }
0x12f3   :  { %v1399_v18 = vsub.f32 %v1388_v16, %v1397_v7  ;;  %v1401_v26 = vsub.f32 %v1393_v22, %v1397_v7 }
0x12f5   :  { %v1404_v27 = vmul.f32 1.442695, %v1399_v18  ;;  %v1408_v24 = vmul.f32 1.442695, %v1401_v26  ;;  %v3521_v57 = vpop.eup %3520 }
0x12f6   :  { %v3523_v30 = vpop.eup %3522 }
0x12f7   :  { %3524 = vpow2.f32 %v1404_v27  ;;  %v1410_v28 = vadd.f32 %v3523_v30, %v3521_v57 }
0x12f8   :  { %3526 = vpow2.f32 %v1408_v24 }
0x12f9   :  { %3528 = vrcp.f32 %v1410_v28 }
0x12fd   :  { %v3525_v31 = vpop.eup %3524 }
0x12fe   :  { %v3527_v33 = vpop.eup %3526 }
0x12ff   :  { %v1411_v29 = vadd.f32 %v3527_v33, %v3525_v31  ;;  %v3529_v39 = vpop.eup %3528 }
0x1300   :  { %v1414_v41 = vmul.f32 %v3529_v39, %v3521_v57  ;;  %v1416_v59 = vmul.f32 %v3529_v39, %v3523_v30 }
0x1301   :  { %3530 = vrcp.f32 %v1411_v29 }
0x1307   :  { %v3531_v42 = vpop.eup %3530 }
0x1308   :  { %v1415_v19 = vmul.f32 %v3531_v42, %v3525_v31  ;;  %v1417_v50 = vmul.f32 %v3531_v42, %v3527_v33 }
0x130a   :  { %v1418_v60 = vpack.c.bf16 %v1415_v19, %v1414_v41  ;;  %v1419_v5 = vpack.c.bf16 %v1417_v50, %v1416_v59 }
0x130c   :  { %3340 = vmatmul.msk.bf16.vlgmr.msra.gmra.mxu1 %vm354_vm6, %v1418_v60 }
0x130d   :  { %1807 = vmatpush.bf16.msra.mxu1 %v4452_v23 }
0x1311   :  { %1808 = vmatpush.bf16.msra.mxu1 %v4458_v51 }
0x131c   :  { %3341 = vmatmul.msk.bf16.gmra.mxu1 %vm354_vm6, %v1419_v5 }
0x1389   :  { %v1435_v12 = vpop.f32.mrf.mxu1 }
0x138a   :  { %v1451_v45 = vmul.f32 %v1446_v61, %v1435_v12 }
0x1391   :  { %v1437_v34 = vpop.f32.mrf.mxu1 }
0x1392   :  { %v1452_v37 = vmul.f32 %v1446_v61, %v1437_v34 }
0x1399   :  { %v1440_v0 = vpop.f32.mrf.mxu1 }
0x139a   :  { %v1453_v47 = vmul.f32 %v1448_v1, %v1440_v0 }
0x139c   :  { %v1455_v8 = vadd.f32 %v1453_v47, %v1451_v45 }
0x13a1   :  { %v1442_v58 = vpop.f32.mrf.mxu1 }
0x13a2   :  { %v1454_v32 = vmul.f32 %v1448_v1, %v1442_v58 }
0x13a4   :  { %v1456_v9 = vadd.f32 %v1454_v32, %v1452_v37  ;;  %v4485_v37 = vld [vmem:[%s5095_s14] ss:$0 sm:$0xff] }
0x13a6   :  { %v1457_v10 = vpack.c.bf16 %v1456_v9, %v1455_v8 }
0x13a8   :  { %3342 = vmatmul.msk.bf16.vlgmr.msra.gmra.mxu2 %vm224_vm4, %v1457_v10  ;;  %v4492_v10 = vld [vmem:[%s5096_s15] ss:$0 sm:$0xff] }
0x13a9   :  { %1841 = vmatpush.bf16.msra.mxu2 %v4400_v2 }
0x13ad   :  { %1842 = vmatpush.bf16.msra.mxu2 %v4406_v3 }
0x142b   :  { %v1470_v13 = vpop.f32.mrf.mxu2 }
0x142c   :  { %v1471_v40 = vadd.f32 %v4468_v4, %v1470_v13 }
0x142e   :  { %v1475_v14 = vadd.f32 %v1471_v40, %v4422_v54 }
0x1430   :  { %v1477_v15 = vsel %vm224_vm4, %v1475_v14, 0.0  ;;  %v1485_v44 = vmul.f32 %v1475_v14, %v1475_v14 }
0x1431   :  { %1478 = vadd.xlane.f32.xlu1 %v1477_v15 }
0x1432   :  { %v1487_v53 = vsel %vm224_vm4, %v1485_v44, 0.0  ;;  %v4507_v44 = vld [vmem:[%s5148_s6] ss:$0 sm:$0xff] }
0x1433   :  { %v1472_v16 = vpop.f32.mrf.mxu2  ;;  %1488 = vadd.xlane.f32.xlu2 %v1487_v53 }
0x1434   :  { %v1473_v17 = vadd.f32 %v4468_v4, %v1472_v16 }
0x1436   :  { %v1476_v11 = vadd.f32 %v1473_v17, %v4425_v38 }
0x1438   :  { %v1480_v20 = vsel %vm224_vm4, %v1476_v11, 0.0  ;;  %v1486_v21 = vmul.f32 %v1476_v11, %v1476_v11 }
0x1439   :  { %1481 = vadd.xlane.f32.xlu0 %v1480_v20 }
0x143a   :  { %v1490_v25 = vsel %vm224_vm4, %v1486_v21, 0.0 }
0x143b   :  { %1491 = vadd.xlane.f32.xlu1 %v1490_v25  ;;  %v4517_v25 = vld [vmem:[%s5149_s29 + $0x8] sm:$0xff] }
0x14a4   :  { %v1479_v54 = vpop.xlane.xlu1 %1478 }
0x14a5   :  { %v1483_v36 = vmul.f32 %v1479_v54, %v4083_v6  ;;  %v4523_v54 = vld [vmem:[%s5149_s29] sm:$0xff] }
0x14a6   :  { %v1489_v22 = vpop.xlane.xlu2 %1488 }
0x14a7   :  { %v1495_v7 = vmul.f32 %v1483_v36, %v1483_v36  ;;  %v1493_v18 = vmul.f32 %v1489_v22, %v4083_v6  ;;  %v1499_v0 = vsub.f32 %v1475_v14, %v1483_v36 }
0x14a9   :  { %v1497_v26 = vsub.f32 %v1493_v18, %v1495_v7 }
0x14ab   :  { %v1501_v27 = vadd.f32 1e-05, %v1497_v26 }
0x14ac   :  { %v1482_v24 = vpop.xlane.xlu0 %1481 }
0x14ad   :  { %3532 = vrsqrt.f32 %v1501_v27  ;;  %v1484_v38 = vmul.f32 %v1482_v24, %v4083_v6  ;;  %vm1509_vm3 = vweird.f32 %v1501_v27 }
0x14ae   :  { %v1492_v57 = vpop.xlane.xlu1 %1491 }
0x14af   :  { %v1496_v30 = vmul.f32 %v1484_v38, %v1484_v38  ;;  %v1494_v28 = vmul.f32 %v1492_v57, %v4083_v6  ;;  %v1500_v58 = vsub.f32 %v1476_v11, %v1484_v38 }
0x14b1   :  { %v1498_v31 = vsub.f32 %v1494_v28, %v1496_v30 }
0x14b3   :  { %v3533_v33 = vpop.eup %3532  ;;  %v1502_v29 = vadd.f32 1e-05, %v1498_v31 }
0x14b4   :  { %v1504_v39 = vmul.f32 %v3533_v33, %v1501_v27  ;;  %vm1510_vm2 = vweird.f32 %v3533_v33 }
0x14b5   :  { %3534 = vrsqrt.f32 %v1502_v29  ;;  %vm1511_vm7 = vmor %vm1509_vm3, %vm1510_vm2  ;;  %vm1519_vm9 = vweird.f32 %v1502_v29 }
0x14b6   :  { %v1505_v42 = vmul.f32 %v3533_v33, %v1504_v39 }
0x14b8   :  { %v1506_v41 = vmul.f32 0.5, %v1505_v42 }
0x14ba   :  { %v1507_v19 = vsub.f32 1.5, %v1506_v41 }
0x14bb   :  { %v3535_v60 = vpop.eup %3534 }
0x14bc   :  { %v1508_v50 = vmul.f32 %v3533_v33, %v1507_v19  ;;  %v1514_v59 = vmul.f32 %v3535_v60, %v1502_v29  ;;  %vm1520_vm8 = vweird.f32 %v3535_v60 }
0x14bd   :  { %vm1521_vm10 = vmor %vm1519_vm9, %vm1520_vm8 }
0x14be   :  { %v1515_v5 = vmul.f32 %v3535_v60, %v1514_v59  ;;  %v1512_v12 = vsel %vm1511_vm7, %v3533_v33, %v1508_v50 }
0x14bf   :  { %v1523_v47 = vmul.f32 %v1512_v12, %v1499_v0 }
0x14c0   :  { %v1516_v34 = vmul.f32 0.5, %v1515_v5 }
0x14c1   :  { %v1525_v32 = vmul.f32 %v4485_v37, %v1523_v47 }
0x14c2   :  { %v1517_v1 = vsub.f32 1.5, %v1516_v34 }
0x14c3   :  { %v4495_v13 = vadd.f32 %v4492_v10, %v1525_v32 }
0x14c4   :  { %v1518_v61 = vmul.f32 %v3535_v60, %v1517_v1 }
0x14c6   :  { %v1522_v45 = vsel %vm1521_vm10, %v3535_v60, %v1518_v61 }
0x14c7   :  { %v1524_v8 = vmul.f32 %v1522_v45, %v1500_v58  ;;  %v4533_v58 = vld [vmem:[%s5101_s20 + $0x8] sm:$0xff]  ;;  %v4539_v45 = vld [vmem:[%s5101_s20] sm:$0xff] }
0x14c9   :  { %v1526_v9 = vmul.f32 %v4485_v37, %v1524_v8 }
0x14cb   :  { %v4498_v40 = vadd.f32 %v4492_v10, %v1526_v9 }
0x14cd   :  { %v1529_v14 = vpack.c.bf16 %v4498_v40, %v4495_v13 }
0x14cf   :  { %3343 = vmatmul.msk.bf16.vlgmr.msra.gmra.mxu3 %vm224_vm4, %v1529_v14 }
0x14d0   :  { %1891 = vmatpush.bf16.msra.mxu3 %v4027_v62 }
0x1552   :  { %v1542_v15 = vpop.f32.mrf.mxu3 }
0x1553   :  { %v1543_v53 = vadd.f32 %v4507_v44, %v1542_v15 }
0x1555   :  { %v1547_v11 = vmul.f32 %v1543_v53, %v4079_v35  ;;  %v1549_v22 = vmul.f32 %v1543_v53, %v4074_v63 }
0x155a   :  { %v1544_v16 = vpop.f32.mrf.mxu3 }
0x155b   :  { %v1545_v17 = vadd.f32 %v4507_v44, %v1544_v16 }
0x155d   :  { %v1548_v20 = vmul.f32 %v1545_v17, %v4079_v35  ;;  %v1550_v36 = vmul.f32 %v1545_v17, %v4074_v63 }
0x155f   :  { %v1551_v21 = vpack.c.bf16 %v1548_v20, %v1547_v11  ;;  %v1552_v7 = vpack.c.bf16 %v1550_v36, %v1549_v22 }
0x1561   :  { %3344 = vmatmul.msk.bf16.vlgmr.msrb.gmra.mxu2 %vm224_vm4, %v1551_v21 }
0x1562   :  { %2101 = vmatpush.bf16.msrb.mxu2 %v4517_v25 }
0x1566   :  { %2102 = vmatpush.bf16.msrb.mxu2 %v4523_v54 }
0x1571   :  { %3345 = vmatmul.msk.bf16.gmra.mxu2 %vm224_vm4, %v1552_v7 }
0x15e4   :  { %v1568_v18 = vpop.f32.mrf.mxu2 }
0x15ec   :  { %v1570_v26 = vpop.f32.mrf.mxu2 }
0x15f4   :  { %v1573_v27 = vpop.f32.mrf.mxu2 }
0x15f5   :  { %v1578_v24 = vmax.f32 %v1568_v18, %v1573_v27 }
0x15f7   :  { %v1580_v38 = vsub.f32 %v1568_v18, %v1578_v24  ;;  %v1582_v57 = vsub.f32 %v1573_v27, %v1578_v24 }
0x15f9   :  { %v1584_v30 = vmul.f32 1.442695, %v1580_v38  ;;  %v1588_v28 = vmul.f32 1.442695, %v1582_v57 }
0x15fb   :  { %3536 = vpow2.f32 %v1584_v30 }
0x15fc   :  { %v1575_v31 = vpop.f32.mrf.mxu2  ;;  %3538 = vpow2.f32 %v1588_v28 }
0x15fd   :  { %v1579_v33 = vmax.f32 %v1570_v26, %v1575_v31 }
0x15ff   :  { %v1581_v29 = vsub.f32 %v1570_v26, %v1579_v33  ;;  %v1583_v39 = vsub.f32 %v1575_v31, %v1579_v33  ;;  %v4553_v26 = vld [vmem:[%s5094_s13] ss:$0 sm:$0xff] }
0x1601   :  { %v1586_v42 = vmul.f32 1.442695, %v1581_v29  ;;  %v1590_v41 = vmul.f32 1.442695, %v1583_v39  ;;  %v3537_v19 = vpop.eup %3536 }
0x1602   :  { %v3539_v60 = vpop.eup %3538 }
0x1603   :  { %3540 = vpow2.f32 %v1586_v42  ;;  %v1592_v50 = vadd.f32 %v3539_v60, %v3537_v19 }
0x1604   :  { %3542 = vpow2.f32 %v1590_v41 }
0x1605   :  { %3544 = vrcp.f32 %v1592_v50 }
0x1609   :  { %v3541_v59 = vpop.eup %3540 }
0x160a   :  { %v3543_v5 = vpop.eup %3542 }
0x160b   :  { %v1593_v12 = vadd.f32 %v3543_v5, %v3541_v59  ;;  %v3545_v34 = vpop.eup %3544 }
0x160c   :  { %v1596_v1 = vmul.f32 %v3545_v34, %v3537_v19  ;;  %v1598_v8 = vmul.f32 %v3545_v34, %v3539_v60 }
0x160d   :  { %3546 = vrcp.f32 %v1593_v12 }
0x1613   :  { %v3547_v0 = vpop.eup %3546 }
0x1614   :  { %v1597_v47 = vmul.f32 %v3547_v0, %v3541_v59  ;;  %v1599_v32 = vmul.f32 %v3547_v0, %v3543_v5 }
0x1616   :  { %v1600_v61 = vpack.c.bf16 %v1597_v47, %v1596_v1  ;;  %v1601_v9 = vpack.c.bf16 %v1599_v32, %v1598_v8 }
0x1618   :  { %3346 = vmatmul.msk.bf16.vlgmr.msrb.gmra.mxu3 %vm354_vm6, %v1600_v61 }
0x1619   :  { %2173 = vmatpush.bf16.msrb.mxu3 %v4533_v58 }
0x161d   :  { %2174 = vmatpush.bf16.msrb.mxu3 %v4539_v45 }
0x1628   :  { %3347 = vmatmul.msk.bf16.gmra.mxu3 %vm354_vm6, %v1601_v9 }
0x169b   :  { %v1617_v14 = vpop.f32.mrf.mxu3 }
0x169c   :  { %v1627_v11 = vmul.f32 %v1617_v14, %v4156_v56 }
0x16a3   :  { %v1619_v15 = vpop.f32.mrf.mxu3 }
0x16a4   :  { %v1628_v20 = vmul.f32 %v1619_v15, %v4156_v56 }
0x16ab   :  { %v1622_v53 = vpop.f32.mrf.mxu3 }
0x16ac   :  { %v1629_v16 = vmul.f32 %v1622_v53, %v4153_v52 }
0x16ae   :  { %v1631_v36 = vadd.f32 %v1629_v16, %v1627_v11 }
0x16b3   :  { %v1624_v17 = vpop.f32.mrf.mxu3 }
0x16b4   :  { %v1630_v21 = vmul.f32 %v1624_v17, %v4153_v52 }
0x16b6   :  { %v1632_v22 = vadd.f32 %v1630_v21, %v1628_v20 }
0x16b8   :  { %v1633_v7 = vpack.c.bf16 %v1632_v22, %v1631_v36 }
0x16ba   :  { %3348 = vmatmul.msk.bf16.vlgmr.msrb.gmra.mxu0 %vm224_vm4, %v1633_v7 }
0x16bb   :  { %1925 = vmatpush.bf16.msrb.mxu0 %v4356_v43 }
0x16bf   :  { %1926 = vmatpush.bf16.msrb.mxu0 %v4362_v49 }
0x1737   :  { %v1646_v18 = vpop.f32.mrf.mxu0 }
0x1738   :  { %v1647_v27 = vadd.f32 %v4553_v26, %v1646_v18 }
0x173a   :  { %v1651_v24 = vadd.f32 %v1647_v27, %v4495_v13  ;;  %v4570_v27 = vld [vmem:[%s5097_s16] ss:$0 sm:$0xff] }
0x173c   :  { %v1653_v38 = vsel %vm224_vm4, %v1651_v24, 0.0  ;;  %v1661_v57 = vmul.f32 %v1651_v24, %v1651_v24 }
0x173d   :  { %1654 = vadd.xlane.f32.xlu0 %v1653_v38 }
0x173e   :  { %v1663_v30 = vsel %vm224_vm4, %v1661_v57, 0.0 }
0x173f   :  { %v1648_v28 = vpop.f32.mrf.mxu0  ;;  %1664 = vadd.xlane.f32.xlu1 %v1663_v30 }
0x1740   :  { %v1649_v43 = vadd.f32 %v4553_v26, %v1648_v28 }
0x1742   :  { %v1652_v49 = vadd.f32 %v1649_v43, %v4498_v40 }
0x1744   :  { %v1656_v31 = vsel %vm224_vm4, %v1652_v49, 0.0  ;;  %v1662_v33 = vmul.f32 %v1652_v49, %v1652_v49 }
0x1745   :  { %1657 = vadd.xlane.f32.xlu2 %v1656_v31 }
0x1746   :  { %v1666_v29 = vsel %vm224_vm4, %v1662_v33, 0.0  ;;  %v4587_v33 = vld [vmem:[%s5102_s21] ss:$0 sm:$0xff] }
0x1747   :  { %1667 = vadd.xlane.f32.xlu0 %v1666_v29 }
0x17b0   :  { %v1655_v13 = vpop.xlane.xlu0 %1654 }
0x17b1   :  { %v1659_v39 = vmul.f32 %v1655_v13, %v4083_v6 }
0x17b2   :  { %v1665_v42 = vpop.xlane.xlu1 %1664 }
0x17b3   :  { %v1671_v41 = vmul.f32 %v1659_v39, %v1659_v39  ;;  %v1669_v19 = vmul.f32 %v1665_v42, %v4083_v6  ;;  %v1675_v20 = vsub.f32 %v1651_v24, %v1659_v39  ;;  %v4577_v24 = vld [vmem:[%s5098_s17] ss:$0 sm:$0xff] }
0x17b5   :  { %v1673_v60 = vsub.f32 %v1669_v19, %v1671_v41 }
0x17b7   :  { %v1677_v50 = vadd.f32 1e-05, %v1673_v60 }
0x17b8   :  { %v1658_v59 = vpop.xlane.xlu2 %1657 }
0x17b9   :  { %3548 = vrsqrt.f32 %v1677_v50  ;;  %v1660_v40 = vmul.f32 %v1658_v59, %v4083_v6  ;;  %vm1685_vm12 = vweird.f32 %v1677_v50 }
0x17ba   :  { %v1668_v5 = vpop.xlane.xlu0 %1667 }
0x17bb   :  { %v1672_v12 = vmul.f32 %v1660_v40, %v1660_v40  ;;  %v1670_v34 = vmul.f32 %v1668_v5, %v4083_v6  ;;  %v1676_v7 = vsub.f32 %v1652_v49, %v1660_v40 }
0x17bd   :  { %v1674_v0 = vsub.f32 %v1670_v34, %v1672_v12 }
0x17bf   :  { %v3549_v1 = vpop.eup %3548  ;;  %v1678_v47 = vadd.f32 1e-05, %v1674_v0 }
0x17c0   :  { %v1680_v61 = vmul.f32 %v3549_v1, %v1677_v50  ;;  %vm1686_vm11 = vweird.f32 %v3549_v1 }
0x17c1   :  { %3550 = vrsqrt.f32 %v1678_v47  ;;  %vm1687_vm13 = vmor %vm1685_vm12, %vm1686_vm11  ;;  %vm1695_vm15 = vweird.f32 %v1678_v47 }
0x17c2   :  { %v1681_v32 = vmul.f32 %v3549_v1, %v1680_v61 }
0x17c4   :  { %v1682_v8 = vmul.f32 0.5, %v1681_v32 }
0x17c6   :  { %v1683_v9 = vsub.f32 1.5, %v1682_v8 }
0x17c7   :  { %v3551_v14 = vpop.eup %3550 }
0x17c8   :  { %v1684_v15 = vmul.f32 %v3549_v1, %v1683_v9  ;;  %v1690_v53 = vmul.f32 %v3551_v14, %v1678_v47  ;;  %vm1696_vm14 = vweird.f32 %v3551_v14 }
0x17c9   :  { %vm1697_vm0 = vmor %vm1695_vm15, %vm1696_vm14 }
0x17ca   :  { %v1691_v16 = vmul.f32 %v3551_v14, %v1690_v53  ;;  %v1688_v17 = vsel %vm1687_vm13, %v3549_v1, %v1684_v15 }
0x17cb   :  { %v1699_v36 = vmul.f32 %v1688_v17, %v1675_v20 }
0x17cc   :  { %v1692_v11 = vmul.f32 0.5, %v1691_v16 }
0x17cd   :  { %v1701_v38 = vmul.f32 %v4570_v27, %v1699_v36 }
0x17ce   :  { %v1693_v21 = vsub.f32 1.5, %v1692_v11 }
0x17cf   :  { %v1703_v28 = vadd.f32 %v4577_v24, %v1701_v38 }
0x17d0   :  { %v1694_v22 = vmul.f32 %v3551_v14, %v1693_v21 }
0x17d2   :  { %v1698_v18 = vsel %vm1697_vm0, %v3551_v14, %v1694_v22 }
0x17d3   :  { %v1700_v57 = vmul.f32 %v1698_v18, %v1676_v7 }
0x17d5   :  { %v1702_v30 = vmul.f32 %v4570_v27, %v1700_v57 }
0x17d7   :  { %v1704_v43 = vadd.f32 %v4577_v24, %v1702_v30 }
0x17d9   :  { %v1705_v49 = vpack.c.bf16 %v1704_v43, %v1703_v28 }
0x17db   :  { %3349 = vmatmul.msk.bf16.vlgmr.msrb.gmra.mxu1 %vm224_vm4, %v1705_v49 }
0x17dc   :  { %1997 = vmatpush.bf16.msrb.mxu1 %v4385_v55 }
0x17e0   :  { %1998 = vmatpush.bf16.msrb.mxu1 %v4391_v48  ;;  %v4597_v48 = vld [vmem:[%s5104_s23] ss:$0 sm:$0xff] }
0x1858   :  { %v1718_v31 = vpop.f32.mrf.mxu1 }
0x1859   :  { %v1719_v29 = vadd.f32 %v4587_v33, %v1718_v31 }
0x185b   :  { %v1723_v42 = vmax.f32 %v1719_v29, 0.0 }
0x1860   :  { %v1720_v13 = vpop.f32.mrf.mxu1 }
0x1861   :  { %v1721_v39 = vadd.f32 %v4587_v33, %v1720_v13 }
0x1863   :  { %v1724_v41 = vmax.f32 %v1721_v39, 0.0 }
0x1865   :  { %v1725_v19 = vpack.c.bf16 %v1724_v41, %v1723_v42 }
0x1867   :  { %3350 = vmatmul.msk.bf16.vlgmr.msra.gmra.mxu0 %vm803_vm5, %v1725_v19 }
0x1868   :  { %2023 = vmatpush.bf16.msra.mxu0 %v4400_v2 }
0x186c   :  { %2024 = vmatpush.bf16.msra.mxu0 %v4406_v3 }
0x18e4   :  { %v1738_v55 = vpop.f32.mrf.mxu0 }
0x18e5   :  { %v1739_v60 = vadd.f32 %v4597_v48, %v1738_v55 }
0x18e7   :  { %v1743_v50 = vadd.f32 %v1739_v60, %v1703_v28 }
0x18e9   :  { %v1745_v59 = vsel %vm224_vm4, %v1743_v50, 0.0  ;;  %v1753_v40 = vmul.f32 %v1743_v50, %v1743_v50 }
0x18ea   :  { %1746 = vadd.xlane.f32.xlu2 %v1745_v59 }
0x18eb   :  { %v1755_v5 = vsel %vm224_vm4, %v1753_v40, 0.0  ;;  %v4612_v40 = vld [vmem:[%s5099_s18] ss:$0 sm:$0xff] }
0x18ec   :  { %v1740_v12 = vpop.f32.mrf.mxu0  ;;  %1756 = vadd.xlane.f32.xlu0 %v1755_v5 }
0x18ed   :  { %v1741_v34 = vadd.f32 %v4597_v48, %v1740_v12 }
0x18ef   :  { %v1744_v0 = vadd.f32 %v1741_v34, %v1704_v43 }
0x18f1   :  { %v1748_v1 = vsel %vm224_vm4, %v1744_v0, 0.0  ;;  %v1754_v47 = vmul.f32 %v1744_v0, %v1744_v0 }
0x18f2   :  { %1749 = vadd.xlane.f32.xlu1 %v1748_v1 }
0x18f3   :  { %v1758_v61 = vsel %vm224_vm4, %v1754_v47, 0.0 }
0x18f4   :  { %1759 = vadd.xlane.f32.xlu2 %v1758_v61 }
0x195d   :  { %v1747_v32 = vpop.xlane.xlu2 %1746 }
0x195e   :  { %v1751_v8 = vmul.f32 %v1747_v32, %v4083_v6 }
0x195f   :  { %v1757_v9 = vpop.xlane.xlu0 %1756 }
0x1960   :  { %v1763_v14 = vmul.f32 %v1751_v8, %v1751_v8  ;;  %v1761_v15 = vmul.f32 %v1757_v9, %v4083_v6  ;;  %v1767_v42 = vsub.f32 %v1743_v50, %v1751_v8  ;;  %v4619_v50 = vld [vmem:[%s5150_s8] ss:$0 sm:$0xff] }
0x1962   :  { %v1765_v53 = vsub.f32 %v1761_v15, %v1763_v14 }
0x1964   :  { %v1769_v16 = vadd.f32 1e-05, %v1765_v53 }
0x1965   :  { %v1750_v17 = vpop.xlane.xlu1 %1749 }
0x1966   :  { %3552 = vrsqrt.f32 %v1769_v16  ;;  %v1752_v11 = vmul.f32 %v1750_v17, %v4083_v6  ;;  %vm1777_vm2 = vweird.f32 %v1769_v16  ;;  %v4641_v17 = vld [vmem:[%s5103_s22 + $0x18] sm:$0xff] }
0x1967   :  { %v1760_v20 = vpop.xlane.xlu2 %1759 }
0x1968   :  { %v1764_v21 = vmul.f32 %v1752_v11, %v1752_v11  ;;  %v1762_v36 = vmul.f32 %v1760_v20, %v4083_v6  ;;  %v1768_v60 = vsub.f32 %v1744_v0, %v1752_v11  ;;  %v4653_v20 = vld [vmem:[%s5103_s22 + $0x8] sm:$0xff] }
0x196a   :  { %v1766_v22 = vsub.f32 %v1762_v36, %v1764_v21 }
0x196c   :  { %v3553_v7 = vpop.eup %3552  ;;  %v1770_v18 = vadd.f32 1e-05, %v1766_v22  ;;  %v4659_v22 = vld [vmem:[%s5103_s22] sm:$0xff] }
0x196d   :  { %v1772_v38 = vmul.f32 %v3553_v7, %v1769_v16  ;;  %vm1778_vm1 = vweird.f32 %v3553_v7 }
0x196e   :  { %3554 = vrsqrt.f32 %v1770_v18  ;;  %vm1779_vm3 = vmor %vm1777_vm2, %vm1778_vm1  ;;  %vm1787_vm8 = vweird.f32 %v1770_v18 }
0x196f   :  { %v1773_v57 = vmul.f32 %v3553_v7, %v1772_v38 }
0x1971   :  { %v1774_v30 = vmul.f32 0.5, %v1773_v57 }
0x1973   :  { %v1775_v28 = vsub.f32 1.5, %v1774_v30 }
0x1974   :  { %v3555_v43 = vpop.eup %3554 }
0x1975   :  { %v1776_v49 = vmul.f32 %v3553_v7, %v1775_v28  ;;  %v1782_v31 = vmul.f32 %v3555_v43, %v1770_v18  ;;  %vm1788_vm7 = vweird.f32 %v3555_v43 }
0x1976   :  { %vm1789_vm9 = vmor %vm1787_vm8, %vm1788_vm7 }
0x1977   :  { %v1783_v29 = vmul.f32 %v3555_v43, %v1782_v31  ;;  %v1780_v13 = vsel %vm1779_vm3, %v3553_v7, %v1776_v49 }
0x1978   :  { %v1791_v19 = vmul.f32 %v1780_v13, %v1767_v42 }
0x1979   :  { %v1784_v39 = vmul.f32 0.5, %v1783_v29 }
0x197a   :  { %v1793_v5 = vmul.f32 %v4612_v40, %v1791_v19 }
0x197b   :  { %v1785_v41 = vsub.f32 1.5, %v1784_v39 }
0x197c   :  { %v4622_v1 = vadd.f32 %v4619_v50, %v1793_v5 }
0x197d   :  { %v1786_v55 = vmul.f32 %v3555_v43, %v1785_v41 }
0x197f   :  { %v1790_v59 = vsel %vm1789_vm9, %v3555_v43, %v1786_v55 }
0x1980   :  { %v1792_v12 = vmul.f32 %v1790_v59, %v1768_v60 }
0x1982   :  { %v1794_v34 = vmul.f32 %v4612_v40, %v1792_v12 }
0x1984   :  { %v4625_v0 = vadd.f32 %v4619_v50, %v1794_v34 }
0x1986   :  { %v1797_v47 = vpack.c.bf16 %v4625_v0, %v4622_v1 }
0x1988   :  { %3351 = vmatmul.msk.bf16.vlgmr.msra.gmra.mxu1 %vm224_vm4, %v1797_v47 }
0x1989   :  { %2073 = vmatpush.bf16.msra.mxu1 %v4027_v62 }
0x1a05   :  { %v1810_v61 = vpop.f32.mrf.mxu1 }
0x1a06   :  { %v1811_v32 = vadd.f32 %v4434_v46, %v1810_v61 }
0x1a08   :  { %1903 = vrot.lane.b32.xlu2 %v1811_v32, %s3748_s3  ;;  %1817 = vrot.lane.b32.xlu1 %v1811_v32, %s3749_s9 }
0x1a0d   :  { %v1812_v8 = vpop.f32.mrf.mxu1 }
0x1a0e   :  { %v1813_v9 = vadd.f32 %v4434_v46, %v1812_v8  ;;  %v4647_v46 = vld [vmem:[%s5103_s22 + $0x10] sm:$0xff] }
0x1a10   :  { %1819 = vrot.lane.b32.xlu0 %v1813_v9, %s3749_s9 }
0x1a18   :  { %1905 = vrot.lane.b32.xlu0 %v1813_v9, %s3748_s3 }
0x1a7a   :  { %v1818_v14 = vpop.permute.xlu1 %1817 }
0x1a7b   :  { %v1823_v15 = vmul.f32 %v1818_v14, %v1811_v32  ;;  %v1824_v53 = vmul.f32 %v1818_v14, %v1813_v9 }
0x1a7d   :  { %v1827_v16 = vpack.c.bf16 %v1824_v53, %v1823_v15 }
0x1a7f   :  { %3352 = vmatmul.msk.bf16.vlgmr.msra.gmra.mxu2 %vm224_vm4, %v1827_v16 }
0x1a80   :  { %2191 = vmatpush.bf16.msra.mxu2 %v4641_v17 }
0x1a82   :  { %v1820_v11 = vpop.permute.xlu0 %1819 }
0x1a83   :  { %v1825_v21 = vmul.f32 %v1820_v11, %v1811_v32  ;;  %v1826_v36 = vmul.f32 %v1820_v11, %v1813_v9 }
0x1a84   :  { %2192 = vmatpush.bf16.msra.mxu2 %v4647_v46 }
0x1a85   :  { %v1828_v7 = vpack.c.bf16 %v1826_v36, %v1825_v21 }
0x1a88   :  { %2193 = vmatpush.bf16.msra.mxu2 %v4653_v20 }
0x1a8a   :  { %v1906_v36 = vpop.permute.xlu0 %1905 }
0x1a8c   :  { %2194 = vmatpush.bf16.msra.mxu2 %v4659_v22 }
0x1a8f   :  { %3353 = vmatmul.msk.bf16.gmra.mxu2 %vm224_vm4, %v1828_v7 }
0x1b02   :  { %v1844_v18 = vpop.f32.mrf.mxu2 }
0x1b0a   :  { %v1846_v38 = vpop.f32.mrf.mxu2 }
0x1b12   :  { %v1849_v57 = vpop.f32.mrf.mxu2 }
0x1b13   :  { %v1854_v30 = vmax.f32 %v1844_v18, %v1849_v57 }
0x1b15   :  { %v1856_v28 = vsub.f32 %v1844_v18, %v1854_v30  ;;  %v1858_v43 = vsub.f32 %v1849_v57, %v1854_v30  ;;  %v1904_v18 = vpop.permute.xlu2 %1903 }
0x1b17   :  { %v1860_v49 = vmul.f32 1.442695, %v1856_v28  ;;  %v1864_v31 = vmul.f32 1.442695, %v1858_v43 }
0x1b19   :  { %3556 = vpow2.f32 %v1860_v49 }
0x1b1a   :  { %v1851_v29 = vpop.f32.mrf.mxu2  ;;  %3558 = vpow2.f32 %v1864_v31 }
0x1b1b   :  { %v1855_v13 = vmax.f32 %v1846_v38, %v1851_v29 }
0x1b1d   :  { %v1857_v39 = vsub.f32 %v1846_v38, %v1855_v13  ;;  %v1859_v42 = vsub.f32 %v1851_v29, %v1855_v13 }
0x1b1f   :  { %v1862_v41 = vmul.f32 1.442695, %v1857_v39  ;;  %v1866_v19 = vmul.f32 1.442695, %v1859_v42  ;;  %v3557_v55 = vpop.eup %3556 }
0x1b20   :  { %v3559_v60 = vpop.eup %3558 }
0x1b21   :  { %3560 = vpow2.f32 %v1862_v41  ;;  %v1868_v59 = vadd.f32 %v3559_v60, %v3557_v55 }
0x1b22   :  { %3562 = vpow2.f32 %v1866_v19 }
0x1b23   :  { %3564 = vrcp.f32 %v1868_v59 }
0x1b27   :  { %v3561_v5 = vpop.eup %3560 }
0x1b28   :  { %v3563_v12 = vpop.eup %3562 }
0x1b29   :  { %v1869_v34 = vadd.f32 %v3563_v12, %v3561_v5  ;;  %v3565_v47 = vpop.eup %3564 }
0x1b2a   :  { %v1872_v32 = vmul.f32 %v3565_v47, %v3557_v55  ;;  %v1874_v15 = vmul.f32 %v3565_v47, %v3559_v60 }
0x1b2b   :  { %3566 = vrcp.f32 %v1869_v34 }
0x1b31   :  { %v3567_v61 = vpop.eup %3566 }
0x1b32   :  { %v1873_v8 = vmul.f32 %v3567_v61, %v3561_v5  ;;  %v1875_v14 = vmul.f32 %v3567_v61, %v3563_v12 }
0x1b34   :  { %v1876_v9 = vpack.c.bf16 %v1873_v8, %v1872_v32  ;;  %v1877_v53 = vpack.c.bf16 %v1875_v14, %v1874_v15 }
0x1b36   :  { %3354 = vmatmul.msk.bf16.vlgmr.msra.gmra.mxu3 %vm354_vm6, %v1876_v9 }
0x1b37   :  { %2265 = vmatpush.bf16.msra.mxu3 %v4452_v23 }
0x1b3b   :  { %2266 = vmatpush.bf16.msra.mxu3 %v4458_v51 }
0x1b46   :  { %3355 = vmatmul.msk.bf16.gmra.mxu3 %vm354_vm6, %v1877_v53 }
0x1bb9   :  { %v1893_v16 = vpop.f32.mrf.mxu3 }
0x1bba   :  { %v1909_v57 = vmul.f32 %v1904_v18, %v1893_v16 }
0x1bc1   :  { %v1895_v11 = vpop.f32.mrf.mxu3 }
0x1bc2   :  { %v1910_v30 = vmul.f32 %v1904_v18, %v1895_v11 }
0x1bc9   :  { %v1898_v21 = vpop.f32.mrf.mxu3 }
0x1bca   :  { %v1911_v7 = vmul.f32 %v1906_v36, %v1898_v21 }
0x1bcc   :  { %v1913_v43 = vadd.f32 %v1911_v7, %v1909_v57 }
0x1bd1   :  { %v1900_v38 = vpop.f32.mrf.mxu3 }
0x1bd2   :  { %v1912_v28 = vmul.f32 %v1906_v36, %v1900_v38 }
0x1bd4   :  { %v1914_v49 = vadd.f32 %v1912_v28, %v1910_v30 }
0x1bd6   :  { %v1915_v23 = vpack.c.bf16 %v1914_v49, %v1913_v43 }
0x1bd8   :  { %3356 = vmatmul.msk.bf16.vlgmr.msrb.gmra.mxu0 %vm224_vm4, %v1915_v23 }
0x1bd9   :  { %2299 = vmatpush.bf16.msrb.mxu0 %v4400_v2 }
0x1bdd   :  { %2300 = vmatpush.bf16.msrb.mxu0 %v4406_v3 }
0x1c55   :  { %v1928_v51 = vpop.f32.mrf.mxu0 }
0x1c56   :  { %v1929_v31 = vadd.f32 %v4468_v4, %v1928_v51 }
0x1c58   :  { %v1933_v29 = vadd.f32 %v1929_v31, %v4622_v1 }
0x1c5a   :  { %v1935_v13 = vsel %vm224_vm4, %v1933_v29, 0.0  ;;  %v1943_v39 = vmul.f32 %v1933_v29, %v1933_v29 }
0x1c5b   :  { %1936 = vadd.xlane.f32.xlu1 %v1935_v13 }
0x1c5c   :  { %v1945_v42 = vsel %vm224_vm4, %v1943_v39, 0.0 }
0x1c5d   :  { %v1930_v41 = vpop.f32.mrf.mxu0  ;;  %1946 = vadd.xlane.f32.xlu0 %v1945_v42 }
0x1c5e   :  { %v1931_v19 = vadd.f32 %v4468_v4, %v1930_v41 }
0x1c60   :  { %v1934_v55 = vadd.f32 %v1931_v19, %v4625_v0 }
0x1c62   :  { %v1938_v2 = vsel %vm224_vm4, %v1934_v55, 0.0  ;;  %v1944_v3 = vmul.f32 %v1934_v55, %v1934_v55 }
0x1c63   :  { %1939 = vadd.xlane.f32.xlu2 %v1938_v2 }
0x1c64   :  { %v1948_v60 = vsel %vm224_vm4, %v1944_v3, 0.0 }
0x1c65   :  { %1949 = vadd.xlane.f32.xlu1 %v1948_v60 }
0x1cce   :  { %v1937_v1 = vpop.xlane.xlu1 %1936 }
0x1ccf   :  { %v1941_v59 = vmul.f32 %v1937_v1, %v4083_v6 }
0x1cd0   :  { %v1947_v5 = vpop.xlane.xlu0 %1946 }
0x1cd1   :  { %v1953_v12 = vmul.f32 %v1941_v59, %v1941_v59  ;;  %v1951_v34 = vmul.f32 %v1947_v5, %v4083_v6  ;;  %v1957_v43 = vsub.f32 %v1933_v29, %v1941_v59 }
0x1cd3   :  { %v1955_v47 = vsub.f32 %v1951_v34, %v1953_v12 }
0x1cd5   :  { %v1959_v61 = vadd.f32 1e-05, %v1955_v47 }
0x1cd6   :  { %v1940_v32 = vpop.xlane.xlu2 %1939 }
0x1cd7   :  { %3568 = vrsqrt.f32 %v1959_v61  ;;  %v1942_v4 = vmul.f32 %v1940_v32, %v4083_v6  ;;  %vm1967_vm11 = vweird.f32 %v1959_v61 }
0x1cd8   :  { %v1950_v0 = vpop.xlane.xlu1 %1949 }
0x1cd9   :  { %v1954_v8 = vmul.f32 %v1942_v4, %v1942_v4  ;;  %v1952_v9 = vmul.f32 %v1950_v0, %v4083_v6  ;;  %v1958_v31 = vsub.f32 %v1934_v55, %v1942_v4 }
0x1cdb   :  { %v1956_v14 = vsub.f32 %v1952_v9, %v1954_v8 }
0x1cdd   :  { %v3569_v15 = vpop.eup %3568  ;;  %v1960_v53 = vadd.f32 1e-05, %v1956_v14 }
0x1cde   :  { %v1962_v16 = vmul.f32 %v3569_v15, %v1959_v61  ;;  %vm1968_vm10 = vweird.f32 %v3569_v15 }
0x1cdf   :  { %3570 = vrsqrt.f32 %v1960_v53  ;;  %vm1969_vm12 = vmor %vm1967_vm11, %vm1968_vm10  ;;  %vm1977_vm14 = vweird.f32 %v1960_v53 }
0x1ce0   :  { %v1963_v11 = vmul.f32 %v3569_v15, %v1962_v16 }
0x1ce2   :  { %v1964_v21 = vmul.f32 0.5, %v1963_v11 }
0x1ce4   :  { %v1965_v36 = vsub.f32 1.5, %v1964_v21 }
0x1ce5   :  { %v3571_v7 = vpop.eup %3570 }
0x1ce6   :  { %v1966_v18 = vmul.f32 %v3569_v15, %v1965_v36  ;;  %v1972_v38 = vmul.f32 %v3571_v7, %v1960_v53  ;;  %vm1978_vm13 = vweird.f32 %v3571_v7 }
0x1ce7   :  { %vm1979_vm15 = vmor %vm1977_vm14, %vm1978_vm13 }
0x1ce8   :  { %v1973_v57 = vmul.f32 %v3571_v7, %v1972_v38  ;;  %v1970_v30 = vsel %vm1969_vm12, %v3569_v15, %v1966_v18 }
0x1ce9   :  { %v1981_v23 = vmul.f32 %v1970_v30, %v1957_v43 }
0x1cea   :  { %v1974_v28 = vmul.f32 0.5, %v1973_v57 }
0x1ceb   :  { %v1983_v39 = vmul.f32 %v4485_v37, %v1981_v23 }
0x1cec   :  { %v1975_v49 = vsub.f32 1.5, %v1974_v28 }
0x1ced   :  { %v4685_v19 = vadd.f32 %v4492_v10, %v1983_v39 }
0x1cee   :  { %v1976_v51 = vmul.f32 %v3571_v7, %v1975_v49 }
0x1cf0   :  { %v1980_v13 = vsel %vm1979_vm15, %v3571_v7, %v1976_v51 }
0x1cf1   :  { %v1982_v42 = vmul.f32 %v1980_v13, %v1958_v31 }
0x1cf3   :  { %v1984_v41 = vmul.f32 %v4485_v37, %v1982_v42 }
0x1cf5   :  { %v4688_v2 = vadd.f32 %v4492_v10, %v1984_v41 }
0x1cf7   :  { %v1987_v29 = vpack.c.bf16 %v4688_v2, %v4685_v19 }
0x1cf9   :  { %3357 = vmatmul.msk.bf16.vlgmr.msrb.gmra.mxu1 %vm224_vm4, %v1987_v29 }
0x1cfa   :  { %2349 = vmatpush.bf16.msrb.mxu1 %v4027_v62 }
0x1d76   :  { %v2000_v55 = vpop.f32.mrf.mxu1 }
0x1d77   :  { %v2001_v3 = vadd.f32 %v4507_v44, %v2000_v55 }
0x1d79   :  { %v2005_v37 = vmul.f32 %v2001_v3, %v4079_v35  ;;  %v2007_v12 = vmul.f32 %v2001_v3, %v4074_v63 }
0x1d7e   :  { %v2002_v60 = vpop.f32.mrf.mxu1 }
0x1d7f   :  { %v2003_v1 = vadd.f32 %v4507_v44, %v2002_v60 }
0x1d81   :  { %v2006_v59 = vmul.f32 %v2003_v1, %v4079_v35  ;;  %v2008_v10 = vmul.f32 %v2003_v1, %v4074_v63 }
0x1d83   :  { %v2009_v5 = vpack.c.bf16 %v2006_v59, %v2005_v37  ;;  %v2010_v34 = vpack.c.bf16 %v2008_v10, %v2007_v12  ;;  %v4716_v37 = vld [vmem:[%s5144_s11 + $0x8] sm:$0xff]  ;;  %v4722_v59 = vld [vmem:[%s5144_s11] sm:$0xff] }
0x1d85   :  { %3358 = vmatmul.msk.bf16.vlgmr.msra.gmra.mxu0 %vm224_vm4, %v2009_v5 }
0x1d86   :  { %2559 = vmatpush.bf16.msra.mxu0 %v4517_v25 }
0x1d8a   :  { %2560 = vmatpush.bf16.msra.mxu0 %v4523_v54 }
0x1d95   :  { %3359 = vmatmul.msk.bf16.gmra.mxu0 %vm224_vm4, %v2010_v34 }
0x1e02   :  { %v2026_v47 = vpop.f32.mrf.mxu0 }
0x1e0a   :  { %v2028_v44 = vpop.f32.mrf.mxu0 }
0x1e12   :  { %v2031_v61 = vpop.f32.mrf.mxu0 }
0x1e13   :  { %v2036_v32 = vmax.f32 %v2026_v47, %v2031_v61 }
0x1e15   :  { %v2038_v4 = vsub.f32 %v2026_v47, %v2036_v32  ;;  %v2040_v0 = vsub.f32 %v2031_v61, %v2036_v32 }
0x1e17   :  { %v2042_v8 = vmul.f32 1.442695, %v2038_v4  ;;  %v2046_v9 = vmul.f32 1.442695, %v2040_v0 }
0x1e19   :  { %3572 = vpow2.f32 %v2042_v8 }
0x1e1a   :  { %v2033_v14 = vpop.f32.mrf.mxu0  ;;  %3574 = vpow2.f32 %v2046_v9 }
0x1e1b   :  { %v2037_v25 = vmax.f32 %v2028_v44, %v2033_v14 }
0x1e1d   :  { %v2039_v54 = vsub.f32 %v2028_v44, %v2037_v25  ;;  %v2041_v15 = vsub.f32 %v2033_v14, %v2037_v25 }
0x1e1f   :  { %v2044_v53 = vmul.f32 1.442695, %v2039_v54  ;;  %v2048_v16 = vmul.f32 1.442695, %v2041_v15  ;;  %v3573_v11 = vpop.eup %3572 }
0x1e20   :  { %v3575_v21 = vpop.eup %3574 }
0x1e21   :  { %3576 = vpow2.f32 %v2044_v53  ;;  %v2050_v36 = vadd.f32 %v3575_v21, %v3573_v11 }
0x1e22   :  { %3578 = vpow2.f32 %v2048_v16 }
0x1e23   :  { %3580 = vrcp.f32 %v2050_v36 }
0x1e27   :  { %v3577_v7 = vpop.eup %3576 }
0x1e28   :  { %v3579_v18 = vpop.eup %3578 }
0x1e29   :  { %v2051_v38 = vadd.f32 %v3579_v18, %v3577_v7  ;;  %v3581_v57 = vpop.eup %3580 }
0x1e2a   :  { %v2054_v28 = vmul.f32 %v3581_v57, %v3573_v11  ;;  %v2056_v51 = vmul.f32 %v3581_v57, %v3575_v21 }
0x1e2b   :  { %3582 = vrcp.f32 %v2051_v38 }
0x1e31   :  { %v3583_v30 = vpop.eup %3582 }
0x1e32   :  { %v2055_v43 = vmul.f32 %v3583_v30, %v3577_v7  ;;  %v2057_v23 = vmul.f32 %v3583_v30, %v3579_v18 }
0x1e34   :  { %v2058_v49 = vpack.c.bf16 %v2055_v43, %v2054_v28  ;;  %v2059_v31 = vpack.c.bf16 %v2057_v23, %v2056_v51 }
0x1e36   :  { %3360 = vmatmul.msk.bf16.vlgmr.msra.gmra.mxu1 %vm354_vm6, %v2058_v49 }
0x1e37   :  { %2631 = vmatpush.bf16.msra.mxu1 %v4533_v58 }
0x1e3b   :  { %2632 = vmatpush.bf16.msra.mxu1 %v4539_v45 }
0x1e46   :  { %3361 = vmatmul.msk.bf16.gmra.mxu1 %vm354_vm6, %v2059_v31 }
0x1eb3   :  { %v2075_v13 = vpop.f32.mrf.mxu1 }
0x1eb4   :  { %v2085_v55 = vmul.f32 %v2075_v13, %v4156_v56 }
0x1ebb   :  { %v2077_v39 = vpop.f32.mrf.mxu1 }
0x1ebc   :  { %v2086_v3 = vmul.f32 %v2077_v39, %v4156_v56 }
0x1ec3   :  { %v2080_v42 = vpop.f32.mrf.mxu1 }
0x1ec4   :  { %v2087_v41 = vmul.f32 %v2080_v42, %v4153_v52 }
0x1ec6   :  { %v2089_v58 = vadd.f32 %v2087_v41, %v2085_v55 }
0x1ecb   :  { %v2082_v29 = vpop.f32.mrf.mxu1 }
0x1ecc   :  { %v2088_v60 = vmul.f32 %v2082_v29, %v4153_v52 }
0x1ece   :  { %v2090_v1 = vadd.f32 %v2088_v60, %v2086_v3 }
0x1ed0   :  { %v2091_v45 = vpack.c.bf16 %v2090_v1, %v2089_v58 }
0x1ed2   :  { %3362 = vmatmul.msk.bf16.vlgmr.msrb.gmra.mxu2 %vm224_vm4, %v2091_v45 }
0x1ed3   :  { %2383 = vmatpush.bf16.msrb.mxu2 %v4716_v37 }
0x1ed7   :  { %2384 = vmatpush.bf16.msrb.mxu2 %v4722_v59 }
0x1f55   :  { %v2104_v5 = vpop.f32.mrf.mxu2 }
0x1f56   :  { %v2105_v10 = vadd.f32 %v4553_v26, %v2104_v5 }
0x1f58   :  { %v2109_v12 = vadd.f32 %v2105_v10, %v4685_v19 }
0x1f5a   :  { %v2111_v34 = vsel %vm224_vm4, %v2109_v12, 0.0  ;;  %v2119_v47 = vmul.f32 %v2109_v12, %v2109_v12 }
0x1f5b   :  { %2112 = vadd.xlane.f32.xlu2 %v2111_v34 }
0x1f5c   :  { %v2121_v44 = vsel %vm224_vm4, %v2119_v47, 0.0  ;;  %v4751_v47 = vld [vmem:[%s5147_s27] sm:$0xff] }
0x1f5d   :  { %v2106_v61 = vpop.f32.mrf.mxu2  ;;  %2122 = vadd.xlane.f32.xlu1 %v2121_v44 }
0x1f5e   :  { %v2107_v32 = vadd.f32 %v4553_v26, %v2106_v61 }
0x1f60   :  { %v2110_v4 = vadd.f32 %v2107_v32, %v4688_v2 }
0x1f62   :  { %v2114_v0 = vsel %vm224_vm4, %v2110_v4, 0.0  ;;  %v2120_v8 = vmul.f32 %v2110_v4, %v2110_v4 }
0x1f63   :  { %2115 = vadd.xlane.f32.xlu0 %v2114_v0 }
0x1f64   :  { %v2124_v9 = vsel %vm224_vm4, %v2120_v8, 0.0  ;;  %v4760_v8 = vld [vmem:[%s5107_s26 + $0x8] sm:$0xff] }
0x1f65   :  { %2125 = vadd.xlane.f32.xlu2 %v2124_v9  ;;  %v4766_v9 = vld [vmem:[%s5107_s26] sm:$0xff] }
0x1fce   :  { %v2113_v19 = vpop.xlane.xlu2 %2112 }
0x1fcf   :  { %v2117_v14 = vmul.f32 %v2113_v19, %v4083_v6 }
0x1fd0   :  { %v2123_v25 = vpop.xlane.xlu1 %2122 }
0x1fd1   :  { %v2129_v54 = vmul.f32 %v2117_v14, %v2117_v14  ;;  %v2127_v15 = vmul.f32 %v2123_v25, %v4083_v6  ;;  %v2133_v42 = vsub.f32 %v2109_v12, %v2117_v14  ;;  %v4745_v12 = vld [vmem:[%s5147_s27 + $0x8] sm:$0xff] }
0x1fd3   :  { %v2131_v53 = vsub.f32 %v2127_v15, %v2129_v54 }
0x1fd5   :  { %v2135_v16 = vadd.f32 1e-05, %v2131_v53 }
0x1fd6   :  { %v2116_v11 = vpop.xlane.xlu0 %2115 }
0x1fd7   :  { %3584 = vrsqrt.f32 %v2135_v16  ;;  %v2118_v26 = vmul.f32 %v2116_v11, %v4083_v6  ;;  %vm2143_vm1 = vweird.f32 %v2135_v16 }
0x1fd8   :  { %v2126_v2 = vpop.xlane.xlu2 %2125 }
0x1fd9   :  { %v2130_v21 = vmul.f32 %v2118_v26, %v2118_v26  ;;  %v2128_v36 = vmul.f32 %v2126_v2, %v4083_v6  ;;  %v2134_v3 = vsub.f32 %v2110_v4, %v2118_v26 }
0x1fdb   :  { %v2132_v7 = vsub.f32 %v2128_v36, %v2130_v21 }
0x1fdd   :  { %v3585_v18 = vpop.eup %3584  ;;  %v2136_v38 = vadd.f32 1e-05, %v2132_v7 }
0x1fde   :  { %v2138_v57 = vmul.f32 %v3585_v18, %v2135_v16  ;;  %vm2144_vm0 = vweird.f32 %v3585_v18 }
0x1fdf   :  { %3586 = vrsqrt.f32 %v2136_v38  ;;  %vm2145_vm2 = vmor %vm2143_vm1, %vm2144_vm0  ;;  %vm2153_vm7 = vweird.f32 %v2136_v38 }
0x1fe0   :  { %v2139_v30 = vmul.f32 %v3585_v18, %v2138_v57 }
0x1fe2   :  { %v2140_v28 = vmul.f32 0.5, %v2139_v30 }
0x1fe4   :  { %v2141_v43 = vsub.f32 1.5, %v2140_v28 }
0x1fe5   :  { %v3587_v49 = vpop.eup %3586 }
0x1fe6   :  { %v2142_v23 = vmul.f32 %v3585_v18, %v2141_v43  ;;  %v2148_v51 = vmul.f32 %v3587_v49, %v2136_v38  ;;  %vm2154_vm3 = vweird.f32 %v3587_v49 }
0x1fe7   :  { %vm2155_vm8 = vmor %vm2153_vm7, %vm2154_vm3 }
0x1fe8   :  { %v2149_v31 = vmul.f32 %v3587_v49, %v2148_v51  ;;  %v2146_v13 = vsel %vm2145_vm2, %v3585_v18, %v2142_v23 }
0x1fe9   :  { %v2157_v29 = vmul.f32 %v2146_v13, %v2133_v42 }
0x1fea   :  { %v2150_v39 = vmul.f32 0.5, %v2149_v31 }
0x1feb   :  { %v2159_v58 = vmul.f32 %v4570_v27, %v2157_v29 }
0x1fec   :  { %v2151_v41 = vsub.f32 1.5, %v2150_v39 }
0x1fed   :  { %v2161_v5 = vadd.f32 %v4577_v24, %v2159_v58 }
0x1fee   :  { %v2152_v55 = vmul.f32 %v3587_v49, %v2151_v41 }
0x1ff0   :  { %v2156_v60 = vsel %vm2155_vm8, %v3587_v49, %v2152_v55 }
0x1ff1   :  { %v2158_v1 = vmul.f32 %v2156_v60, %v2134_v3 }
0x1ff3   :  { %v2160_v45 = vmul.f32 %v4570_v27, %v2158_v1 }
0x1ff5   :  { %v2162_v10 = vadd.f32 %v4577_v24, %v2160_v45 }
0x1ff7   :  { %v2163_v34 = vpack.c.bf16 %v2162_v10, %v2161_v5 }
0x1ff9   :  { %3363 = vmatmul.msk.bf16.vlgmr.msrb.gmra.mxu3 %vm224_vm4, %v2163_v34 }
0x1ffa   :  { %2455 = vmatpush.bf16.msrb.mxu3 %v4745_v12 }
0x1ffe   :  { %2456 = vmatpush.bf16.msrb.mxu3 %v4751_v47 }
0x207c   :  { %v2176_v27 = vpop.f32.mrf.mxu3 }
0x207d   :  { %v2177_v24 = vadd.f32 %v4587_v33, %v2176_v27 }
0x207f   :  { %v2181_v32 = vmax.f32 %v2177_v24, 0.0 }
0x2084   :  { %v2178_v44 = vpop.f32.mrf.mxu3 }
0x2085   :  { %v2179_v61 = vadd.f32 %v4587_v33, %v2178_v44 }
0x2087   :  { %v2182_v4 = vmax.f32 %v2179_v61, 0.0 }
0x2089   :  { %v2183_v0 = vpack.c.bf16 %v2182_v4, %v2181_v32 }
0x208b   :  { %3364 = vmatmul.msk.bf16.vlgmr.msra.gmra.mxu2 %vm803_vm5, %v2183_v0 }
0x208c   :  { %2481 = vmatpush.bf16.msra.mxu2 %v4760_v8 }
0x2090   :  { %2482 = vmatpush.bf16.msra.mxu2 %v4766_v9 }
0x210e   :  { %v2196_v33 = vpop.f32.mrf.mxu2 }
0x210f   :  { %v2197_v19 = vadd.f32 %v4597_v48, %v2196_v33 }
0x2111   :  { %v2201_v14 = vadd.f32 %v2197_v19, %v2161_v5 }
0x2113   :  { %v2203_v25 = vsel %vm224_vm4, %v2201_v14, 0.0  ;;  %v2211_v54 = vmul.f32 %v2201_v14, %v2201_v14 }
0x2114   :  { %2204 = vadd.xlane.f32.xlu0 %v2203_v25 }
0x2115   :  { %v2213_v15 = vsel %vm224_vm4, %v2211_v54, 0.0  ;;  %v4794_v54 = vld [vmem:[%s5143_s30] ss:$0 sm:$0xff] }
0x2116   :  { %v2198_v53 = vpop.f32.mrf.mxu2  ;;  %2214 = vadd.xlane.f32.xlu2 %v2213_v15 }
0x2117   :  { %v2199_v16 = vadd.f32 %v4597_v48, %v2198_v53 }
0x2119   :  { %v2202_v11 = vadd.f32 %v2199_v16, %v2162_v10 }
0x211b   :  { %v2206_v26 = vsel %vm224_vm4, %v2202_v11, 0.0  ;;  %v2212_v2 = vmul.f32 %v2202_v11, %v2202_v11 }
0x211c   :  { %2207 = vadd.xlane.f32.xlu1 %v2206_v26 }
0x211d   :  { %v2216_v21 = vsel %vm224_vm4, %v2212_v2, 0.0 }
0x211e   :  { %2217 = vadd.xlane.f32.xlu0 %v2216_v21 }
0x2187   :  { %v2205_v36 = vpop.xlane.xlu0 %2204 }
0x2188   :  { %v2209_v7 = vmul.f32 %v2205_v36, %v4083_v6 }
0x2189   :  { %v2215_v18 = vpop.xlane.xlu2 %2214 }
0x218a   :  { %v2221_v38 = vmul.f32 %v2209_v7, %v2209_v7  ;;  %v2219_v57 = vmul.f32 %v2215_v18, %v4083_v6  ;;  %v2225_v10 = vsub.f32 %v2201_v14, %v2209_v7 }
0x218c   :  { %v2223_v30 = vsub.f32 %v2219_v57, %v2221_v38 }
0x218e   :  { %v2227_v28 = vadd.f32 1e-05, %v2223_v30 }
0x218f   :  { %v2208_v43 = vpop.xlane.xlu1 %2207 }
0x2190   :  { %3588 = vrsqrt.f32 %v2227_v28  ;;  %v2210_v48 = vmul.f32 %v2208_v43, %v4083_v6  ;;  %vm2235_vm10 = vweird.f32 %v2227_v28 }
0x2191   :  { %v2218_v49 = vpop.xlane.xlu0 %2217 }
0x2192   :  { %v2222_v23 = vmul.f32 %v2210_v48, %v2210_v48  ;;  %v2220_v51 = vmul.f32 %v2218_v49, %v4083_v6  ;;  %v2226_v44 = vsub.f32 %v2202_v11, %v2210_v48 }
0x2194   :  { %v2224_v31 = vsub.f32 %v2220_v51, %v2222_v23 }
0x2196   :  { %v3589_v13 = vpop.eup %3588  ;;  %v2228_v39 = vadd.f32 1e-05, %v2224_v31 }
0x2197   :  { %v2230_v42 = vmul.f32 %v3589_v13, %v2227_v28  ;;  %vm2236_vm9 = vweird.f32 %v3589_v13 }
0x2198   :  { %3590 = vrsqrt.f32 %v2228_v39  ;;  %vm2237_vm11 = vmor %vm2235_vm10, %vm2236_vm9  ;;  %vm2245_vm13 = vweird.f32 %v2228_v39 }
0x2199   :  { %v2231_v41 = vmul.f32 %v3589_v13, %v2230_v42 }
0x219b   :  { %v2232_v29 = vmul.f32 0.5, %v2231_v41 }
0x219d   :  { %v2233_v55 = vsub.f32 1.5, %v2232_v29 }
0x219e   :  { %v3591_v3 = vpop.eup %3590 }
0x219f   :  { %v2234_v60 = vmul.f32 %v3589_v13, %v2233_v55  ;;  %v2240_v58 = vmul.f32 %v3591_v3, %v2228_v39  ;;  %vm2246_vm12 = vweird.f32 %v3591_v3 }
0x21a0   :  { %vm2247_vm14 = vmor %vm2245_vm13, %vm2246_vm12 }
0x21a1   :  { %v2241_v1 = vmul.f32 %v3591_v3, %v2240_v58  ;;  %v2238_v45 = vsel %vm2237_vm11, %v3589_v13, %v2234_v60 }
0x21a2   :  { %v2249_v27 = vmul.f32 %v2238_v45, %v2225_v10  ;;  %v3699_v45 = vld [vmem:[%s5140_s1 + $0x8] sm:$0xff] }
0x21a3   :  { %v2242_v5 = vmul.f32 0.5, %v2241_v1 }
0x21a4   :  { %v2251_v32 = vmul.f32 %v4612_v40, %v2249_v27 }
0x21a5   :  { %v2243_v34 = vsub.f32 1.5, %v2242_v5  ;;  %v3700_v5 = vld [vmem:[%s5140_s1] sm:$0xff]  ;;  %s3216_s1 = sshll.u32 %s5109_s28, 4  ;;  %s3217_s1 = int_to_ptr.hbm [resolvable:$true] %s3216_s1 }
0x21a6   :  { %v4782_v33 = vadd.f32 %v4619_v50, %v2251_v32 }
0x21a7   :  { %v2244_v24 = vmul.f32 %v3591_v3, %v2243_v34 }
0x21a9   :  { %v2248_v61 = vsel %vm2247_vm14, %v3591_v3, %v2244_v24 }
0x21aa   :  { %v2250_v4 = vmul.f32 %v2248_v61, %v2226_v44 }
0x21ac   :  { %v2252_v0 = vmul.f32 %v4612_v40, %v2250_v4 }
0x21ae   :  { %v4785_v19 = vadd.f32 %v4619_v50, %v2252_v0 }
0x21b0   :  { %v2255_v14 = vpack.c.bf16 %v4785_v19, %v4782_v33 }
0x21b2   :  { %3365 = vmatmul.msk.bf16.vlgmr.msra.gmra.mxu3 %vm224_vm4, %v2255_v14 }
0x21b3   :  { %2531 = vmatpush.bf16.msra.mxu3 %v4027_v62 }
0x2235   :  { %v2268_v25 = vpop.f32.mrf.mxu3 }
0x2236   :  { %v2269_v40 = vadd.f32 %v4794_v54, %v2268_v25 }
0x2238   :  { %2361 = vrot.lane.b32.xlu0 %v2269_v40, %s3748_s3  ;;  %2275 = vrot.lane.b32.xlu1 %v2269_v40, %s3749_s9 }
0x223d   :  { %v2270_v50 = vpop.f32.mrf.mxu3 }
0x223e   :  { %v2271_v15 = vadd.f32 %v4794_v54, %v2270_v50 }
0x2240   :  { %2277 = vrot.lane.b32.xlu2 %v2271_v15, %s3749_s9  ;;  %2363 = vrot.lane.b32.xlu1 %v2271_v15, %s3748_s3 }
0x229a   :  { %v2278_v2 = vpop.permute.xlu2 %2277 }
0x229b   :  { %v2283_v21 = vmul.f32 %v2278_v2, %v2269_v40  ;;  %v2284_v36 = vmul.f32 %v2278_v2, %v2271_v15 }
0x229d   :  { %v2286_v7 = vpack.c.bf16 %v2284_v36, %v2283_v21 }
0x22aa   :  { %v2276_v53 = vpop.permute.xlu1 %2275  ;;  %v2362_v0 = vpop.permute.xlu0 %2361 }
0x22ab   :  { %v2281_v16 = vmul.f32 %v2276_v53, %v2269_v40  ;;  %v2282_v11 = vmul.f32 %v2276_v53, %v2271_v15 }
0x22ad   :  { %v2285_v26 = vpack.c.bf16 %v2282_v11, %v2281_v16 }
0x22af   :  { %3366 = vmatmul.msk.bf16.vlgmr.msrb.gmra.mxu0 %vm224_vm4, %v2285_v26  ;;  %v4822_v26 = vld [vmem:[%s5145_s12] ss:$0 sm:$0xff]  ;;  %s3753_s12 = smov 8  }
0x22b0   :  { %2649 = vmatpush.bf16.msrb.mxu0 %v4641_v17 }
0x22b2   :  { %v2364_v32 = vpop.permute.xlu1 %2363 }
0x22b4   :  { %2650 = vmatpush.bf16.msrb.mxu0 %v4647_v46 }
0x22b8   :  { %2651 = vmatpush.bf16.msrb.mxu0 %v4653_v20 }
0x22bc   :  { %2652 = vmatpush.bf16.msrb.mxu0 %v4659_v22 }
0x22bf   :  { %3367 = vmatmul.msk.bf16.gmra.mxu0 %vm224_vm4, %v2286_v7 }
0x232c   :  { %v2302_v18 = vpop.f32.mrf.mxu0 }
0x2334   :  { %v2304_v38 = vpop.f32.mrf.mxu0 }
0x233c   :  { %v2307_v57 = vpop.f32.mrf.mxu0 }
0x233d   :  { %v2312_v30 = vmax.f32 %v2302_v18, %v2307_v57 }
0x233f   :  { %v2314_v28 = vsub.f32 %v2302_v18, %v2312_v30  ;;  %v2316_v43 = vsub.f32 %v2307_v57, %v2312_v30 }
0x2341   :  { %v2318_v48 = vmul.f32 1.442695, %v2314_v28  ;;  %v2322_v17 = vmul.f32 1.442695, %v2316_v43 }
0x2343   :  { %3592 = vpow2.f32 %v2318_v48 }
0x2344   :  { %v2309_v49 = vpop.f32.mrf.mxu0  ;;  %3594 = vpow2.f32 %v2322_v17 }
0x2345   :  { %v2313_v46 = vmax.f32 %v2304_v38, %v2309_v49 }
0x2347   :  { %v2315_v20 = vsub.f32 %v2304_v38, %v2313_v46  ;;  %v2317_v23 = vsub.f32 %v2309_v49, %v2313_v46 }
0x2349   :  { %v2320_v51 = vmul.f32 1.442695, %v2315_v20  ;;  %v2324_v31 = vmul.f32 1.442695, %v2317_v23  ;;  %v3593_v22 = vpop.eup %3592 }
0x234a   :  { %v3595_v13 = vpop.eup %3594 }
0x234b   :  { %3596 = vpow2.f32 %v2320_v51  ;;  %v2326_v39 = vadd.f32 %v3595_v13, %v3593_v22 }
0x234c   :  { %3598 = vpow2.f32 %v2324_v31 }
0x234d   :  { %3600 = vrcp.f32 %v2326_v39 }
0x2351   :  { %v3597_v42 = vpop.eup %3596 }
0x2352   :  { %v3599_v41 = vpop.eup %3598 }
0x2353   :  { %v2327_v29 = vadd.f32 %v3599_v41, %v3597_v42  ;;  %v3601_v55 = vpop.eup %3600 }
0x2354   :  { %v2330_v60 = vmul.f32 %v3601_v55, %v3593_v22  ;;  %v2332_v34 = vmul.f32 %v3601_v55, %v3595_v13 }
0x2355   :  { %3602 = vrcp.f32 %v2327_v29 }
0x235b   :  { %v3603_v3 = vpop.eup %3602 }
0x235c   :  { %v2331_v58 = vmul.f32 %v3603_v3, %v3597_v42  ;;  %v2333_v10 = vmul.f32 %v3603_v3, %v3599_v41 }
0x235e   :  { %v2334_v1 = vpack.c.bf16 %v2331_v58, %v2330_v60  ;;  %v2335_v27 = vpack.c.bf16 %v2333_v10, %v2332_v34 }
0x2360   :  { %3368 = vmatmul.msk.bf16.vlgmr.msrb.gmra.mxu1 %vm354_vm6, %v2334_v1 }
0x2361   :  { %2723 = vmatpush.bf16.msrb.mxu1 %v3699_v45 }
0x2365   :  { %2724 = vmatpush.bf16.msrb.mxu1 %v3700_v5 }
0x2370   :  { %3369 = vmatmul.msk.bf16.gmra.mxu1 %vm354_vm6, %v2335_v27 }
0x23dd   :  { %v2351_v24 = vpop.f32.mrf.mxu1 }
0x23de   :  { %v2367_v25 = vmul.f32 %v2362_v0, %v2351_v24 }
0x23e5   :  { %v2353_v44 = vpop.f32.mrf.mxu1 }
0x23e6   :  { %v2368_v40 = vmul.f32 %v2362_v0, %v2353_v44 }
0x23ed   :  { %v2356_v61 = vpop.f32.mrf.mxu1 }
0x23ee   :  { %v2369_v4 = vmul.f32 %v2364_v32, %v2356_v61 }
0x23f0   :  { %v2371_v15 = vadd.f32 %v2369_v4, %v2367_v25 }
0x23f5   :  { %v2358_v14 = vpop.f32.mrf.mxu1 }
0x23f6   :  { %v2370_v50 = vmul.f32 %v2364_v32, %v2358_v14  ;;  %v4839_v14 = vld [vmem:[%s5095_s14] ss:$0 sm:$0xff] }
0x23f8   :  { %v2372_v53 = vadd.f32 %v2370_v50, %v2368_v40 }
0x23fa   :  { %v2373_v16 = vpack.c.bf16 %v2372_v53, %v2371_v15  ;;  %v4846_v15 = vld [vmem:[%s5096_s15] ss:$0 sm:$0xff] }
0x23fc   :  { %3370 = vmatmul.msk.bf16.vlgmr.msrb.gmra.mxu2 %vm224_vm4, %v2373_v16 }
0x23fd   :  { %2757 = vmatpush.bf16.msrb.mxu2 %v4760_v8 }
0x2401   :  { %2758 = vmatpush.bf16.msrb.mxu2 %v4766_v9 }
0x247f   :  { %v2386_v11 = vpop.f32.mrf.mxu2 }
0x2480   :  { %v2387_v2 = vadd.f32 %v4822_v26, %v2386_v11 }
0x2482   :  { %v2391_v21 = vadd.f32 %v2387_v2, %v4782_v33 }
0x2484   :  { %v2393_v36 = vsel %vm224_vm4, %v2391_v21, 0.0  ;;  %v2401_v7 = vmul.f32 %v2391_v21, %v2391_v21 }
0x2485   :  { %2394 = vadd.xlane.f32.xlu2 %v2393_v36 }
0x2486   :  { %v2403_v18 = vsel %vm224_vm4, %v2401_v7, 0.0 }
0x2487   :  { %v2388_v38 = vpop.f32.mrf.mxu2  ;;  %2404 = vadd.xlane.f32.xlu1 %v2403_v18 }
0x2488   :  { %v2389_v57 = vadd.f32 %v4822_v26, %v2388_v38 }
0x248a   :  { %v2392_v30 = vadd.f32 %v2389_v57, %v4785_v19 }
0x248c   :  { %v2396_v28 = vsel %vm224_vm4, %v2392_v30, 0.0  ;;  %v2402_v43 = vmul.f32 %v2392_v30, %v2392_v30 }
0x248d   :  { %2397 = vadd.xlane.f32.xlu0 %v2396_v28  ;;  %v3705_v28 = vld [vmem:[%s5149_s29 + $0x8] sm:$0xff] }
0x248e   :  { %v2406_v48 = vsel %vm224_vm4, %v2402_v43, 0.0  ;;  %v3706_v43 = vld [vmem:[%s5149_s29] sm:$0xff] }
0x248f   :  { %2407 = vadd.xlane.f32.xlu2 %v2406_v48 }
0x24f8   :  { %v2395_v33 = vpop.xlane.xlu2 %2394 }
0x24f9   :  { %v2399_v17 = vmul.f32 %v2395_v33, %v4083_v6 }
0x24fa   :  { %v2405_v49 = vpop.xlane.xlu1 %2404 }
0x24fb   :  { %v2411_v46 = vmul.f32 %v2399_v17, %v2399_v17  ;;  %v2409_v20 = vmul.f32 %v2405_v49, %v4083_v6  ;;  %v2415_v24 = vsub.f32 %v2391_v21, %v2399_v17  ;;  %v4861_v21 = vld [vmem:[%s5148_s6] ss:$0 sm:$0xff] }
0x24fd   :  { %v2413_v23 = vsub.f32 %v2409_v20, %v2411_v46 }
0x24ff   :  { %v2417_v51 = vadd.f32 1e-05, %v2413_v23 }
0x2500   :  { %v2398_v31 = vpop.xlane.xlu0 %2397 }
0x2501   :  { %3604 = vrsqrt.f32 %v2417_v51  ;;  %v2400_v19 = vmul.f32 %v2398_v31, %v4083_v6  ;;  %vm2425_vm0 = vweird.f32 %v2417_v51 }
0x2502   :  { %v2408_v22 = vpop.xlane.xlu2 %2407 }
0x2503   :  { %v2412_v13 = vmul.f32 %v2400_v19, %v2400_v19  ;;  %v2410_v39 = vmul.f32 %v2408_v22, %v4083_v6  ;;  %v2416_v4 = vsub.f32 %v2392_v30, %v2400_v19 }
0x2505   :  { %v2414_v42 = vsub.f32 %v2410_v39, %v2412_v13 }
0x2507   :  { %v3605_v41 = vpop.eup %3604  ;;  %v2418_v29 = vadd.f32 1e-05, %v2414_v42 }
0x2508   :  { %v2420_v55 = vmul.f32 %v3605_v41, %v2417_v51  ;;  %vm2426_vm15 = vweird.f32 %v3605_v41 }
0x2509   :  { %3606 = vrsqrt.f32 %v2418_v29  ;;  %vm2427_vm1 = vmor %vm2425_vm0, %vm2426_vm15  ;;  %vm2435_vm3 = vweird.f32 %v2418_v29 }
0x250a   :  { %v2421_v3 = vmul.f32 %v3605_v41, %v2420_v55 }
0x250c   :  { %v2422_v60 = vmul.f32 0.5, %v2421_v3 }
0x250e   :  { %v2423_v58 = vsub.f32 1.5, %v2422_v60 }
0x250f   :  { %v3607_v1 = vpop.eup %3606 }
0x2510   :  { %v2424_v45 = vmul.f32 %v3605_v41, %v2423_v58  ;;  %v2430_v5 = vmul.f32 %v3607_v1, %v2418_v29  ;;  %vm2436_vm2 = vweird.f32 %v3607_v1 }
0x2511   :  { %vm2437_vm7 = vmor %vm2435_vm3, %vm2436_vm2 }
0x2512   :  { %v2431_v10 = vmul.f32 %v3607_v1, %v2430_v5  ;;  %v2428_v34 = vsel %vm2427_vm1, %v3605_v41, %v2424_v45 }
0x2513   :  { %v2439_v61 = vmul.f32 %v2428_v34, %v2415_v24 }
0x2514   :  { %v2432_v27 = vmul.f32 0.5, %v2431_v10 }
0x2515   :  { %v2441_v25 = vmul.f32 %v4839_v14, %v2439_v61  ;;  %v3707_v61 = vld [vmem:[%s5101_s20 + $0x8] sm:$0xff] }
0x2516   :  { %v2433_v44 = vsub.f32 1.5, %v2432_v27 }
0x2517   :  { %v4849_v53 = vadd.f32 %v4846_v15, %v2441_v25 }
0x2518   :  { %v2434_v32 = vmul.f32 %v3607_v1, %v2433_v44 }
0x251a   :  { %v2438_v0 = vsel %vm2437_vm7, %v3607_v1, %v2434_v32  ;;  %v3708_v32 = vld [vmem:[%s5101_s20] sm:$0xff]  ;;  %s3214_s20 = sshll.u32 %s3751_s7, 4  ;;  %s3215_s20 = int_to_ptr.vmem [resolvable:$true] %s3214_s20 }
0x251b   :  { %v2440_v40 = vmul.f32 %v2438_v0, %v2416_v4 }
0x251d   :  { %v2442_v50 = vmul.f32 %v4839_v14, %v2440_v40 }
0x251f   :  { %v4852_v16 = vadd.f32 %v4846_v15, %v2442_v50 }
0x2521   :  { %v2445_v11 = vpack.c.bf16 %v4852_v16, %v4849_v53 }
0x2523   :  { %3371 = vmatmul.msk.bf16.vlgmr.msrb.gmra.mxu3 %vm224_vm4, %v2445_v11 }
0x2524   :  { %2807 = vmatpush.bf16.msrb.mxu3 %v4027_v62 }
0x25a6   :  { %v2458_v2 = vpop.f32.mrf.mxu3 }
0x25a7   :  { %v2459_v36 = vadd.f32 %v4861_v21, %v2458_v2 }
0x25a9   :  { %v2463_v38 = vmul.f32 %v2459_v36, %v4079_v35  ;;  %v2465_v33 = vmul.f32 %v2459_v36, %v4074_v63 }
0x25ae   :  { %v2460_v7 = vpop.f32.mrf.mxu3 }
0x25af   :  { %v2461_v18 = vadd.f32 %v4861_v21, %v2460_v7 }
0x25b1   :  { %v2464_v57 = vmul.f32 %v2461_v18, %v4079_v35  ;;  %v2466_v48 = vmul.f32 %v2461_v18, %v4074_v63 }
0x25b3   :  { %v2467_v30 = vpack.c.bf16 %v2464_v57, %v2463_v38  ;;  %v2468_v17 = vpack.c.bf16 %v2466_v48, %v2465_v33  ;;  %v4895_v48 = vld [vmem:[%s5094_s13] ss:$0 sm:$0xff] }
0x25b5   :  { %3372 = vmatmul.msk.bf16.vlgmr.msra.gmra.mxu2 %vm224_vm4, %v2467_v30 }
0x25b6   :  { %3017 = vmatpush.bf16.msra.mxu2 %v3705_v28 }
0x25ba   :  { %3018 = vmatpush.bf16.msra.mxu2 %v3706_v43 }
0x25c5   :  { %3373 = vmatmul.msk.bf16.gmra.mxu2 %vm224_vm4, %v2468_v17 }
0x2638   :  { %v2484_v49 = vpop.f32.mrf.mxu2 }
0x2640   :  { %v2486_v46 = vpop.f32.mrf.mxu2 }
0x2648   :  { %v2489_v20 = vpop.f32.mrf.mxu2 }
0x2649   :  { %v2494_v23 = vmax.f32 %v2484_v49, %v2489_v20 }
0x264b   :  { %v2496_v51 = vsub.f32 %v2484_v49, %v2494_v23  ;;  %v2498_v31 = vsub.f32 %v2489_v20, %v2494_v23 }
0x264d   :  { %v2500_v19 = vmul.f32 1.442695, %v2496_v51  ;;  %v2504_v22 = vmul.f32 1.442695, %v2498_v31 }
0x264f   :  { %3608 = vpow2.f32 %v2500_v19 }
0x2650   :  { %v2491_v13 = vpop.f32.mrf.mxu2  ;;  %3610 = vpow2.f32 %v2504_v22 }
0x2651   :  { %v2495_v39 = vmax.f32 %v2486_v46, %v2491_v13 }
0x2653   :  { %v2497_v42 = vsub.f32 %v2486_v46, %v2495_v39  ;;  %v2499_v41 = vsub.f32 %v2491_v13, %v2495_v39 }
0x2655   :  { %v2502_v29 = vmul.f32 1.442695, %v2497_v42  ;;  %v2506_v55 = vmul.f32 1.442695, %v2499_v41  ;;  %v3609_v3 = vpop.eup %3608 }
0x2656   :  { %v3611_v60 = vpop.eup %3610 }
0x2657   :  { %3612 = vpow2.f32 %v2502_v29  ;;  %v2508_v58 = vadd.f32 %v3611_v60, %v3609_v3 }
0x2658   :  { %3614 = vpow2.f32 %v2506_v55 }
0x2659   :  { %3616 = vrcp.f32 %v2508_v58 }
0x265d   :  { %v3613_v1 = vpop.eup %3612 }
0x265e   :  { %v3615_v45 = vpop.eup %3614 }
0x265f   :  { %v2509_v5 = vadd.f32 %v3615_v45, %v3613_v1  ;;  %v3617_v10 = vpop.eup %3616 }
0x2660   :  { %v2512_v27 = vmul.f32 %v3617_v10, %v3609_v3  ;;  %v2514_v0 = vmul.f32 %v3617_v10, %v3611_v60 }
0x2661   :  { %3618 = vrcp.f32 %v2509_v5 }
0x2667   :  { %v3619_v34 = vpop.eup %3618 }
0x2668   :  { %v2513_v24 = vmul.f32 %v3619_v34, %v3613_v1  ;;  %v2515_v4 = vmul.f32 %v3619_v34, %v3615_v45 }
0x266a   :  { %v2516_v44 = vpack.c.bf16 %v2513_v24, %v2512_v27  ;;  %v2517_v25 = vpack.c.bf16 %v2515_v4, %v2514_v0 }
0x266c   :  { %3374 = vmatmul.msk.bf16.vlgmr.msra.gmra.mxu3 %vm354_vm6, %v2516_v44 }
0x266d   :  { %3089 = vmatpush.bf16.msra.mxu3 %v3707_v61 }
0x2671   :  { %3090 = vmatpush.bf16.msra.mxu3 %v3708_v32 }
0x267c   :  { %3375 = vmatmul.msk.bf16.gmra.mxu3 %vm354_vm6, %v2517_v25 }
0x26ef   :  { %v2533_v40 = vpop.f32.mrf.mxu3 }
0x26f0   :  { %v2543_v7 = vmul.f32 %v2533_v40, %v4156_v56 }
0x26f7   :  { %v2535_v50 = vpop.f32.mrf.mxu3 }
0x26f8   :  { %v2544_v18 = vmul.f32 %v2535_v50, %v4156_v56 }
0x26ff   :  { %v2538_v11 = vpop.f32.mrf.mxu3 }
0x2700   :  { %v2545_v2 = vmul.f32 %v2538_v11, %v4153_v52 }
0x2702   :  { %v2547_v57 = vadd.f32 %v2545_v2, %v2543_v7 }
0x2707   :  { %v2540_v36 = vpop.f32.mrf.mxu3 }
0x2708   :  { %v2546_v38 = vmul.f32 %v2540_v36, %v4153_v52 }
0x270a   :  { %v2548_v30 = vadd.f32 %v2546_v38, %v2544_v18  ;;  %v4912_v18 = vld [vmem:[%s5097_s16] ss:$0 sm:$0xff] }
0x270c   :  { %v2549_v28 = vpack.c.bf16 %v2548_v30, %v2547_v57 }
0x270e   :  { %3376 = vmatmul.msk.bf16.vlgmr.msra.gmra.mxu0 %vm224_vm4, %v2549_v28  ;;  %v4919_v28 = vld [vmem:[%s5098_s17] ss:$0 sm:$0xff] }
0x270f   :  { %2841 = vmatpush.bf16.msra.mxu0 %v4716_v37 }
0x2713   :  { %2842 = vmatpush.bf16.msra.mxu0 %v4722_v59 }
0x278b   :  { %v2562_v43 = vpop.f32.mrf.mxu0 }
0x278c   :  { %v2563_v33 = vadd.f32 %v4895_v48, %v2562_v43 }
0x278e   :  { %v2567_v17 = vadd.f32 %v2563_v33, %v4849_v53 }
0x2790   :  { %v2569_v49 = vsel %vm224_vm4, %v2567_v17, 0.0  ;;  %v2577_v46 = vmul.f32 %v2567_v17, %v2567_v17 }
0x2791   :  { %2570 = vadd.xlane.f32.xlu0 %v2569_v49 }
0x2792   :  { %v2579_v20 = vsel %vm224_vm4, %v2577_v46, 0.0  ;;  %v4929_v46 = vld [vmem:[%s5102_s21] ss:$0 sm:$0xff] }
0x2793   :  { %v2564_v23 = vpop.f32.mrf.mxu0  ;;  %2580 = vadd.xlane.f32.xlu2 %v2579_v20 }
0x2794   :  { %v2565_v37 = vadd.f32 %v4895_v48, %v2564_v23 }
0x2796   :  { %v2568_v59 = vadd.f32 %v2565_v37, %v4852_v16 }
0x2798   :  { %v2572_v51 = vsel %vm224_vm4, %v2568_v59, 0.0  ;;  %v2578_v31 = vmul.f32 %v2568_v59, %v2568_v59 }
0x2799   :  { %2573 = vadd.xlane.f32.xlu1 %v2572_v51 }
0x279a   :  { %v2582_v19 = vsel %vm224_vm4, %v2578_v31, 0.0 }
0x279b   :  { %2583 = vadd.xlane.f32.xlu0 %v2582_v19 }
0x2804   :  { %v2571_v53 = vpop.xlane.xlu0 %2570 }
0x2805   :  { %v2575_v22 = vmul.f32 %v2571_v53, %v4083_v6 }
0x2806   :  { %v2581_v13 = vpop.xlane.xlu2 %2580 }
0x2807   :  { %v2587_v39 = vmul.f32 %v2575_v22, %v2575_v22  ;;  %v2585_v42 = vmul.f32 %v2581_v13, %v4083_v6  ;;  %v2591_v40 = vsub.f32 %v2567_v17, %v2575_v22 }
0x2809   :  { %v2589_v41 = vsub.f32 %v2585_v42, %v2587_v39 }
0x280b   :  { %v2593_v29 = vadd.f32 1e-05, %v2589_v41 }
0x280c   :  { %v2574_v55 = vpop.xlane.xlu1 %2573 }
0x280d   :  { %3620 = vrsqrt.f32 %v2593_v29  ;;  %v2576_v16 = vmul.f32 %v2574_v55, %v4083_v6  ;;  %vm2601_vm9 = vweird.f32 %v2593_v29 }
0x280e   :  { %v2584_v3 = vpop.xlane.xlu0 %2583 }
0x280f   :  { %v2588_v60 = vmul.f32 %v2576_v16, %v2576_v16  ;;  %v2586_v58 = vmul.f32 %v2584_v3, %v4083_v6  ;;  %v2592_v36 = vsub.f32 %v2568_v59, %v2576_v16 }
0x2811   :  { %v2590_v1 = vsub.f32 %v2586_v58, %v2588_v60 }
0x2813   :  { %v3621_v45 = vpop.eup %3620  ;;  %v2594_v5 = vadd.f32 1e-05, %v2590_v1 }
0x2814   :  { %v2596_v10 = vmul.f32 %v3621_v45, %v2593_v29  ;;  %vm2602_vm8 = vweird.f32 %v3621_v45 }
0x2815   :  { %3622 = vrsqrt.f32 %v2594_v5  ;;  %vm2603_vm10 = vmor %vm2601_vm9, %vm2602_vm8  ;;  %vm2611_vm12 = vweird.f32 %v2594_v5 }
0x2816   :  { %v2597_v34 = vmul.f32 %v3621_v45, %v2596_v10 }
0x2818   :  { %v2598_v27 = vmul.f32 0.5, %v2597_v34 }
0x281a   :  { %v2599_v24 = vsub.f32 1.5, %v2598_v27 }
0x281b   :  { %v3623_v44 = vpop.eup %3622 }
0x281c   :  { %v2600_v61 = vmul.f32 %v3621_v45, %v2599_v24  ;;  %v2606_v32 = vmul.f32 %v3623_v44, %v2594_v5  ;;  %vm2612_vm11 = vweird.f32 %v3623_v44 }
0x281d   :  { %vm2613_vm13 = vmor %vm2611_vm12, %vm2612_vm11 }
0x281e   :  { %v2607_v4 = vmul.f32 %v3623_v44, %v2606_v32  ;;  %v2604_v0 = vsel %vm2603_vm10, %v3621_v45, %v2600_v61 }
0x281f   :  { %v2615_v11 = vmul.f32 %v2604_v0, %v2591_v40 }
0x2820   :  { %v2608_v25 = vmul.f32 0.5, %v2607_v4 }
0x2821   :  { %v2617_v38 = vmul.f32 %v4912_v18, %v2615_v11 }
0x2822   :  { %v2609_v50 = vsub.f32 1.5, %v2608_v25 }
0x2823   :  { %v2619_v43 = vadd.f32 %v4919_v28, %v2617_v38 }
0x2824   :  { %v2610_v2 = vmul.f32 %v3623_v44, %v2609_v50 }
0x2826   :  { %v2614_v7 = vsel %vm2613_vm13, %v3623_v44, %v2610_v2 }
0x2827   :  { %v2616_v57 = vmul.f32 %v2614_v7, %v2592_v36 }
0x2829   :  { %v2618_v30 = vmul.f32 %v4912_v18, %v2616_v57 }
0x282b   :  { %v2620_v33 = vadd.f32 %v4919_v28, %v2618_v30 }
0x282d   :  { %v2621_v17 = vpack.c.bf16 %v2620_v33, %v2619_v43 }
0x282f   :  { %3377 = vmatmul.msk.bf16.vlgmr.msra.gmra.mxu1 %vm224_vm4, %v2621_v17 }
0x2830   :  { %2913 = vmatpush.bf16.msra.mxu1 %v4745_v12 }
0x2834   :  { %2914 = vmatpush.bf16.msra.mxu1 %v4751_v47  ;;  %v4939_v47 = vld [vmem:[%s5104_s23] ss:$0 sm:$0xff] }
0x28ac   :  { %v2634_v49 = vpop.f32.mrf.mxu1 }
0x28ad   :  { %v2635_v20 = vadd.f32 %v4929_v46, %v2634_v49 }
0x28af   :  { %v2639_v59 = vmax.f32 %v2635_v20, 0.0 }
0x28b4   :  { %v2636_v23 = vpop.f32.mrf.mxu1 }
0x28b5   :  { %v2637_v37 = vadd.f32 %v4929_v46, %v2636_v23  ;;  %v4954_v23 = vld [vmem:[%s5099_s18] ss:$0 sm:$0xff] }
0x28b7   :  { %v2640_v51 = vmax.f32 %v2637_v37, 0.0 }
0x28b9   :  { %v2641_v31 = vpack.c.bf16 %v2640_v51, %v2639_v59 }
0x28bb   :  { %3378 = vmatmul.msk.bf16.vlgmr.msrb.gmra.mxu0 %vm803_vm5, %v2641_v31  ;;  %v4961_v31 = vld [vmem:[%s5150_s8] ss:$0 sm:$0xff] }
0x28bc   :  { %2939 = vmatpush.bf16.msrb.mxu0 %v4760_v8 }
0x28c0   :  { %2940 = vmatpush.bf16.msrb.mxu0 %v4766_v9 }
0x2938   :  { %v2654_v12 = vpop.f32.mrf.mxu0 }
0x2939   :  { %v2655_v19 = vadd.f32 %v4939_v47, %v2654_v12 }
0x293b   :  { %v2659_v53 = vadd.f32 %v2655_v19, %v2619_v43 }
0x293d   :  { %v2661_v22 = vsel %vm224_vm4, %v2659_v53, 0.0  ;;  %v2669_v13 = vmul.f32 %v2659_v53, %v2659_v53 }
0x293e   :  { %2662 = vadd.xlane.f32.xlu1 %v2661_v22 }
0x293f   :  { %v2671_v39 = vsel %vm224_vm4, %v2669_v13, 0.0 }
0x2940   :  { %v2656_v42 = vpop.f32.mrf.mxu0  ;;  %2672 = vadd.xlane.f32.xlu0 %v2671_v39 }
0x2941   :  { %v2657_v8 = vadd.f32 %v4939_v47, %v2656_v42 }
0x2943   :  { %v2660_v9 = vadd.f32 %v2657_v8, %v2620_v33 }
0x2945   :  { %v2664_v41 = vsel %vm224_vm4, %v2660_v9, 0.0  ;;  %v2670_v29 = vmul.f32 %v2660_v9, %v2660_v9 }
0x2946   :  { %2665 = vadd.xlane.f32.xlu2 %v2664_v41 }
0x2947   :  { %v2674_v55 = vsel %vm224_vm4, %v2670_v29, 0.0 }
0x2948   :  { %2675 = vadd.xlane.f32.xlu1 %v2674_v55  ;;  %v3717_v55 = vld [vmem:[%s5103_s22 + $0x10] sm:$0xff] }
0x29b1   :  { %v2663_v16 = vpop.xlane.xlu1 %2662 }
0x29b2   :  { %v2667_v3 = vmul.f32 %v2663_v16, %v4083_v6  ;;  %v3719_v16 = vld [vmem:[%s5103_s22] sm:$0xff] }
0x29b3   :  { %v2673_v60 = vpop.xlane.xlu0 %2672 }
0x29b4   :  { %v2679_v58 = vmul.f32 %v2667_v3, %v2667_v3  ;;  %v2677_v1 = vmul.f32 %v2673_v60, %v4083_v6  ;;  %v2683_v30 = vsub.f32 %v2659_v53, %v2667_v3 }
0x29b6   :  { %v2681_v45 = vsub.f32 %v2677_v1, %v2679_v58 }
0x29b8   :  { %v2685_v5 = vadd.f32 1e-05, %v2681_v45 }
0x29b9   :  { %v2666_v10 = vpop.xlane.xlu2 %2665 }
0x29ba   :  { %3624 = vrsqrt.f32 %v2685_v5  ;;  %v2668_v34 = vmul.f32 %v2666_v10, %v4083_v6  ;;  %vm2693_vm15 = vweird.f32 %v2685_v5 }
0x29bb   :  { %v2676_v27 = vpop.xlane.xlu1 %2675 }
0x29bc   :  { %v2680_v24 = vmul.f32 %v2668_v34, %v2668_v34  ;;  %v2678_v44 = vmul.f32 %v2676_v27, %v4083_v6  ;;  %v2684_v49 = vsub.f32 %v2660_v9, %v2668_v34 }
0x29be   :  { %v2682_v61 = vsub.f32 %v2678_v44, %v2680_v24 }
0x29c0   :  { %v3625_v32 = vpop.eup %3624  ;;  %v2686_v4 = vadd.f32 1e-05, %v2682_v61 }
0x29c1   :  { %v2688_v0 = vmul.f32 %v3625_v32, %v2685_v5  ;;  %vm2694_vm14 = vweird.f32 %v3625_v32 }
0x29c2   :  { %3626 = vrsqrt.f32 %v2686_v4  ;;  %vm2695_vm0 = vmor %vm2693_vm15, %vm2694_vm14  ;;  %vm2703_vm2 = vweird.f32 %v2686_v4 }
0x29c3   :  { %v2689_v25 = vmul.f32 %v3625_v32, %v2688_v0 }
0x29c5   :  { %v2690_v40 = vmul.f32 0.5, %v2689_v25 }
0x29c7   :  { %v2691_v50 = vsub.f32 1.5, %v2690_v40 }
0x29c8   :  { %v3627_v11 = vpop.eup %3626 }
0x29c9   :  { %v2692_v2 = vmul.f32 %v3625_v32, %v2691_v50  ;;  %v2698_v36 = vmul.f32 %v3627_v11, %v2686_v4  ;;  %vm2704_vm1 = vweird.f32 %v3627_v11 }
0x29ca   :  { %vm2705_vm3 = vmor %vm2703_vm2, %vm2704_vm1 }
0x29cb   :  { %v2699_v7 = vmul.f32 %v3627_v11, %v2698_v36  ;;  %v2696_v38 = vsel %vm2695_vm0, %v3625_v32, %v2692_v2 }
0x29cc   :  { %v2707_v33 = vmul.f32 %v2696_v38, %v2683_v30 }
0x29cd   :  { %v2700_v57 = vmul.f32 0.5, %v2699_v7 }
0x29ce   :  { %v2709_v37 = vmul.f32 %v4954_v23, %v2707_v33 }
0x29cf   :  { %v2701_v43 = vsub.f32 1.5, %v2700_v57 }
0x29d0   :  { %v4964_v12 = vadd.f32 %v4961_v31, %v2709_v37 }
0x29d1   :  { %v2702_v17 = vmul.f32 %v3627_v11, %v2701_v43 }
0x29d3   :  { %v2706_v20 = vsel %vm2705_vm3, %v3627_v11, %v2702_v17 }
0x29d4   :  { %v2708_v59 = vmul.f32 %v2706_v20, %v2684_v49 }
0x29d6   :  { %v2710_v51 = vmul.f32 %v4954_v23, %v2708_v59 }
0x29d8   :  { %v4967_v19 = vadd.f32 %v4961_v31, %v2710_v51 }
0x29da   :  { %v2713_v53 = vpack.c.bf16 %v4967_v19, %v4964_v12 }
0x29dc   :  { %3379 = vmatmul.msk.bf16.vlgmr.msrb.gmra.mxu1 %vm224_vm4, %v2713_v53 }
0x29dd   :  { %2989 = vmatpush.bf16.msrb.mxu1 %v4027_v62  ;;  %v3716_v62 = vld [vmem:[%s5103_s22 + $0x18] sm:$0xff] }
0x2a59   :  { %v2726_v22 = vpop.f32.mrf.mxu1 }
0x2a5a   :  { %v2727_v13 = vadd.f32 %v4794_v54, %v2726_v22 }
0x2a5c   :  { %2819 = vrot.lane.b32.xlu1 %v2727_v13, %s3748_s3  ;;  %2733 = vrot.lane.b32.xlu2 %v2727_v13, %s3749_s9 }
0x2a61   :  { %v2728_v39 = vpop.f32.mrf.mxu1 }
0x2a62   :  { %v2729_v42 = vadd.f32 %v4794_v54, %v2728_v39  ;;  %v3718_v54 = vld [vmem:[%s5103_s22 + $0x8] sm:$0xff] }
0x2a64   :  { %2735 = vrot.lane.b32.xlu0 %v2729_v42, %s3749_s9 }
0x2a6c   :  { %2821 = vrot.lane.b32.xlu0 %v2729_v42, %s3748_s3 }
0x2ab6   :  { %v2734_v8 = vpop.permute.xlu2 %2733 }
0x2ab7   :  { %v2739_v9 = vmul.f32 %v2734_v8, %v2727_v13  ;;  %v2740_v41 = vmul.f32 %v2734_v8, %v2729_v42 }
0x2ab9   :  { %v2743_v29 = vpack.c.bf16 %v2740_v41, %v2739_v9 }
0x2abb   :  { %3380 = vmatmul.msk.bf16.vlgmr.msrb.gmra.mxu2 %vm224_vm4, %v2743_v29 }
0x2abc   :  { %3107 = vmatpush.bf16.msrb.mxu2 %v3716_v62 }
0x2ac0   :  { %3108 = vmatpush.bf16.msrb.mxu2 %v3717_v55 }
0x2ac4   :  { %3109 = vmatpush.bf16.msrb.mxu2 %v3718_v54 }
0x2ac8   :  { %3110 = vmatpush.bf16.msrb.mxu2 %v3719_v16 }
0x2ad6   :  { %v2736_v3 = vpop.permute.xlu0 %2735 }
0x2ad7   :  { %v2741_v60 = vmul.f32 %v2736_v3, %v2727_v13  ;;  %v2742_v58 = vmul.f32 %v2736_v3, %v2729_v42  ;;  %v2820_v42 = vpop.permute.xlu1 %2819 }
0x2ad9   :  { %v2744_v1 = vpack.c.bf16 %v2742_v58, %v2741_v60 }
0x2adb   :  { %3381 = vmatmul.msk.bf16.gmra.mxu2 %vm224_vm4, %v2744_v1 }
0x2ade   :  { %v2822_v13 = vpop.permute.xlu0 %2821 }
0x2b3e   :  { %v2760_v45 = vpop.f32.mrf.mxu2 }
0x2b46   :  { %v2762_v5 = vpop.f32.mrf.mxu2 }
0x2b5e   :  { %v2765_v10 = vpop.f32.mrf.mxu2 }
0x2b5f   :  { %v2770_v34 = vmax.f32 %v2760_v45, %v2765_v10 }
0x2b61   :  { %v2772_v27 = vsub.f32 %v2760_v45, %v2770_v34  ;;  %v2774_v24 = vsub.f32 %v2765_v10, %v2770_v34 }
0x2b63   :  { %v2776_v44 = vmul.f32 1.442695, %v2772_v27  ;;  %v2780_v61 = vmul.f32 1.442695, %v2774_v24 }
0x2b65   :  { %3628 = vpow2.f32 %v2776_v44 }
0x2b66   :  { %v2767_v32 = vpop.f32.mrf.mxu2  ;;  %3630 = vpow2.f32 %v2780_v61 }
0x2b67   :  { %v2771_v4 = vmax.f32 %v2762_v5, %v2767_v32 }
0x2b69   :  { %v2773_v0 = vsub.f32 %v2762_v5, %v2771_v4  ;;  %v2775_v25 = vsub.f32 %v2767_v32, %v2771_v4 }
0x2b6b   :  { %v2778_v40 = vmul.f32 1.442695, %v2773_v0  ;;  %v2782_v50 = vmul.f32 1.442695, %v2775_v25  ;;  %v3629_v11 = vpop.eup %3628 }
0x2b6c   :  { %v3631_v2 = vpop.eup %3630 }
0x2b6d   :  { %3632 = vpow2.f32 %v2778_v40  ;;  %v2784_v36 = vadd.f32 %v3631_v2, %v3629_v11 }
0x2b6e   :  { %3634 = vpow2.f32 %v2782_v50 }
0x2b6f   :  { %3636 = vrcp.f32 %v2784_v36 }
0x2b73   :  { %v3633_v7 = vpop.eup %3632 }
0x2b74   :  { %v3635_v38 = vpop.eup %3634 }
0x2b75   :  { %v2785_v57 = vadd.f32 %v3635_v38, %v3633_v7  ;;  %v3637_v30 = vpop.eup %3636 }
0x2b76   :  { %v2788_v33 = vmul.f32 %v3637_v30, %v3629_v11  ;;  %v2790_v37 = vmul.f32 %v3637_v30, %v3631_v2 }
0x2b77   :  { %3638 = vrcp.f32 %v2785_v57 }
0x2b7d   :  { %v3639_v43 = vpop.eup %3638 }
0x2b7e   :  { %v2789_v17 = vmul.f32 %v3639_v43, %v3633_v7  ;;  %v2791_v20 = vmul.f32 %v3639_v43, %v3635_v38 }
0x2b80   :  { %v2792_v49 = vpack.c.bf16 %v2789_v17, %v2788_v33  ;;  %v2793_v59 = vpack.c.bf16 %v2791_v20, %v2790_v37 }
0x2b82   :  { %3382 = vmatmul.msk.bf16.vlgmr.msrb.gmra.mxu3 %vm354_vm6, %v2792_v49 }
0x2b92   :  { %3383 = vmatmul.msk.bf16.gmra.mxu3 %vm354_vm6, %v2793_v59 }
0x2c05   :  { %v2809_v51 = vpop.f32.mrf.mxu3 }
0x2c06   :  { %v2825_v9 = vmul.f32 %v2820_v42, %v2809_v51 }
0x2c0d   :  { %v2811_v53 = vpop.f32.mrf.mxu3 }
0x2c0e   :  { %v2826_v41 = vmul.f32 %v2820_v42, %v2811_v53 }
0x2c15   :  { %v2814_v22 = vpop.f32.mrf.mxu3 }
0x2c16   :  { %v2827_v39 = vmul.f32 %v2822_v13, %v2814_v22 }
0x2c18   :  { %v2829_v62 = vadd.f32 %v2827_v39, %v2825_v9 }
0x2c1d   :  { %v2816_v8 = vpop.f32.mrf.mxu3 }
0x2c1e   :  { %v2828_v29 = vmul.f32 %v2822_v13, %v2816_v8 }
0x2c20   :  { %v2830_v55 = vadd.f32 %v2828_v29, %v2826_v41 }
0x2c22   :  { %v2831_v54 = vpack.c.bf16 %v2830_v55, %v2829_v62 }
0x2c24   :  { %3384 = vmatmul.msk.bf16.vlgmr.msra.gmra.mxu0 %vm224_vm4, %v2831_v54 }
0x2ca1   :  { %v2844_v16 = vpop.f32.mrf.mxu0 }
0x2ca2   :  { %v2845_v3 = vadd.f32 %v4822_v26, %v2844_v16 }
0x2ca4   :  { %v2849_v60 = vadd.f32 %v2845_v3, %v4964_v12 }
0x2ca6   :  { %v2851_v58 = vsel %vm224_vm4, %v2849_v60, 0.0  ;;  %v2859_v1 = vmul.f32 %v2849_v60, %v2849_v60 }
0x2ca7   :  { %2852 = vadd.xlane.f32.xlu2 %v2851_v58 }
0x2ca8   :  { %v2861_v45 = vsel %vm224_vm4, %v2859_v1, 0.0 }
0x2ca9   :  { %v2846_v5 = vpop.f32.mrf.mxu0  ;;  %2862 = vadd.xlane.f32.xlu1 %v2861_v45 }
0x2caa   :  { %v2847_v10 = vadd.f32 %v4822_v26, %v2846_v5 }
0x2cac   :  { %v2850_v34 = vadd.f32 %v2847_v10, %v4967_v19 }
0x2cae   :  { %v2854_v27 = vsel %vm224_vm4, %v2850_v34, 0.0  ;;  %v2860_v24 = vmul.f32 %v2850_v34, %v2850_v34 }
0x2caf   :  { %2855 = vadd.xlane.f32.xlu0 %v2854_v27 }
0x2cb0   :  { %v2864_v44 = vsel %vm224_vm4, %v2860_v24, 0.0 }
0x2cb1   :  { %2865 = vadd.xlane.f32.xlu2 %v2864_v44 }
0x2d1a   :  { %v2853_v12 = vpop.xlane.xlu2 %2852 }
0x2d1b   :  { %v2857_v61 = vmul.f32 %v2853_v12, %v4083_v6 }
0x2d1c   :  { %v2863_v32 = vpop.xlane.xlu1 %2862 }
0x2d1d   :  { %v2869_v4 = vmul.f32 %v2857_v61, %v2857_v61  ;;  %v2867_v0 = vmul.f32 %v2863_v32, %v4083_v6  ;;  %v2873_v53 = vsub.f32 %v2849_v60, %v2857_v61 }
0x2d1f   :  { %v2871_v25 = vsub.f32 %v2867_v0, %v2869_v4 }
0x2d21   :  { %v2875_v40 = vadd.f32 1e-05, %v2871_v25 }
0x2d22   :  { %v2856_v50 = vpop.xlane.xlu0 %2855 }
0x2d23   :  { %3640 = vrsqrt.f32 %v2875_v40  ;;  %v2858_v26 = vmul.f32 %v2856_v50, %v4083_v6  ;;  %vm2883_vm8 = vweird.f32 %v2875_v40 }
0x2d24   :  { %v2866_v19 = vpop.xlane.xlu2 %2865 }
0x2d25   :  { %v2870_v11 = vmul.f32 %v2858_v26, %v2858_v26  ;;  %v2868_v2 = vmul.f32 %v2866_v19, %v4083_v6  ;;  %v2874_v42 = vsub.f32 %v2850_v34, %v2858_v26 }
0x2d27   :  { %v2872_v36 = vsub.f32 %v2868_v2, %v2870_v11 }
0x2d29   :  { %v3641_v7 = vpop.eup %3640  ;;  %v2876_v38 = vadd.f32 1e-05, %v2872_v36 }
0x2d2a   :  { %v2878_v57 = vmul.f32 %v3641_v7, %v2875_v40  ;;  %vm2884_vm7 = vweird.f32 %v3641_v7 }
0x2d2b   :  { %3642 = vrsqrt.f32 %v2876_v38  ;;  %vm2885_vm9 = vmor %vm2883_vm8, %vm2884_vm7  ;;  %vm2893_vm11 = vweird.f32 %v2876_v38 }
0x2d2c   :  { %v2879_v30 = vmul.f32 %v3641_v7, %v2878_v57 }
0x2d2e   :  { %v2880_v43 = vmul.f32 0.5, %v2879_v30 }
0x2d30   :  { %v2881_v33 = vsub.f32 1.5, %v2880_v43 }
0x2d31   :  { %v3643_v17 = vpop.eup %3642 }
0x2d32   :  { %v2882_v49 = vmul.f32 %v3641_v7, %v2881_v33  ;;  %v2888_v20 = vmul.f32 %v3643_v17, %v2876_v38  ;;  %vm2894_vm10 = vweird.f32 %v3643_v17 }
0x2d33   :  { %vm2895_vm12 = vmor %vm2893_vm11, %vm2894_vm10 }
0x2d34   :  { %v2889_v37 = vmul.f32 %v3643_v17, %v2888_v20  ;;  %v2886_v59 = vsel %vm2885_vm9, %v3641_v7, %v2882_v49 }
0x2d35   :  { %v2897_v13 = vmul.f32 %v2886_v59, %v2873_v53 }
0x2d36   :  { %v2890_v51 = vmul.f32 0.5, %v2889_v37 }
0x2d37   :  { %v2899_v9 = vmul.f32 %v4839_v14, %v2897_v13 }
0x2d38   :  { %v2891_v22 = vsub.f32 1.5, %v2890_v51 }
0x2d39   :  { %v5011_v62 = vadd.f32 %v4846_v15, %v2899_v9 }
0x2d3a   :  { %v2892_v39 = vmul.f32 %v3643_v17, %v2891_v22 }
0x2d3c   :  { %v2896_v8 = vsel %vm2895_vm12, %v3643_v17, %v2892_v39 }
0x2d3d   :  { %v2898_v41 = vmul.f32 %v2896_v8, %v2874_v42 }
0x2d3f   :  { %v2900_v29 = vmul.f32 %v4839_v14, %v2898_v41 }
0x2d41   :  { %v5014_v55 = vadd.f32 %v4846_v15, %v2900_v29 }
0x2d43   :  { %v2903_v54 = vpack.c.bf16 %v5014_v55, %v5011_v62 }
0x2d45   :  { %3385 = vmatmul.msk.bf16.vlgmr.msra.gmra.mxu1 %vm224_vm4, %v2903_v54 }
0x2dc2   :  { %v2916_v16 = vpop.f32.mrf.mxu1 }
0x2dc3   :  { %v2917_v3 = vadd.f32 %v4861_v21, %v2916_v16 }
0x2dc5   :  { %v2921_v1 = vmul.f32 %v2917_v3, %v4079_v35  ;;  %v2923_v5 = vmul.f32 %v2917_v3, %v4074_v63 }
0x2dca   :  { %v2918_v60 = vpop.f32.mrf.mxu1 }
0x2dcb   :  { %v2919_v58 = vadd.f32 %v4861_v21, %v2918_v60 }
0x2dcd   :  { %v2922_v14 = vmul.f32 %v2919_v58, %v4079_v35  ;;  %v2924_v15 = vmul.f32 %v2919_v58, %v4074_v63 }
0x2dcf   :  { %v2925_v45 = vpack.c.bf16 %v2922_v14, %v2921_v1  ;;  %v2926_v10 = vpack.c.bf16 %v2924_v15, %v2923_v5 }
0x2dd1   :  { %3386 = vmatmul.msk.bf16.vlgmr.msrb.gmra.mxu0 %vm224_vm4, %v2925_v45 }
0x2de1   :  { %3387 = vmatmul.msk.bf16.gmra.mxu0 %vm224_vm4, %v2926_v10 }
0x2e4e   :  { %v2942_v34 = vpop.f32.mrf.mxu0 }
0x2e56   :  { %v2944_v27 = vpop.f32.mrf.mxu0 }
0x2e5e   :  { %v2947_v24 = vpop.f32.mrf.mxu0 }
0x2e5f   :  { %v2952_v44 = vmax.f32 %v2942_v34, %v2947_v24 }
0x2e61   :  { %v2954_v12 = vsub.f32 %v2942_v34, %v2952_v44  ;;  %v2956_v21 = vsub.f32 %v2947_v24, %v2952_v44 }
0x2e63   :  { %v2958_v61 = vmul.f32 1.442695, %v2954_v12  ;;  %v2962_v32 = vmul.f32 1.442695, %v2956_v21 }
0x2e65   :  { %3644 = vpow2.f32 %v2958_v61 }
0x2e66   :  { %v2949_v4 = vpop.f32.mrf.mxu0  ;;  %3646 = vpow2.f32 %v2962_v32 }
0x2e67   :  { %v2953_v35 = vmax.f32 %v2944_v27, %v2949_v4 }
0x2e69   :  { %v2955_v0 = vsub.f32 %v2944_v27, %v2953_v35  ;;  %v2957_v25 = vsub.f32 %v2949_v4, %v2953_v35 }
0x2e6b   :  { %v2960_v40 = vmul.f32 1.442695, %v2955_v0  ;;  %v2964_v50 = vmul.f32 1.442695, %v2957_v25  ;;  %v3645_v63 = vpop.eup %3644 }
0x2e6c   :  { %v3647_v26 = vpop.eup %3646 }
0x2e6d   :  { %3648 = vpow2.f32 %v2960_v40  ;;  %v2966_v19 = vadd.f32 %v3647_v26, %v3645_v63 }
0x2e6e   :  { %3650 = vpow2.f32 %v2964_v50 }
0x2e6f   :  { %3652 = vrcp.f32 %v2966_v19 }
0x2e73   :  { %v3649_v11 = vpop.eup %3648 }
0x2e74   :  { %v3651_v2 = vpop.eup %3650 }
0x2e75   :  { %v2967_v36 = vadd.f32 %v3651_v2, %v3649_v11  ;;  %v3653_v7 = vpop.eup %3652 }
0x2e76   :  { %v2970_v57 = vmul.f32 %v3653_v7, %v3645_v63  ;;  %v2972_v17 = vmul.f32 %v3653_v7, %v3647_v26 }
0x2e77   :  { %3654 = vrcp.f32 %v2967_v36 }
0x2e7d   :  { %v3655_v38 = vpop.eup %3654 }
0x2e7e   :  { %v2971_v30 = vmul.f32 %v3655_v38, %v3649_v11  ;;  %v2973_v33 = vmul.f32 %v3655_v38, %v3651_v2 }
0x2e80   :  { %v2974_v43 = vpack.c.bf16 %v2971_v30, %v2970_v57  ;;  %v2975_v49 = vpack.c.bf16 %v2973_v33, %v2972_v17 }
0x2e82   :  { %3388 = vmatmul.msk.bf16.vlgmr.msrb.gmra.mxu1 %vm354_vm6, %v2974_v43 }
0x2e92   :  { %3389 = vmatmul.msk.bf16.gmra.mxu1 %vm354_vm6, %v2975_v49 }
0x2eff   :  { %v2991_v20 = vpop.f32.mrf.mxu1 }
0x2f00   :  { %v3001_v22 = vmul.f32 %v2991_v20, %v4156_v56 }
0x2f07   :  { %v2993_v37 = vpop.f32.mrf.mxu1 }
0x2f08   :  { %v3002_v13 = vmul.f32 %v2993_v37, %v4156_v56 }
0x2f0f   :  { %v2996_v59 = vpop.f32.mrf.mxu1 }
0x2f10   :  { %v3003_v51 = vmul.f32 %v2996_v59, %v4153_v52 }
0x2f12   :  { %v3005_v42 = vadd.f32 %v3003_v51, %v3001_v22 }
0x2f17   :  { %v2998_v53 = vpop.f32.mrf.mxu1 }
0x2f18   :  { %v3004_v39 = vmul.f32 %v2998_v53, %v4153_v52 }
0x2f1a   :  { %v3006_v8 = vadd.f32 %v3004_v39, %v3002_v13 }
0x2f1c   :  { %v3007_v9 = vpack.c.bf16 %v3006_v8, %v3005_v42 }
0x2f1e   :  { %3390 = vmatmul.msk.bf16.vlgmr.msra.gmra.mxu2 %vm224_vm4, %v3007_v9 }
0x2fa1   :  { %v3020_v41 = vpop.f32.mrf.mxu2 }
0x2fa2   :  { %v3021_v29 = vadd.f32 %v4895_v48, %v3020_v41 }
0x2fa4   :  { %v3025_v54 = vadd.f32 %v3021_v29, %v5011_v62 }
0x2fa6   :  { %v3027_v16 = vsel %vm224_vm4, %v3025_v54, 0.0  ;;  %v3035_v3 = vmul.f32 %v3025_v54, %v3025_v54 }
0x2fa7   :  { %3028 = vadd.xlane.f32.xlu0 %v3027_v16 }
0x2fa8   :  { %v3037_v60 = vsel %vm224_vm4, %v3035_v3, 0.0 }
0x2fa9   :  { %v3022_v58 = vpop.f32.mrf.mxu2  ;;  %3038 = vadd.xlane.f32.xlu1 %v3037_v60 }
0x2faa   :  { %v3023_v52 = vadd.f32 %v4895_v48, %v3022_v58 }
0x2fac   :  { %v3026_v56 = vadd.f32 %v3023_v52, %v5014_v55 }
0x2fae   :  { %v3030_v1 = vsel %vm224_vm4, %v3026_v56, 0.0  ;;  %v3036_v14 = vmul.f32 %v3026_v56, %v3026_v56 }
0x2faf   :  { %3031 = vadd.xlane.f32.xlu2 %v3030_v1 }
0x2fb0   :  { %v3040_v45 = vsel %vm224_vm4, %v3036_v14, 0.0 }
0x2fb1   :  { %3041 = vadd.xlane.f32.xlu0 %v3040_v45  ;;  %v3421_v45 = vld [vmem:[%s5105_s24 + $0x8] sm:$0xff] }
0x2fb2   :  { %3200 = vmatpush.bf16.msrb.mxu3 %v3421_v45 }
0x301a   :  { %v3029_v62 = vpop.xlane.xlu0 %3028 }
0x301b   :  { %v3033_v15 = vmul.f32 %v3029_v62, %v4083_v6 }
0x301c   :  { %v3039_v5 = vpop.xlane.xlu1 %3038 }
0x301d   :  { %v3045_v10 = vmul.f32 %v3033_v15, %v3033_v15  ;;  %v3043_v34 = vmul.f32 %v3039_v5, %v4083_v6  ;;  %v3049_v36 = vsub.f32 %v3025_v54, %v3033_v15  ;;  %v3420_v5 = vld [vmem:[%s5105_s24] sm:$0xff] }
0x301e   :  { %3201 = vmatpush.bf16.msrb.mxu3 %v3420_v5 }
0x301f   :  { %v3047_v27 = vsub.f32 %v3043_v34, %v3045_v10 }
0x3021   :  { %v3051_v24 = vadd.f32 1e-05, %v3047_v27 }
0x3022   :  { %v3032_v44 = vpop.xlane.xlu2 %3031 }
0x3023   :  { %3656 = vrsqrt.f32 %v3051_v24  ;;  %v3034_v48 = vmul.f32 %v3032_v44, %v4083_v6  ;;  %vm3059_vm13 = vweird.f32 %v3051_v24 }
0x3024   :  { %v3042_v55 = vpop.xlane.xlu0 %3041 }
0x3025   :  { %v3046_v12 = vmul.f32 %v3034_v48, %v3034_v48  ;;  %v3044_v21 = vmul.f32 %v3042_v55, %v4083_v6  ;;  %v3050_v30 = vsub.f32 %v3026_v56, %v3034_v48 }
0x3027   :  { %v3048_v61 = vsub.f32 %v3044_v21, %v3046_v12 }
0x3029   :  { %v3657_v32 = vpop.eup %3656  ;;  %v3052_v4 = vadd.f32 1e-05, %v3048_v61 }
0x302a   :  { %v3054_v35 = vmul.f32 %v3657_v32, %v3051_v24  ;;  %vm3060_vm6 = vweird.f32 %v3657_v32 }
0x302b   :  { %3658 = vrsqrt.f32 %v3052_v4  ;;  %vm3061_vm14 = vmor %vm3059_vm13, %vm3060_vm6  ;;  %vm3069_vm0 = vweird.f32 %v3052_v4 }
0x302c   :  { %v3055_v0 = vmul.f32 %v3657_v32, %v3054_v35 }
0x302e   :  { %v3056_v25 = vmul.f32 0.5, %v3055_v0 }
0x3030   :  { %v3057_v40 = vsub.f32 1.5, %v3056_v25 }
0x3031   :  { %v3659_v50 = vpop.eup %3658 }
0x3032   :  { %v3058_v63 = vmul.f32 %v3657_v32, %v3057_v40  ;;  %v3064_v26 = vmul.f32 %v3659_v50, %v3052_v4  ;;  %vm3070_vm15 = vweird.f32 %v3659_v50 }
0x3033   :  { %vm3071_vm1 = vmor %vm3069_vm0, %vm3070_vm15 }
0x3034   :  { %v3065_v19 = vmul.f32 %v3659_v50, %v3064_v26  ;;  %v3062_v11 = vsel %vm3061_vm14, %v3657_v32, %v3058_v63 }
0x3035   :  { %v3073_v38 = vmul.f32 %v3062_v11, %v3049_v36 }
0x3036   :  { %v3066_v2 = vmul.f32 0.5, %v3065_v19 }
0x3037   :  { %v3075_v33 = vmul.f32 %v4912_v18, %v3073_v38 }
0x3038   :  { %v3067_v7 = vsub.f32 1.5, %v3066_v2 }
0x3039   :  { %v3077_v20 = vadd.f32 %v4919_v28, %v3075_v33 }
0x303a   :  { %v3068_v57 = vmul.f32 %v3659_v50, %v3067_v7 }
0x303c   :  { %v3072_v43 = vsel %vm3071_vm1, %v3659_v50, %v3068_v57 }
0x303d   :  { %v3074_v17 = vmul.f32 %v3072_v43, %v3050_v30 }
0x303f   :  { %v3076_v49 = vmul.f32 %v4912_v18, %v3074_v17 }
0x3041   :  { %v3078_v37 = vadd.f32 %v4919_v28, %v3076_v49  ;;  %v3445_v49 = vld [vmem:[%s5106_s25] ss:$0 sm:$0xff] }
0x3043   :  { %v3079_v59 = vpack.c.bf16 %v3078_v37, %v3077_v20 }
0x3045   :  { %3391 = vmatmul.msk.bf16.vlgmr.msra.gmra.mxu3 %vm224_vm4, %v3079_v59 }
0x30c8   :  { %v3092_v51 = vpop.f32.mrf.mxu3 }
0x30c9   :  { %v3093_v53 = vadd.f32 %v4929_v46, %v3092_v51 }
0x30cb   :  { %v3097_v39 = vmax.f32 %v3093_v53, 0.0 }
0x30d0   :  { %v3094_v22 = vpop.f32.mrf.mxu3 }
0x30d1   :  { %v3095_v13 = vadd.f32 %v4929_v46, %v3094_v22 }
0x30d3   :  { %v3098_v42 = vmax.f32 %v3095_v13, 0.0 }
0x30d5   :  { %v3099_v8 = vpack.c.bf16 %v3098_v42, %v3097_v39 }
0x30d7   :  { %3392 = vmatmul.msk.bf16.vlgmr.msrb.gmra.mxu2 %vm803_vm5, %v3099_v8 }
0x315a   :  { %v3112_v9 = vpop.f32.mrf.mxu2 }
0x315b   :  { %v3113_v18 = vadd.f32 %v4939_v47, %v3112_v9 }
0x315d   :  { %v3117_v41 = vadd.f32 %v3113_v18, %v3077_v20 }
0x315f   :  { %v3119_v28 = vsel %vm224_vm4, %v3117_v41, 0.0  ;;  %v3127_v29 = vmul.f32 %v3117_v41, %v3117_v41 }
0x3160   :  { %3120 = vadd.xlane.f32.xlu2 %v3119_v28 }
0x3161   :  { %v3129_v54 = vsel %vm224_vm4, %v3127_v29, 0.0 }
0x3162   :  { %v3114_v16 = vpop.f32.mrf.mxu2  ;;  %3130 = vadd.xlane.f32.xlu0 %v3129_v54 }
0x3163   :  { %v3115_v3 = vadd.f32 %v4939_v47, %v3114_v16 }
0x3165   :  { %v3118_v46 = vadd.f32 %v3115_v3, %v3078_v37 }
0x3167   :  { %v3122_v60 = vsel %vm224_vm4, %v3118_v46, 0.0  ;;  %v3128_v58 = vmul.f32 %v3118_v46, %v3118_v46 }
0x3168   :  { %3123 = vadd.xlane.f32.xlu1 %v3122_v60 }
0x3169   :  { %v3132_v52 = vsel %vm224_vm4, %v3128_v58, 0.0 }
0x316a   :  { %3133 = vadd.xlane.f32.xlu2 %v3132_v52 }
0x31d3   :  { %v3121_v56 = vpop.xlane.xlu2 %3120 }
0x31d4   :  { %v3125_v1 = vmul.f32 %v3121_v56, %v4083_v6 }
0x31d5   :  { %v3131_v14 = vpop.xlane.xlu0 %3130 }
0x31d6   :  { %v3137_v62 = vmul.f32 %v3125_v1, %v3125_v1  ;;  %v3135_v15 = vmul.f32 %v3131_v14, %v4083_v6  ;;  %v3141_v19 = vsub.f32 %v3117_v41, %v3125_v1 }
0x31d8   :  { %v3139_v47 = vsub.f32 %v3135_v15, %v3137_v62 }
0x31da   :  { %v3143_v10 = vadd.f32 1e-05, %v3139_v47 }
0x31db   :  { %v3124_v34 = vpop.xlane.xlu1 %3123 }
0x31dc   :  { %3660 = vrsqrt.f32 %v3143_v10  ;;  %v3126_v27 = vmul.f32 %v3124_v34, %v4083_v6  ;;  %vm3151_vm2 = vweird.f32 %v3143_v10 }
0x31dd   :  { %v3134_v24 = vpop.xlane.xlu2 %3133 }
0x31de   :  { %v3138_v44 = vmul.f32 %v3126_v27, %v3126_v27  ;;  %v3136_v48 = vmul.f32 %v3134_v24, %v4083_v6  ;;  %v3142_v36 = vsub.f32 %v3118_v46, %v3126_v27 }
0x31e0   :  { %v3140_v55 = vsub.f32 %v3136_v48, %v3138_v44 }
0x31e2   :  { %v3661_v12 = vpop.eup %3660  ;;  %v3144_v21 = vadd.f32 1e-05, %v3140_v55 }
0x31e3   :  { %v3146_v61 = vmul.f32 %v3661_v12, %v3143_v10  ;;  %vm3152_vm5 = vweird.f32 %v3661_v12 }
0x31e4   :  { %3662 = vrsqrt.f32 %v3144_v21  ;;  %vm3153_vm3 = vmor %vm3151_vm2, %vm3152_vm5  ;;  %vm3161_vm8 = vweird.f32 %v3144_v21 }
0x31e5   :  { %v3147_v32 = vmul.f32 %v3661_v12, %v3146_v61 }
0x31e7   :  { %v3148_v4 = vmul.f32 0.5, %v3147_v32 }
0x31e9   :  { %v3149_v35 = vsub.f32 1.5, %v3148_v4 }
0x31ea   :  { %v3663_v0 = vpop.eup %3662 }
0x31eb   :  { %v3150_v25 = vmul.f32 %v3661_v12, %v3149_v35  ;;  %v3156_v40 = vmul.f32 %v3663_v0, %v3144_v21  ;;  %vm3162_vm7 = vweird.f32 %v3663_v0 }
0x31ec   :  { %vm3163_vm9 = vmor %vm3161_vm8, %vm3162_vm7 }
0x31ed   :  { %v3157_v50 = vmul.f32 %v3663_v0, %v3156_v40  ;;  %v3154_v63 = vsel %vm3153_vm3, %v3661_v12, %v3150_v25 }
0x31ee   :  { %v3165_v6 = vmul.f32 %v3154_v63, %v3141_v19 }
0x31ef   :  { %v3158_v26 = vmul.f32 0.5, %v3157_v50 }
0x31f0   :  { %v3167_v38 = vmul.f32 %v4954_v23, %v3165_v6 }
0x31f1   :  { %v3159_v11 = vsub.f32 1.5, %v3158_v26 }
0x31f2   :  { %v3169_v43 = vadd.f32 %v4961_v31, %v3167_v38 }
0x31f3   :  { %v3160_v2 = vmul.f32 %v3663_v0, %v3159_v11 }
0x31f5   :  { %v3164_v7 = vsel %vm3163_vm9, %v3663_v0, %v3160_v2 }
0x31f6   :  { %v3166_v57 = vmul.f32 %v3164_v7, %v3142_v36 }
0x31f8   :  { %v3168_v30 = vmul.f32 %v4954_v23, %v3166_v57 }
0x31fa   :  { %v3170_v33 = vadd.f32 %v4961_v31, %v3168_v30 }
0x31fc   :  { %v3171_v17 = vpack.c.bf16 %v3170_v33, %v3169_v43 }
0x31fe   :  { %3401 = vmatmul.msk.bf16.vlgmr.msrb.gmra.mxu3 %vm224_vm4, %v3171_v17 }
0x3281   :  { %v3203_v20 = vpop.f32.mrf.mxu3 }
0x3282   :  { %v3204_v37 = vadd.f32 %v3445_v49, %v3203_v20 }
0x3284   :  { %3208 = vst [vmem:[#allocation2] sm:$0xff] %v3204_v37 }
0x3289   :  { %v3205_v23 = vpop.f32.mrf.mxu3 }
0x328a   :  { %v3206_v31 = vadd.f32 %v3445_v49, %v3205_v23 }
0x328c   :  { %3209 = vst [vmem:[#allocation2 + $0x8] sm:$0xff] %v3206_v31 }
0x328d   :  { %3222 = dma.vmem_to_hbm [thread:$0]  %s3215_s20, 256, %s3217_s1, [#allocation3], %s3752_s4, %s3752_s4, %s3753_s12  }
0x328e   :  { %3744 = dma.done.wait [#allocation3], 256  }
0x328f   :  { %3745 = vsyncadd [#allocation3], 4294967040 }
0x3290   :  { %3227 = vsyncpa [#allocation3], 1 }

</bundles_post_ra>
